<compile_context>
chip_gen: v5e
topology: v5e:2x2
jax: 0.10.0
libtpu: 0.0.40
codegen_flags: <defaults>
</compile_context>

<pallas_src>
import jax
import jax.numpy as jnp
from jax.experimental import pallas as pl
from jax.experimental.pallas import tpu as pltpu  # noqa: F401  (kept for future scratch/grid use)

FEAT = 512          # per-branch latent size (ResNet18)
NUM_CLASSES = 10
LANE = 128
C_PAD = ((NUM_CLASSES + LANE - 1) // LANE) * LANE   # 10 -> 128 (lane-dense output)


# ---------------------------------------------------------------------------
# Fused Pallas kernel: backbone1 + backbone2 + concat-free FC
# ---------------------------------------------------------------------------
def fused_kernel(x1_ref, x2_ref, w12_ref, b12_ref, wfc_ref, bfc_ref, o_ref):
    """out = relu(x1@W1+b1) @ Wfc[:512] + relu(x2@W2+b2) @ Wfc[512:] + b_fc.

    Mathematically identical to cat((l1, l2), dim=1) @ W_fc.T + b_fc — no explicit
    concat is materialized and the latents never leave vregs/VMEM.
    """
    # in-kernel bf16 cast of the activations (VPU; rides under the weight DMA)
    x1 = x1_ref[...].astype(jnp.bfloat16)
    x2 = x2_ref[...].astype(jnp.bfloat16)

    # static, lane-aligned slices of the coalesced backbone weights / biases
    w1 = w12_ref[:, :FEAT]
    w2 = w12_ref[:, FEAT:]
    b1 = b12_ref[:, :FEAT]
    b2 = b12_ref[:, FEAT:]

    # --- stand-in backbone 1 (bf16 MXU operands, f32 accumulation + f32 VPU) ---
    acc1 = jnp.dot(x1, w1, preferred_element_type=jnp.float32)
    l1 = jnp.maximum(acc1 + b1, 0.0)

    # --- stand-in backbone 2 (same launch, back-to-back on the MXU) ---
    acc2 = jnp.dot(x2, w2, preferred_element_type=jnp.float32)
    l2 = jnp.maximum(acc2 + b2, 0.0)

    # --- fused FC: bf16 latents x bf16 pre-transposed, lane-padded weight ---
    wa = wfc_ref[:FEAT, :]          # rows hitting latent_vector1 (sublane-aligned)
    wb = wfc_ref[FEAT:, :]          # rows hitting latent_vector2
    acc = jnp.dot(l1.astype(jnp.bfloat16), wa, preferred_element_type=jnp.float32)
    acc = acc + jnp.dot(l2.astype(jnp.bfloat16), wb, preferred_element_type=jnp.float32)
    o_ref[...] = (acc + bfc_ref[...]).astype(o_ref.dtype)


# ---------------------------------------------------------------------------
# Wrappers
# ---------------------------------------------------------------------------
def _full_spec(shape):
    # full-array block (tiny shapes; everything fits in VMEM, no grid needed)
    return pl.BlockSpec(shape, lambda: (0,) * len(shape))


def prepare_params(params):
    """One-time parameter prep — hoisted out of the per-forward path."""
    # coalesce the two backbone weight matrices into one HBM array (one big DMA)
    w12 = jnp.concatenate([params["w1"], params["w2"]], axis=1).astype(jnp.bfloat16)
    b12 = jnp.concatenate(
        [params["b1"], params["b2"]]).reshape(1, 2 * FEAT).astype(jnp.float32)
    # FC: pre-transpose once, pad the class dim 10 -> 128, store bf16
    wt = params["w_fc"].T.astype(jnp.float32)                  # (1024, C)
    c = wt.shape[1]
    wfc_pad = (jnp.zeros((2 * FEAT, C_PAD), jnp.float32)
               .at[:, :c].set(wt)).astype(jnp.bfloat16)
    bfc_pad = jnp.zeros((1, C_PAD), jnp.float32).at[0, :c].set(
        params["b_fc"].astype(jnp.float32))
    return {"w12": w12, "b12": b12, "wfc_pad": wfc_pad, "bfc_pad": bfc_pad}


def combined_resnet18_only_image(x1, x2, prepped, num_classes=NUM_CLASSES):
    """Forward pass of CombinedResNet18_onlyImage (single fused kernel)."""
    B = x1.shape[0]
    # flatten NCHW -> (B, D); no dtype conversion here (cast happens in-kernel)
    x1f = x1.reshape(B, -1)
    x2f = x2.reshape(B, -1)
    D = x1f.shape[1]

    out_pad = pl.pallas_call(
        fused_kernel,
        out_shape=jax.ShapeDtypeStruct((B, C_PAD), jnp.float32),
        in_specs=[_full_spec((B, D)),                # x1 flat (f32)
                  _full_spec((B, D)),                # x2 flat (f32)
                  _full_spec((D, 2 * FEAT)),         # w1|w2 coalesced (bf16)
                  _full_spec((1, 2 * FEAT)),         # b1|b2 coalesced (f32)
                  _full_spec((2 * FEAT, C_PAD)),     # pre-transposed, padded W_fc (bf16)
                  _full_spec((1, C_PAD))],           # padded b_fc (f32)
        out_specs=_full_spec((B, C_PAD)),
    )(x1f, x2f, prepped["w12"], prepped["b12"],
      prepped["wfc_pad"], prepped["bfc_pad"])

    # TODO(synk): tile over B ("parallel") and D ("arbitrary" reduction axis with a
    # pl.when-initialized f32 accumulator) once shapes grow beyond toy sizes; re-derive
    # the K tile for v7x's 32 MiB scoped VMEM.
    return out_pad[:, :num_classes]


# ---------------------------------------------------------------------------
# Main
# ---------------------------------------------------------------------------
if __name__ == "__main__":
    key = jax.random.PRNGKey(0)
    k_x1, k_x2, k_w1, k_b1, k_w2, k_b2, k_wfc, k_bfc = jax.random.split(key, 8)

    B, C, H, W = 2, 3, 16, 16          # small NCHW images
    D = C * H * W                      # 768 flattened features

    x1 = jax.random.normal(k_x1, (B, C, H, W), dtype=jnp.float32)
    x2 = jax.random.normal(k_x2, (B, C, H, W), dtype=jnp.float32)

    params = {
        # stand-in backbone weights (deterministic)
        "w1": 0.02 * jax.random.normal(k_w1, (D, FEAT), dtype=jnp.float32),
        "b1": 0.01 * jax.random.normal(k_b1, (FEAT,), dtype=jnp.float32),
        "w2": 0.02 * jax.random.normal(k_w2, (D, FEAT), dtype=jnp.float32),
        "b2": 0.01 * jax.random.normal(k_b2, (FEAT,), dtype=jnp.float32),
        # nn.Linear(512*2, num_classes): weight (num_classes, 1024), bias (num_classes,)
        "w_fc": 0.02 * jax.random.normal(k_wfc, (NUM_CLASSES, 2 * FEAT),
                                         dtype=jnp.float32),
        "b_fc": 0.01 * jax.random.normal(k_bfc, (NUM_CLASSES,),
                                         dtype=jnp.float32),
    }

    prepped = prepare_params(params)
    out = combined_resnet18_only_image(x1, x2, prepped)
    out = jax.block_until_ready(out)

    # reference in plain JAX with the SAME bf16 rounding points as the kernel
    x1b = x1.reshape(B, -1).astype(jnp.bfloat16).astype(jnp.float32)
    x2b = x2.reshape(B, -1).astype(jnp.bfloat16).astype(jnp.float32)
    w1b = params["w1"].astype(jnp.bfloat16).astype(jnp.float32)
    w2b = params["w2"].astype(jnp.bfloat16).astype(jnp.float32)
    l1_ref = jnp.maximum(x1b @ w1b + params["b1"], 0.0)
    l2_ref = jnp.maximum(x2b @ w2b + params["b2"], 0.0)
    l1b = l1_ref.astype(jnp.bfloat16).astype(jnp.float32)
    l2b = l2_ref.astype(jnp.bfloat16).astype(jnp.float32)
    wfcb = params["w_fc"].astype(jnp.bfloat16).astype(jnp.float32)
    ref = jnp.concatenate([l1b, l2b], axis=1) @ wfcb.T + params["b_fc"]

    assert out.shape == (B, NUM_CLASSES)
    assert jnp.allclose(out, ref, atol=1e-2, rtol=1e-2), (
        f"max abs err = {jnp.max(jnp.abs(out - ref))}")

    print("KERNEL_OK")
</pallas_src>

<mosaic_0001>
module attributes {stable_mosaic.version = 11 : i64} {
  func.func @fused_kernel(%arg0: memref<2x768xf32, #tpu.memory_space<vmem>>, %arg1: memref<2x768xf32, #tpu.memory_space<vmem>>, %arg2: memref<768x1024xbf16, #tpu.memory_space<vmem>>, %arg3: memref<1x1024xf32, #tpu.memory_space<vmem>>, %arg4: memref<1024x128xbf16, #tpu.memory_space<vmem>>, %arg5: memref<1x128xf32, #tpu.memory_space<vmem>>, %arg6: memref<2x128xf32, #tpu.memory_space<vmem>>) attributes {dimension_semantics = [], scalar_prefetch = 0 : i64, scratch_operands = 0 : i64, tpu.core_type = #tpu.core_type<tc>} {
    %c0 = arith.constant 0 : index
    %c0_0 = arith.constant 0 : index
    %0 = vector.load %arg0[%c0, %c0_0] : memref<2x768xf32, #tpu.memory_space<vmem>>, vector<2x768xf32>
    %1 = arith.truncf %0 : vector<2x768xf32> to vector<2x768xbf16>
    %c0_1 = arith.constant 0 : index
    %c0_2 = arith.constant 0 : index
    %2 = vector.load %arg1[%c0_1, %c0_2] : memref<2x768xf32, #tpu.memory_space<vmem>>, vector<2x768xf32>
    %3 = arith.truncf %2 : vector<2x768xf32> to vector<2x768xbf16>
    %c0_3 = arith.constant 0 : index
    %c0_4 = arith.constant 0 : index
    %4 = vector.load %arg2[%c0_3, %c0_4] : memref<768x1024xbf16, #tpu.memory_space<vmem>>, vector<768x512xbf16>
    %c0_5 = arith.constant 0 : index
    %c512 = arith.constant 512 : index
    %5 = vector.load %arg2[%c0_5, %c512] : memref<768x1024xbf16, #tpu.memory_space<vmem>>, vector<768x512xbf16>
    %c0_6 = arith.constant 0 : index
    %c0_7 = arith.constant 0 : index
    %6 = vector.load %arg3[%c0_6, %c0_7] : memref<1x1024xf32, #tpu.memory_space<vmem>>, vector<1x512xf32>
    %c0_8 = arith.constant 0 : index
    %c512_9 = arith.constant 512 : index
    %7 = vector.load %arg3[%c0_8, %c512_9] : memref<1x1024xf32, #tpu.memory_space<vmem>>, vector<1x512xf32>
    %cst = arith.constant dense<0.000000e+00> : vector<2x512xf32>
    %8 = tpu.matmul %1, %4, %cst {dimension_numbers = #tpu.dot_dimension_numbers<[1], [0], [0], [1], [0, 0, 1, 1], [], []>} : vector<2x768xbf16>, vector<768x512xbf16>, vector<2x512xf32> -> vector<2x512xf32>
    %9 = vector.broadcast %6 : vector<1x512xf32> to vector<2x512xf32>
    %10 = arith.addf %8, %9 : vector<2x512xf32>
    %cst_10 = arith.constant 0.000000e+00 : f32
    %11 = vector.broadcast %cst_10 : f32 to vector<2x512xf32>
    %12 = arith.maximumf %10, %11 : vector<2x512xf32>
    %cst_11 = arith.constant dense<0.000000e+00> : vector<2x512xf32>
    %13 = tpu.matmul %3, %5, %cst_11 {dimension_numbers = #tpu.dot_dimension_numbers<[1], [0], [0], [1], [0, 0, 1, 1], [], []>} : vector<2x768xbf16>, vector<768x512xbf16>, vector<2x512xf32> -> vector<2x512xf32>
    %14 = vector.broadcast %7 : vector<1x512xf32> to vector<2x512xf32>
    %15 = arith.addf %13, %14 : vector<2x512xf32>
    %cst_12 = arith.constant 0.000000e+00 : f32
    %16 = vector.broadcast %cst_12 : f32 to vector<2x512xf32>
    %17 = arith.maximumf %15, %16 : vector<2x512xf32>
    %c0_13 = arith.constant 0 : index
    %c0_14 = arith.constant 0 : index
    %18 = vector.load %arg4[%c0_13, %c0_14] : memref<1024x128xbf16, #tpu.memory_space<vmem>>, vector<512x128xbf16>
    %c512_15 = arith.constant 512 : index
    %c0_16 = arith.constant 0 : index
    %19 = vector.load %arg4[%c512_15, %c0_16] : memref<1024x128xbf16, #tpu.memory_space<vmem>>, vector<512x128xbf16>
    %20 = arith.truncf %12 : vector<2x512xf32> to vector<2x512xbf16>
    %cst_17 = arith.constant dense<0.000000e+00> : vector<2x128xf32>
    %21 = tpu.matmul %20, %18, %cst_17 {dimension_numbers = #tpu.dot_dimension_numbers<[1], [0], [0], [1], [0, 0, 1, 1], [], []>} : vector<2x512xbf16>, vector<512x128xbf16>, vector<2x128xf32> -> vector<2x128xf32>
    %22 = arith.truncf %17 : vector<2x512xf32> to vector<2x512xbf16>
    %cst_18 = arith.constant dense<0.000000e+00> : vector<2x128xf32>
    %23 = tpu.matmul %22, %19, %cst_18 {dimension_numbers = #tpu.dot_dimension_numbers<[1], [0], [0], [1], [0, 0, 1, 1], [], []>} : vector<2x512xbf16>, vector<512x128xbf16>, vector<2x128xf32> -> vector<2x128xf32>
    %24 = arith.addf %21, %23 : vector<2x128xf32>
    %c0_19 = arith.constant 0 : index
    %c0_20 = arith.constant 0 : index
    %25 = vector.load %arg5[%c0_19, %c0_20] : memref<1x128xf32, #tpu.memory_space<vmem>>, vector<1x128xf32>
    %26 = vector.broadcast %25 : vector<1x128xf32> to vector<2x128xf32>
    %27 = arith.addf %24, %26 : vector<2x128xf32>
    %c0_21 = arith.constant 0 : index
    %c0_22 = arith.constant 0 : index
    %28 = vector.load %arg6[%c0_21, %c0_22] : memref<2x128xf32, #tpu.memory_space<vmem>>, vector<2x128xf32>
    tpu.vector_store %arg6[%c0_21, %c0_22], %27 {strides = array<i32>} : memref<2x128xf32, #tpu.memory_space<vmem>>, vector<2x128xf32>,
    return
  }
}

</mosaic_0001>

<bundles_post_ra>
// kernel: tpu_custom_call.1
= control target key start
LH: loop header
LB: loop body
LE: loop exit
PB: predicated region body
PF: predicated region fallthrough
CT: control target
= control target key end

     0   :  { %11 = vsyncpa [#allocation3], 0  ;;  %s6380_s0 = inlined_call_operand.hbm [shape: f32[2,768], index: 0, kind: input, shape index: {}]   ;;  %s6381_s1 = inlined_call_operand.hbm [shape: f32[2,768], index: 1, kind: input, shape index: {}]   ;;  %s6382_s2 = inlined_call_operand.hbm [shape: bf16[768,1024], index: 2, kind: input, shape index: {}]   ;;  %s6383_s3 = inlined_call_operand.hbm [shape: f32[1,1024], index: 3, kind: input, shape index: {}]   ;;  %s6384_s4 = inlined_call_operand.hbm [shape: bf16[1024,128], index: 4, kind: input, shape index: {}]   ;;  %s6385_s5 = inlined_call_operand.hbm [shape: f32[1,128], index: 5, kind: input, shape index: {}]   ;;  %s6386_s6 = inlined_call_operand.hbm [shape: f32[2,128], index: 6, kind: output, shape index: {}]  }
   0x1   :  { %12 = vsyncpa [#allocation6], 0 }
   0x2   :  { %13 = vsyncpa [#allocation9], 0 }
   0x3   :  { %14 = vsyncpa [#allocation12], 0  ;;  %s32_s23 = sshll.u32 %s6381_s1, 4  ;;  %s33_s23 = int_to_ptr.hbm [resolvable:$true] %s32_s23 }
   0x4   :  { %15 = vsyncpa [#allocation4], 0  ;;  %s6197_s24 = smov [#allocation5]   ;;  %s56_s28 = sshll.u32 %s6383_s3, 4  ;;  %s57_s28 = int_to_ptr.hbm [resolvable:$true] %s56_s28 }
   0x5   :  { %s34_s25 = sshll.u32 %s6197_s24, 4  ;;  %s6198_s29 = smov [#allocation8]   ;;  %s35_s25 = int_to_ptr.vmem [resolvable:$true] %s34_s25 }
   0x6   :  { %37 = dma.hbm_to_vmem [thread:$0]  %s33_s23, 192, %s35_s25, [#allocation6]  }
   0x7   :  { %s58_s30 = sshll.u32 %s6198_s29, 4  ;;  %s21_s9 = sshll.u32 %s6380_s0, 4  ;;  %s59_s30 = int_to_ptr.vmem [resolvable:$true] %s58_s30  ;;  %s22_s9 = int_to_ptr.hbm [resolvable:$true] %s21_s9 }
   0x8   :  { %61 = dma.hbm_to_vmem [thread:$0]  %s57_s28, 128, %s59_s30, [#allocation9]  }
   0x9   :  { %s42_s11 = sshll.u32 %s6382_s2, 4  ;;  %s6199_s12 = smov [#allocation2]   ;;  %s43_s11 = int_to_ptr.hbm [resolvable:$true] %s42_s11 }
   0xa   :  { %s23_s13 = sshll.u32 %s6199_s12, 4  ;;  %s6200_s3 = smov [#allocation7]   ;;  %s24_s13 = int_to_ptr.vmem [resolvable:$true] %s23_s13 }
   0xb   :  { %26 = dma.hbm_to_vmem [thread:$0]  %s22_s9, 192, %s24_s13, [#allocation3]  }
   0xc   :  { %s44_s14 = sshll.u32 %s6200_s3, 4  ;;  %s6201_s15 = smov 512   ;;  %s45_s14 = int_to_ptr.vmem [resolvable:$true] %s44_s14 }
   0xd   :  { %s6202_s16 = smov 32   ;;  %s66_s18 = sshll.u32 %s6384_s4, 4  ;;  %s67_s18 = int_to_ptr.hbm [resolvable:$true] %s66_s18 }
   0xe   :  { %50 = dma.hbm_to_vmem [thread:$0]  %s43_s11, 49152, %s45_s14, [#allocation6], %s6201_s15, %s6201_s15, %s6202_s16  }
   0xf   :  { %s6203_s19 = smov [#allocation10]   ;;  %s80_s22 = sshll.u32 %s6385_s5, 4  ;;  %s81_s22 = int_to_ptr.hbm [resolvable:$true] %s80_s22 }
  0x10   :  { %s68_s20 = sshll.u32 %s6203_s19, 4  ;;  %s6204_s23 = smov 64   ;;  %s69_s20 = int_to_ptr.vmem [resolvable:$true] %s68_s20 }
  0x11   :  { %s6205_s24 = smov 4   ;;  %s6206_s25 = smov [#allocation11]  }
  0x12   :  { %74 = dma.hbm_to_vmem [thread:$0]  %s67_s18, 8192, %s69_s20, [#allocation9], %s6204_s23, %s6204_s23, %s6205_s24  }
  0x13   :  { %s82_s26 = sshll.u32 %s6206_s25, 4  ;;  %s83_s26 = int_to_ptr.vmem [resolvable:$true] %s82_s26 }
  0x14   :  { %85 = dma.hbm_to_vmem [thread:$0]  %s81_s22, 16, %s83_s26, [#allocation12]  }
  0x15   :  { %6187 = dma.done.wait [#allocation3], 192  }
  0x16   :  { %6188 = vsyncadd [#allocation3], 4294967104 }
  0x17   :  { %6189 = dma.done.wait [#allocation6], 49344  }
  0x18   :  { %6190 = vsyncadd [#allocation6], 4294917952 }
  0x19   :  { %6191 = dma.done.wait [#allocation9], 8320  }
  0x1a   :  { %6192 = vsyncadd [#allocation9], 4294958976 }
  0x1b   :  { %6193 = dma.done.wait [#allocation12], 16  }
  0x1c   :  { %6194 = vsyncadd [#allocation12], 4294967280  ;;  %v3880_v0 = vld [vmem:[#allocation7 + $0x1c0] sm:$0xf]  ;;  %s6207_s4 = smov [#allocation13]   ;;  %s3753_s29 = sshll.u32 %s6386_s6, 4  ;;  %s3754_s29 = int_to_ptr.hbm [resolvable:$true] %s3753_s29 }
  0x1d   :  { %v5588_v1 = vld [vmem:[#allocation7 + $0x1dc] sm:$0xf0]  ;;  %s3751_s5 = sshll.u32 %s6207_s4, 4  ;;  %s3752_s5 = int_to_ptr.vmem [resolvable:$true] %s3751_s5 }
  0x1e   :  { %v4008_v2 = vld [vmem:[#allocation7 + $0x3c0] sm:$0xf]  ;;  %v3881_v3 = vor.u32 %v5588_v1, %v3880_v0 }
  0x1f   :  { %v5620_v4 = vld [vmem:[#allocation7 + $0x3dc] sm:$0xf0] }
  0x20   :  { %v4136_v5 = vld [vmem:[#allocation7 + $0x5c0] sm:$0xf]  ;;  %v4009_v7 = vor.u32 %v5620_v4, %v4008_v2  ;;  %1515 = vmatpush.bf16.msra.mxu0 %v3881_v3 }
  0x21   :  { %v5652_v6 = vld [vmem:[#allocation7 + $0x5dc] sm:$0xf0] }
  0x22   :  { %v4137_v8 = vor.u32 %v5652_v6, %v4136_v5  ;;  %v4264_v9 = vld [vmem:[#allocation7 + $0x7c0] sm:$0xf]  ;;  %1528 = vmatpush.bf16.msra.mxu1 %v4009_v7 }
  0x23   :  { %v5684_v10 = vld [vmem:[#allocation7 + $0x7dc] sm:$0xf0] }
  0x24   :  { %v3864_v11 = vld [vmem:[#allocation7 + $0x180] sm:$0xf]  ;;  %v4265_v12 = vor.u32 %v5684_v10, %v4264_v9  ;;  %1541 = vmatpush.bf16.msra.mxu2 %v4137_v8 }
  0x25   :  { %v5584_v13 = vld [vmem:[#allocation7 + $0x19c] sm:$0xf0] }
  0x26   :  { %v3992_v14 = vld [vmem:[#allocation7 + $0x380] sm:$0xf]  ;;  %v3865_v16 = vor.u32 %v5584_v13, %v3864_v11  ;;  %1554 = vmatpush.bf16.msra.mxu3 %v4265_v12 }
  0x27   :  { %v5616_v15 = vld [vmem:[#allocation7 + $0x39c] sm:$0xf0] }
  0x28   :  { %v3993_v17 = vor.u32 %v5616_v15, %v3992_v14  ;;  %v4120_v18 = vld [vmem:[#allocation7 + $0x580] sm:$0xf]  ;;  %1516 = vmatpush.bf16.msra.mxu0 %v3865_v16 }
  0x29   :  { %v5648_v19 = vld [vmem:[#allocation7 + $0x59c] sm:$0xf0] }
  0x2a   :  { %v4248_v20 = vld [vmem:[#allocation7 + $0x780] sm:$0xf]  ;;  %v4121_v21 = vor.u32 %v5648_v19, %v4120_v18  ;;  %1529 = vmatpush.bf16.msra.mxu1 %v3993_v17 }
  0x2b   :  { %v5680_v22 = vld [vmem:[#allocation7 + $0x79c] sm:$0xf0] }
  0x2c   :  { %v3848_v23 = vld [vmem:[#allocation7 + $0x140] sm:$0xf]  ;;  %v4249_v25 = vor.u32 %v5680_v22, %v4248_v20  ;;  %1542 = vmatpush.bf16.msra.mxu2 %v4121_v21 }
  0x2d   :  { %v5580_v24 = vld [vmem:[#allocation7 + $0x15c] sm:$0xf0] }
  0x2e   :  { %v3976_v26 = vld [vmem:[#allocation7 + $0x340] sm:$0xf]  ;;  %v3849_v29 = vor.u32 %v5580_v24, %v3848_v23  ;;  %1555 = vmatpush.bf16.msra.mxu3 %v4249_v25 }
  0x2f   :  { %v5612_v27 = vld [vmem:[#allocation7 + $0x35c] sm:$0xf0] }
  0x30   :  { %v4104_v28 = vld [vmem:[#allocation7 + $0x540] sm:$0xf]  ;;  %v3977_v33 = vor.u32 %v5612_v27, %v3976_v26  ;;  %1517 = vmatpush.bf16.msra.mxu0 %v3849_v29 }
  0x31   :  { %v5644_v30 = vld [vmem:[#allocation7 + $0x55c] sm:$0xf0] }
  0x32   :  { %v4232_v31 = vld [vmem:[#allocation7 + $0x740] sm:$0xf]  ;;  %v4105_v34 = vor.u32 %v5644_v30, %v4104_v28  ;;  %1530 = vmatpush.bf16.msra.mxu1 %v3977_v33  ;;  %v5586_v33 = vld [vmem:[#allocation7 + $0x1c4] sm:$0xf] }
  0x33   :  { %v5676_v32 = vld [vmem:[#allocation7 + $0x75c] sm:$0xf0] }
  0x34   :  { %v3832_v35 = vld [vmem:[#allocation7 + $0x100] sm:$0xf]  ;;  %v4233_v38 = vor.u32 %v5676_v32, %v4232_v31  ;;  %1543 = vmatpush.bf16.msra.mxu2 %v4105_v34  ;;  %v3882_v34 = vld [vmem:[#allocation7 + $0x1e0] sm:$0xf0] }
  0x35   :  { %v5576_v36 = vld [vmem:[#allocation7 + $0x11c] sm:$0xf0] }
  0x36   :  { %v3960_v37 = vld [vmem:[#allocation7 + $0x300] sm:$0xf]  ;;  %v3833_v44 = vor.u32 %v5576_v36, %v3832_v35  ;;  %1556 = vmatpush.bf16.msra.mxu3 %v4233_v38  ;;  %v4010_v38 = vld [vmem:[#allocation7 + $0x3e0] sm:$0xf0] }
  0x37   :  { %v5608_v39 = vld [vmem:[#allocation7 + $0x31c] sm:$0xf0] }
  0x38   :  { %v4088_v40 = vld [vmem:[#allocation7 + $0x500] sm:$0xf]  ;;  %v3961_v45 = vor.u32 %v5608_v39, %v3960_v37  ;;  %1518 = vmatpush.bf16.msra.mxu0 %v3833_v44  ;;  %v5618_v37 = vld [vmem:[#allocation7 + $0x3c4] sm:$0xf] }
  0x39   :  { %v5640_v41 = vld [vmem:[#allocation7 + $0x51c] sm:$0xf0] }
  0x3a   :  { %v4216_v42 = vld [vmem:[#allocation7 + $0x700] sm:$0xf]  ;;  %v4089_v46 = vor.u32 %v5640_v41, %v4088_v40  ;;  %1531 = vmatpush.bf16.msra.mxu1 %v3961_v45 }
  0x3b   :  { %v5672_v43 = vld [vmem:[#allocation7 + $0x71c] sm:$0xf0] }
  0x3c   :  { %v3816_v47 = vld [vmem:[#allocation7 + $0xc0] sm:$0xf]  ;;  %v4217_v50 = vor.u32 %v5672_v43, %v4216_v42  ;;  %1544 = vmatpush.bf16.msra.mxu2 %v4089_v46  ;;  %v3885_v42 = vor.u32 %v5586_v33, %v3882_v34  ;;  %v4013_v46 = vor.u32 %v5618_v37, %v4010_v38 }
  0x3d   :  { %v5572_v48 = vld [vmem:[#allocation7 + $0xdc] sm:$0xf0] }
  0x3e   :  { %v3944_v49 = vld [vmem:[#allocation7 + $0x2c0] sm:$0xf]  ;;  %v3817_v56 = vor.u32 %v5572_v48, %v3816_v47  ;;  %1557 = vmatpush.bf16.msra.mxu3 %v4217_v50  ;;  %v5582_v48 = vld [vmem:[#allocation7 + $0x184] sm:$0xf] }
  0x3f   :  { %v5604_v51 = vld [vmem:[#allocation7 + $0x2dc] sm:$0xf0]  ;;  %v5614_v50 = vld [vmem:[#allocation7 + $0x384] sm:$0xf] }
  0x40   :  { %v4072_v52 = vld [vmem:[#allocation7 + $0x4c0] sm:$0xf]  ;;  %v3945_v57 = vor.u32 %v5604_v51, %v3944_v49  ;;  %1519 = vmatpush.bf16.msra.mxu0 %v3817_v56  ;;  %v3866_v49 = vld [vmem:[#allocation7 + $0x1a0] sm:$0xf0] }
  0x41   :  { %v5636_v53 = vld [vmem:[#allocation7 + $0x4dc] sm:$0xf0]  ;;  %v3994_v51 = vld [vmem:[#allocation7 + $0x3a0] sm:$0xf0] }
  0x42   :  { %v4200_v54 = vld [vmem:[#allocation7 + $0x6c0] sm:$0xf]  ;;  %v4073_v58 = vor.u32 %v5636_v53, %v4072_v52  ;;  %1532 = vmatpush.bf16.msra.mxu1 %v3945_v57 }
  0x43   :  { %v5668_v55 = vld [vmem:[#allocation7 + $0x6dc] sm:$0xf0] }
  0x44   :  { %v3800_v59 = vld [vmem:[#allocation7 + $0x80] sm:$0xf]  ;;  %v4201_v62 = vor.u32 %v5668_v55, %v4200_v54  ;;  %1545 = vmatpush.bf16.msra.mxu2 %v4073_v58  ;;  %v3869_v54 = vor.u32 %v5582_v48, %v3866_v49  ;;  %v3997_v58 = vor.u32 %v5614_v50, %v3994_v51 }
  0x45   :  { %v5568_v60 = vld [vmem:[#allocation7 + $0x9c] sm:$0xf0] }
  0x46   :  { %v3928_v61 = vld [vmem:[#allocation7 + $0x280] sm:$0xf]  ;;  %v3801_v4 = vor.u32 %v5568_v60, %v3800_v59  ;;  %1558 = vmatpush.bf16.msra.mxu3 %v4201_v62  ;;  %v5578_v60 = vld [vmem:[#allocation7 + $0x144] sm:$0xf] }
  0x47   :  { %v5600_v63 = vld [vmem:[#allocation7 + $0x29c] sm:$0xf0]  ;;  %v5610_v62 = vld [vmem:[#allocation7 + $0x344] sm:$0xf] }
  0x48   :  { %v4056_v0 = vld [vmem:[#allocation7 + $0x480] sm:$0xf]  ;;  %v3929_v5 = vor.u32 %v5600_v63, %v3928_v61  ;;  %1520 = vmatpush.bf16.msra.mxu0 %v3801_v4  ;;  %v3850_v61 = vld [vmem:[#allocation7 + $0x160] sm:$0xf0] }
  0x49   :  { %v5632_v1 = vld [vmem:[#allocation7 + $0x49c] sm:$0xf0]  ;;  %v3978_v63 = vld [vmem:[#allocation7 + $0x360] sm:$0xf0]  ;;  %v3853_v4 = vor.u32 %v5578_v60, %v3850_v61 }
  0x4a   :  { %v4184_v2 = vld [vmem:[#allocation7 + $0x680] sm:$0xf]  ;;  %v4057_v6 = vor.u32 %v5632_v1, %v4056_v0  ;;  %1533 = vmatpush.bf16.msra.mxu1 %v3929_v5 }
  0x4b   :  { %v5664_v3 = vld [vmem:[#allocation7 + $0x69c] sm:$0xf0] }
  0x4c   :  { %v3784_v7 = vld [vmem:[#allocation7 + $0x40] sm:$0xf]  ;;  %v4185_v10 = vor.u32 %v5664_v3, %v4184_v2  ;;  %1546 = vmatpush.bf16.msra.mxu2 %v4057_v6  ;;  %v110_v2 = vld [vmem:[#allocation2] sm:$0xff] }
  0x4d   :  { %v5564_v8 = vld [vmem:[#allocation7 + $0x5c] sm:$0xf0]  ;;  %114 = vst [vmem:[#allocation1] ss:$4 sm:$0xff] %v110_v2  ;;  %v3770_v2 = vld [vmem:[#allocation7 + $0x20] sm:$0xf0] }
  0x4e   :  { %v3912_v9 = vld [vmem:[#allocation7 + $0x240] sm:$0xf]  ;;  %v3785_v16 = vor.u32 %v5564_v8, %v3784_v7  ;;  %1559 = vmatpush.bf16.msra.mxu3 %v4185_v10  ;;  %v3981_v7 = vor.u32 %v5610_v62, %v3978_v63  ;;  %v3834_v10 = vld [vmem:[#allocation7 + $0x120] sm:$0xf0] }
  0x4f   :  { %v5596_v11 = vld [vmem:[#allocation7 + $0x25c] sm:$0xf0] }
  0x50   :  { %v4040_v12 = vld [vmem:[#allocation7 + $0x440] sm:$0xf]  ;;  %v3913_v19 = vor.u32 %v5596_v11, %v3912_v9  ;;  %1521 = vmatpush.bf16.msra.mxu0 %v3785_v16  ;;  %v5574_v9 = vld [vmem:[#allocation7 + $0x104] sm:$0xf] }
  0x51   :  { %v5628_v13 = vld [vmem:[#allocation7 + $0x45c] sm:$0xf0]  ;;  %v5606_v11 = vld [vmem:[#allocation7 + $0x304] sm:$0xf] }
  0x52   :  { %v4168_v14 = vld [vmem:[#allocation7 + $0x640] sm:$0xf]  ;;  %v4041_v20 = vor.u32 %v5628_v13, %v4040_v12  ;;  %1534 = vmatpush.bf16.msra.mxu1 %v3913_v19  ;;  %v3962_v12 = vld [vmem:[#allocation7 + $0x320] sm:$0xf0] }
  0x53   :  { %v5660_v15 = vld [vmem:[#allocation7 + $0x65c] sm:$0xf0] }
  0x54   :  { %v3768_v17 = vld [vmem:[#allocation7] sm:$0xf]  ;;  %v4169_v24 = vor.u32 %v5660_v15, %v4168_v14  ;;  %1547 = vmatpush.bf16.msra.mxu2 %v4041_v20  ;;  %v5570_v20 = vld [vmem:[#allocation7 + $0xc4] sm:$0xf] }
  0x55   :  { %v5560_v18 = vld [vmem:[#allocation7 + $0x1c] sm:$0xf0]  ;;  %v120_v37 = vld.sshfl [vmem:[#allocation1 + $0x18] sm:$0xff pattern:$0x73625140] }
  0x56   :  { %v3896_v21 = vld [vmem:[#allocation7 + $0x200] sm:$0xf]  ;;  %v3769_v31 = vor.u32 %v5560_v18, %v3768_v17  ;;  %1560 = vmatpush.bf16.msra.mxu3 %v4169_v24  ;;  %v3837_v17 = vor.u32 %v5574_v9, %v3834_v10  ;;  %v3946_v24 = vld [vmem:[#allocation7 + $0x2e0] sm:$0xf0] }
  0x57   :  { %v5592_v22 = vld [vmem:[#allocation7 + $0x21c] sm:$0xf0]  ;;  %v118_v38 = vld.sshfl [vmem:[#allocation1 + $0x8] sm:$0xff pattern:$0x73625140] }
  0x58   :  { %v4024_v23 = vld [vmem:[#allocation7 + $0x400] sm:$0xf]  ;;  %v3897_v35 = vor.u32 %v5592_v22, %v3896_v21  ;;  %1522 = vmatpush.bf16.msra.mxu0 %v3769_v31  ;;  %v3965_v21 = vor.u32 %v5606_v11, %v3962_v12  ;;  %v3818_v22 = vld [vmem:[#allocation7 + $0xe0] sm:$0xf0] }
  0x59   :  { %v5624_v25 = vld [vmem:[#allocation7 + $0x41c] sm:$0xf0]  ;;  %v3821_v34 = vor.u32 %v5570_v20, %v3818_v22  ;;  %v5682_v9 = vld [vmem:[#allocation7 + $0x7c4] sm:$0xf] }
  0x5a   :  { %v4152_v26 = vld [vmem:[#allocation7 + $0x600] sm:$0xf]  ;;  %v4025_v36 = vor.u32 %v5624_v25, %v4024_v23  ;;  %1535 = vmatpush.bf16.msra.mxu1 %v3897_v35  ;;  %v5602_v23 = vld [vmem:[#allocation7 + $0x2c4] sm:$0xf] }
  0x5b   :  { %v5656_v27 = vld [vmem:[#allocation7 + $0x61c] sm:$0xf0]  ;;  %v4266_v11 = vld [vmem:[#allocation7 + $0x7e0] sm:$0xf0] }
  0x5c   :  { %v4392_v28 = vld [vmem:[#allocation7 + $0x9c0] sm:$0xf]  ;;  %v4153_v39 = vor.u32 %v5656_v27, %v4152_v26  ;;  %1548 = vmatpush.bf16.msra.mxu2 %v4025_v36  ;;  %v135_v27 = vld [vmem:[#allocation5] sm:$0xff]  ;;  %v5714_v12 = vld [vmem:[#allocation7 + $0x9c4] sm:$0xf] }
  0x5d   :  { %v5716_v29 = vld [vmem:[#allocation7 + $0x9dc] sm:$0xf0]  ;;  %v5646_v20 = vld [vmem:[#allocation7 + $0x584] sm:$0xf] }
  0x5e   :  { %v4520_v30 = vld [vmem:[#allocation7 + $0xbc0] sm:$0xf]  ;;  %v4393_v40 = vor.u32 %v5716_v29, %v4392_v28  ;;  %1561 = vmatpush.bf16.msra.mxu3 %v4153_v39  ;;  %v3949_v39 = vor.u32 %v5602_v23, %v3946_v24  ;;  %v5678_v22 = vld [vmem:[#allocation7 + $0x784] sm:$0xf]  ;;  %v4269_v23 = vor.u32 %v5682_v9, %v4266_v11 }
  0x5f   :  { %v5748_v32 = vld [vmem:[#allocation7 + $0xbdc] sm:$0xf0]  ;;  %v4330_v9 = vld [vmem:[#allocation7 + $0x8e0] sm:$0xf0] }
  0x60   :  { %v4521_v41 = vor.u32 %v5748_v32, %v4520_v30  ;;  %v4376_v43 = vld [vmem:[#allocation7 + $0x980] sm:$0xf]  ;;  %1567 = vmatpush.bf16.msrb.mxu0 %v4393_v40  ;;  %1593 = vmatpush.bf16.msrb.mxu2 %v3885_v42  ;;  %v119_v32 = vld.sshfl [vmem:[#allocation1 + $0x10] sm:$0xff pattern:$0x73625140]  ;;  %v6265_v42 = vpack.c.bf16 %v120_v37, %v120_v37 }
  0x61   :  { %v5712_v44 = vld [vmem:[#allocation7 + $0x99c] sm:$0xf0]  ;;  %v6261_v35 = vpack.c.bf16 %v119_v32, %v119_v32  ;;  %v5566_v40 = vld [vmem:[#allocation7 + $0x84] sm:$0xf] }
  0x62   :  { %v4504_v45 = vld [vmem:[#allocation7 + $0xb80] sm:$0xf]  ;;  %v4377_v52 = vor.u32 %v5712_v44, %v4376_v43  ;;  %1580 = vmatpush.bf16.msrb.mxu1 %v4521_v41  ;;  %1606 = vmatpush.bf16.msrb.mxu3 %v4013_v46  ;;  %v3802_v41 = vld [vmem:[#allocation7 + $0xa0] sm:$0xf0]  ;;  %v6267_v43 = vpack.c.bf16 %v118_v38, %v118_v38 }
  0x63   :  { %v5744_v47 = vld [vmem:[#allocation7 + $0xb9c] sm:$0xf0]  ;;  %v5598_v44 = vld [vmem:[#allocation7 + $0x284] sm:$0xf]  ;;  %1549 = vmatmul.bf16.vlgmr.msra.gmra.mxu2 %v6261_v35  ;;  %1562 = vmatmul.bf16.vlgmr.msra.gmra.mxu3 %v6265_v42  ;;  %v3805_v48 = vor.u32 %v5566_v40, %v3802_v41 }
  0x64   :  { %v4505_v53 = vor.u32 %v5744_v47, %v4504_v45  ;;  %v4360_v55 = vld [vmem:[#allocation7 + $0x940] sm:$0xf]  ;;  %1568 = vmatpush.bf16.msrb.mxu0 %v4377_v52  ;;  %1594 = vmatpush.bf16.msrb.mxu2 %v3869_v54  ;;  %v3930_v45 = vld [vmem:[#allocation7 + $0x2a0] sm:$0xf0] }
  0x65   :  { %v5708_v56 = vld [vmem:[#allocation7 + $0x95c] sm:$0xf0]  ;;  %v3933_v52 = vor.u32 %v5598_v44, %v3930_v45  ;;  %v5562_v54 = vld [vmem:[#allocation7 + $0x44] sm:$0xf]  ;;  %1536 = vmatmul.bf16.vlgmr.msra.gmra.mxu1 %v6267_v43 }
  0x66   :  { %v4488_v57 = vld [vmem:[#allocation7 + $0xb40] sm:$0xf]  ;;  %v4361_v0 = vor.u32 %v5708_v56, %v4360_v55  ;;  %1581 = vmatpush.bf16.msrb.mxu1 %v4505_v53  ;;  %1607 = vmatpush.bf16.msrb.mxu3 %v3997_v58  ;;  %v3786_v55 = vld [vmem:[#allocation7 + $0x60] sm:$0xf0] }
  0x67   :  { %v5740_v59 = vld [vmem:[#allocation7 + $0xb5c] sm:$0xf0]  ;;  %v5594_v56 = vld [vmem:[#allocation7 + $0x244] sm:$0xf] }
  0x68   :  { %v4344_v1 = vld [vmem:[#allocation7 + $0x900] sm:$0xf]  ;;  %v4489_v3 = vor.u32 %v5740_v59, %v4488_v57  ;;  %1569 = vmatpush.bf16.msrb.mxu0 %v4361_v0  ;;  %1595 = vmatpush.bf16.msrb.mxu2 %v3853_v4  ;;  %v3914_v57 = vld [vmem:[#allocation7 + $0x260] sm:$0xf0]  ;;  %v3789_v0 = vor.u32 %v5562_v54, %v3786_v55 }
  0x69   :  { %v5704_v5 = vld [vmem:[#allocation7 + $0x91c] sm:$0xf0]  ;;  %v3917_v4 = vor.u32 %v5594_v56, %v3914_v57  ;;  %v5642_v41 = vld [vmem:[#allocation7 + $0x544] sm:$0xf] }
  0x6a   :  { %v4472_v6 = vld [vmem:[#allocation7 + $0xb00] sm:$0xf]  ;;  %v4345_v13 = vor.u32 %v5704_v5, %v4344_v1  ;;  %1582 = vmatpush.bf16.msrb.mxu1 %v4489_v3  ;;  %1608 = vmatpush.bf16.msrb.mxu3 %v3981_v7  ;;  %v5558_v1 = vld [vmem:[#allocation7 + $0x4] sm:$0xf]  ;;  %v111_v3 = vld [vmem:[#allocation2 + $0x8] sm:$0xf] }
  0x6b   :  { %v5736_v8 = vld [vmem:[#allocation7 + $0xb1c] sm:$0xf0]  ;;  %v5590_v5 = vld [vmem:[#allocation7 + $0x204] sm:$0xf]  ;;  %116 = vst [vmem:[#allocation1 + $0x20] ss:$4 sm:$0xff] %v111_v3 }
  0x6c   :  { %v4328_v14 = vld [vmem:[#allocation7 + $0x8c0] sm:$0xf]  ;;  %v4473_v16 = vor.u32 %v5736_v8, %v4472_v6  ;;  %1570 = vmatpush.bf16.msrb.mxu0 %v4345_v13  ;;  %1596 = vmatpush.bf16.msrb.mxu2 %v3837_v17  ;;  %v3898_v6 = vld [vmem:[#allocation7 + $0x220] sm:$0xf0] }
  0x6d   :  { %v5700_v15 = vld [vmem:[#allocation7 + $0x8dc] sm:$0xf0]  ;;  %v5650_v7 = vld [vmem:[#allocation7 + $0x5c4] sm:$0xf] }
  0x6e   :  { %v4456_v18 = vld [vmem:[#allocation7 + $0xac0] sm:$0xf]  ;;  %v4329_v28 = vor.u32 %v5700_v15, %v4328_v14  ;;  %1583 = vmatpush.bf16.msrb.mxu1 %v4473_v16  ;;  %1609 = vmatpush.bf16.msrb.mxu3 %v3965_v21  ;;  %v4138_v8 = vld [vmem:[#allocation7 + $0x5e0] sm:$0xf0]  ;;  %v3773_v15 = vor.u32 %v5558_v1, %v3770_v2 }
  0x6f   :  { %v5732_v19 = vld [vmem:[#allocation7 + $0xadc] sm:$0xf0]  ;;  %v4394_v13 = vld [vmem:[#allocation7 + $0x9e0] sm:$0xf0] }
  0x70   :  { %v4312_v25 = vld [vmem:[#allocation7 + $0x880] sm:$0xf]  ;;  %v4457_v29 = vor.u32 %v5732_v19, %v4456_v18  ;;  %1571 = vmatpush.bf16.msrb.mxu0 %v4329_v28  ;;  %1597 = vmatpush.bf16.msrb.mxu2 %v3821_v34  ;;  %v5746_v16 = vld [vmem:[#allocation7 + $0xbc4] sm:$0xf]  ;;  %v3901_v18 = vor.u32 %v5590_v5, %v3898_v6  ;;  %v4141_v19 = vor.u32 %v5650_v7, %v4138_v8 }
  0x71   :  { %v5696_v26 = vld [vmem:[#allocation7 + $0x89c] sm:$0xf0]  ;;  %v4522_v17 = vld [vmem:[#allocation7 + $0xbe0] sm:$0xf0]  ;;  %v4397_v24 = vor.u32 %v5714_v12, %v4394_v13 }
  0x72   :  { %v4440_v30 = vld [vmem:[#allocation7 + $0xa80] sm:$0xf]  ;;  %v4313_v46 = vor.u32 %v5696_v26, %v4312_v25  ;;  %1584 = vmatpush.bf16.msrb.mxu1 %v4457_v29  ;;  %1610 = vmatpush.bf16.msrb.mxu3 %v3949_v39  ;;  %v4122_v21 = vld [vmem:[#allocation7 + $0x5a0] sm:$0xf0]  ;;  %v4525_v28 = vor.u32 %v5746_v16, %v4522_v17 }
  0x73   :  { %v5728_v31 = vld [vmem:[#allocation7 + $0xa9c] sm:$0xf0]  ;;  %v4250_v25 = vld [vmem:[#allocation7 + $0x7a0] sm:$0xf0]  ;;  %v4125_v34 = vor.u32 %v5646_v20, %v4122_v21 }
  0x74   :  { %v117_v33 = vld.sshfl [vmem:[#allocation1] sm:$0xff pattern:$0x73625140]  ;;  %v4441_v47 = vor.u32 %v5728_v31, %v4440_v30  ;;  %1572 = vmatpush.bf16.msrb.mxu0 %v4313_v46  ;;  %1598 = vmatpush.bf16.msrb.mxu2 %v3805_v48  ;;  %v4253_v39 = vor.u32 %v5678_v22, %v4250_v25 }
  0x75   :  { %v6263_v36 = vpack.c.bf16 %v117_v33, %v117_v33  ;;  %139 = vst [vmem:[#allocation1] ss:$4 sm:$0xff] %v135_v27  ;;  %v4296_v49 = vld [vmem:[#allocation7 + $0x840] sm:$0xf]  ;;  %v5710_v26 = vld [vmem:[#allocation7 + $0x984] sm:$0xf] }
  0x76   :  { %v5692_v50 = vld [vmem:[#allocation7 + $0x85c] sm:$0xf0]  ;;  %1585 = vmatpush.bf16.msrb.mxu1 %v4441_v47  ;;  %1611 = vmatpush.bf16.msrb.mxu3 %v3933_v52  ;;  %v136_v27 = vld [vmem:[#allocation5 + $0x8] sm:$0xf]  ;;  %v4378_v29 = vld [vmem:[#allocation7 + $0x9a0] sm:$0xf0] }
  0x77   :  { %1523 = vmatmul.bf16.vlgmr.msra.gmra.mxu0 %v6263_v36  ;;  %v4424_v51 = vld [vmem:[#allocation7 + $0xa40] sm:$0xf]  ;;  %v4297_v59 = vor.u32 %v5692_v50, %v4296_v49  ;;  %v5742_v30 = vld [vmem:[#allocation7 + $0xb84] sm:$0xf]  ;;  %v4381_v40 = vor.u32 %v5710_v26, %v4378_v29 }
  0x78   :  { %v5724_v53 = vld [vmem:[#allocation7 + $0xa5c] sm:$0xf0]  ;;  %1599 = vmatpush.bf16.msrb.mxu2 %v3789_v0  ;;  %v4506_v31 = vld [vmem:[#allocation7 + $0xba0] sm:$0xf0] }
  0x79   :  { %v4280_v58 = vld [vmem:[#allocation7 + $0x800] sm:$0xf]  ;;  %v4425_v63 = vor.u32 %v5724_v53, %v4424_v51  ;;  %1573 = vmatpush.bf16.msrb.mxu0 %v4297_v59  ;;  %v122_v33 = vld.sshfl [vmem:[#allocation1 + $0x28] sm:$0xff pattern:$0x73625140]  ;;  %v4509_v46 = vor.u32 %v5742_v30, %v4506_v31 }
  0x7a   :  { %v5688_v60 = vld [vmem:[#allocation7 + $0x81c] sm:$0xf0]  ;;  %1612 = vmatpush.bf16.msrb.mxu3 %v3917_v4  ;;  %v6275_v38 = vpack.c.bf16 %v122_v33, %v122_v33  ;;  %v4106_v44 = vld [vmem:[#allocation7 + $0x560] sm:$0xf0] }
  0x7b   :  { %v4408_v61 = vld [vmem:[#allocation7 + $0xa00] sm:$0xf]  ;;  %v4281_v10 = vor.u32 %v5688_v60, %v4280_v58  ;;  %1586 = vmatpush.bf16.msrb.mxu1 %v4425_v63  ;;  %v5674_v45 = vld [vmem:[#allocation7 + $0x744] sm:$0xf]  ;;  %v4109_v52 = vor.u32 %v5642_v41, %v4106_v44 }
  0x7c   :  { %v5720_v62 = vld [vmem:[#allocation7 + $0xa1c] sm:$0xf0]  ;;  %1600 = vmatpush.bf16.msrb.mxu2 %v3773_v15  ;;  %v4234_v47 = vld [vmem:[#allocation7 + $0x760] sm:$0xf0] }
  0x7d   :  { %v4409_v14 = vor.u32 %v5720_v62, %v4408_v61  ;;  %1574 = vmatpush.bf16.msrb.mxu0 %v4281_v10  ;;  %v121_v32 = vld.sshfl [vmem:[#allocation1 + $0x20] sm:$0xff pattern:$0x73625140]  ;;  %v4237_v53 = vor.u32 %v5674_v45, %v4234_v47 }
  0x7e   :  { %1613 = vmatpush.bf16.msrb.mxu3 %v3901_v18  ;;  %v6273_v37 = vpack.c.bf16 %v121_v32, %v121_v32  ;;  %141 = vst [vmem:[#allocation1 + $0x20] ss:$4 sm:$0xff] %v136_v27  ;;  %v5706_v48 = vld [vmem:[#allocation7 + $0x944] sm:$0xf] }
  0x7f   :  { %1587 = vmatpush.bf16.msrb.mxu1 %v4409_v14  ;;  %v4362_v49 = vld [vmem:[#allocation7 + $0x960] sm:$0xf0]  ;;  %1601 = vmatmul.bf16.vlgmr.msrb.gmra.mxu2 %v6263_v36 }
  0x80   :  { %1645 = vmatpush.bf16.msra.mxu2 %v4397_v24  ;;  %v5738_v50 = vld [vmem:[#allocation7 + $0xb44] sm:$0xf]  ;;  %v4365_v54 = vor.u32 %v5706_v48, %v4362_v49 }
  0x81   :  { %1619 = vmatpush.bf16.msra.mxu0 %v4141_v19  ;;  %v4490_v51 = vld [vmem:[#allocation7 + $0xb60] sm:$0xf0]  ;;  %1614 = vmatmul.bf16.vlgmr.msrb.gmra.mxu3 %v6267_v43 }
  0x82   :  { %1658 = vmatpush.bf16.msra.mxu3 %v4525_v28  ;;  %1588 = vmatmul.bf16.vlgmr.msrb.gmra.mxu1 %v6275_v38  ;;  %v5638_v55 = vld [vmem:[#allocation7 + $0x504] sm:$0xf]  ;;  %v4493_v58 = vor.u32 %v5738_v50, %v4490_v51 }
  0x83   :  { %1632 = vmatpush.bf16.msra.mxu1 %v4269_v23  ;;  %v4090_v56 = vld [vmem:[#allocation7 + $0x520] sm:$0xf0] }
  0x84   :  { %1646 = vmatpush.bf16.msra.mxu2 %v4381_v40  ;;  %v5670_v57 = vld [vmem:[#allocation7 + $0x704] sm:$0xf]  ;;  %v4093_v0 = vor.u32 %v5638_v55, %v4090_v56  ;;  %v5589_v55 = vld [vmem:[#allocation7 + $0x1e4] sm:$0xf0] }
  0x85   :  { %1620 = vmatpush.bf16.msra.mxu0 %v4125_v34  ;;  %v4218_v59 = vld [vmem:[#allocation7 + $0x720] sm:$0xf0]  ;;  %v4016_v56 = vld [vmem:[#allocation7 + $0x3c8] sm:$0xf] }
  0x86   :  { %1659 = vmatpush.bf16.msra.mxu3 %v4509_v46  ;;  %v5702_v60 = vld [vmem:[#allocation7 + $0x904] sm:$0xf]  ;;  %v4221_v1 = vor.u32 %v5670_v57, %v4218_v59  ;;  %v4144_v59 = vld [vmem:[#allocation7 + $0x5c8] sm:$0xf] }
  0x87   :  { %1575 = vmatmul.bf16.vlgmr.msrb.gmra.mxu0 %v6273_v37  ;;  %1633 = vmatpush.bf16.msra.mxu1 %v4253_v39  ;;  %v4346_v61 = vld [vmem:[#allocation7 + $0x920] sm:$0xf0] }
  0x88   :  { %v5734_v62 = vld [vmem:[#allocation7 + $0xb04] sm:$0xf]  ;;  %1647 = vmatpush.bf16.msra.mxu2 %v4365_v54  ;;  %v4349_v2 = vor.u32 %v5702_v60, %v4346_v61  ;;  %v3888_v54 = vld [vmem:[#allocation7 + $0x1c8] sm:$0xf] }
  0x89   :  { %v4474_v63 = vld [vmem:[#allocation7 + $0xb20] sm:$0xf0]  ;;  %1621 = vmatpush.bf16.msra.mxu0 %v4109_v52  ;;  %v5653_v60 = vld [vmem:[#allocation7 + $0x5e4] sm:$0xf0] }
  0x8a   :  { %v5634_v3 = vld [vmem:[#allocation7 + $0x4c4] sm:$0xf]  ;;  %1660 = vmatpush.bf16.msra.mxu3 %v4493_v58  ;;  %v4477_v6 = vor.u32 %v5734_v62, %v4474_v63  ;;  %v5621_v58 = vld [vmem:[#allocation7 + $0x3e4] sm:$0xf0] }
  0x8b   :  { %1634 = vmatpush.bf16.msra.mxu1 %v4237_v53  ;;  %v4074_v4 = vld [vmem:[#allocation7 + $0x4e0] sm:$0xf0]  ;;  %v4272_v63 = vld [vmem:[#allocation7 + $0x7c8] sm:$0xf] }
  0x8c   :  { %v5666_v5 = vld [vmem:[#allocation7 + $0x6c4] sm:$0xf]  ;;  %v4077_v12 = vor.u32 %v5634_v3, %v4074_v4  ;;  %1648 = vmatpush.bf16.msra.mxu2 %v4349_v2  ;;  %v3889_v2 = vor.u32 %v5589_v55, %v3888_v54  ;;  %v4017_v3 = vor.u32 %v5621_v58, %v4016_v56  ;;  %v4145_v4 = vor.u32 %v5653_v60, %v4144_v59  ;;  %v4208_v54 = vld [vmem:[#allocation7 + $0x6c8] sm:$0xf] }
  0x8d   :  { %v4202_v7 = vld [vmem:[#allocation7 + $0x6e0] sm:$0xf0]  ;;  %1622 = vmatpush.bf16.msra.mxu0 %v4093_v0  ;;  %v5685_v0 = vld [vmem:[#allocation7 + $0x7e4] sm:$0xf0] }
  0x8e   :  { %v5698_v8 = vld [vmem:[#allocation7 + $0x8c4] sm:$0xf]  ;;  %v4205_v13 = vor.u32 %v5666_v5, %v4202_v7  ;;  %1661 = vmatpush.bf16.msra.mxu3 %v4477_v6  ;;  %v3872_v5 = vld [vmem:[#allocation7 + $0x188] sm:$0xf] }
  0x8f   :  { %v5730_v10 = vld [vmem:[#allocation7 + $0xac4] sm:$0xf]  ;;  %1635 = vmatpush.bf16.msra.mxu1 %v4221_v1  ;;  %v4333_v14 = vor.u32 %v5698_v8, %v4330_v9  ;;  %v5585_v6 = vld [vmem:[#allocation7 + $0x1a4] sm:$0xf0]  ;;  %v4273_v8 = vor.u32 %v5685_v0, %v4272_v63 }
  0x90   :  { %v4458_v11 = vld [vmem:[#allocation7 + $0xae0] sm:$0xf0]  ;;  %v4000_v7 = vld [vmem:[#allocation7 + $0x388] sm:$0xf] }
  0x91   :  { %v5630_v15 = vld [vmem:[#allocation7 + $0x484] sm:$0xf]  ;;  %v4461_v18 = vor.u32 %v5730_v10, %v4458_v11  ;;  %1623 = vmatpush.bf16.msra.mxu0 %v4077_v12  ;;  %1649 = vmatpush.bf16.msra.mxu2 %v4333_v14  ;;  %v5617_v9 = vld [vmem:[#allocation7 + $0x3a4] sm:$0xf0]  ;;  %v3873_v14 = vor.u32 %v5585_v6, %v3872_v5 }
  0x92   :  { %v4058_v16 = vld [vmem:[#allocation7 + $0x4a0] sm:$0xf0]  ;;  %v4128_v10 = vld [vmem:[#allocation7 + $0x588] sm:$0xf] }
  0x93   :  { %v5662_v17 = vld [vmem:[#allocation7 + $0x684] sm:$0xf]  ;;  %v4061_v24 = vor.u32 %v5630_v15, %v4058_v16  ;;  %1636 = vmatpush.bf16.msra.mxu1 %v4205_v13  ;;  %1662 = vmatpush.bf16.msra.mxu3 %v4461_v18  ;;  %v5649_v11 = vld [vmem:[#allocation7 + $0x5a4] sm:$0xf0]  ;;  %v4001_v15 = vor.u32 %v5617_v9, %v4000_v7 }
  0x94   :  { %v4186_v19 = vld [vmem:[#allocation7 + $0x6a0] sm:$0xf0]  ;;  %v4256_v12 = vld [vmem:[#allocation7 + $0x788] sm:$0xf]  ;;  %v4129_v16 = vor.u32 %v5649_v11, %v4128_v10 }
  0x95   :  { %v5694_v20 = vld [vmem:[#allocation7 + $0x884] sm:$0xf]  ;;  %v4189_v25 = vor.u32 %v5662_v17, %v4186_v19  ;;  %1624 = vmatpush.bf16.msra.mxu0 %v4061_v24  ;;  %v5681_v13 = vld [vmem:[#allocation7 + $0x7a4] sm:$0xf0] }
  0x96   :  { %v4314_v21 = vld [vmem:[#allocation7 + $0x8a0] sm:$0xf0]  ;;  %v3856_v17 = vld [vmem:[#allocation7 + $0x148] sm:$0xf] }
  0x97   :  { %v5726_v22 = vld [vmem:[#allocation7 + $0xa84] sm:$0xf]  ;;  %v4317_v26 = vor.u32 %v5694_v20, %v4314_v21  ;;  %1637 = vmatpush.bf16.msra.mxu1 %v4189_v25  ;;  %v5581_v18 = vld [vmem:[#allocation7 + $0x164] sm:$0xf0]  ;;  %v4257_v20 = vor.u32 %v5681_v13, %v4256_v12 }
  0x98   :  { %v4442_v23 = vld [vmem:[#allocation7 + $0xaa0] sm:$0xf0]  ;;  %v3984_v19 = vld [vmem:[#allocation7 + $0x348] sm:$0xf] }
  0x99   :  { %v5626_v27 = vld [vmem:[#allocation7 + $0x444] sm:$0xf]  ;;  %v4445_v30 = vor.u32 %v5726_v22, %v4442_v23  ;;  %1650 = vmatpush.bf16.msra.mxu2 %v4317_v26  ;;  %v5613_v21 = vld [vmem:[#allocation7 + $0x364] sm:$0xf0]  ;;  %v3857_v26 = vor.u32 %v5581_v18, %v3856_v17 }
  0x9a   :  { %v4042_v28 = vld [vmem:[#allocation7 + $0x460] sm:$0xf0]  ;;  %v4112_v22 = vld [vmem:[#allocation7 + $0x548] sm:$0xf] }
  0x9b   :  { %v5658_v29 = vld [vmem:[#allocation7 + $0x644] sm:$0xf]  ;;  %v4045_v40 = vor.u32 %v5626_v27, %v4042_v28  ;;  %1663 = vmatpush.bf16.msra.mxu3 %v4445_v30  ;;  %v5645_v23 = vld [vmem:[#allocation7 + $0x564] sm:$0xf0]  ;;  %v3985_v27 = vor.u32 %v5613_v21, %v3984_v19 }
  0x9c   :  { %v4170_v31 = vld [vmem:[#allocation7 + $0x660] sm:$0xf0]  ;;  %v4240_v24 = vld [vmem:[#allocation7 + $0x748] sm:$0xf]  ;;  %v4113_v28 = vor.u32 %v5645_v23, %v4112_v22 }
  0x9d   :  { %v5690_v32 = vld [vmem:[#allocation7 + $0x844] sm:$0xf]  ;;  %v4173_v45 = vor.u32 %v5658_v29, %v4170_v31  ;;  %1625 = vmatpush.bf16.msra.mxu0 %v4045_v40  ;;  %v5677_v25 = vld [vmem:[#allocation7 + $0x764] sm:$0xf0] }
  0x9e   :  { %v4298_v33 = vld [vmem:[#allocation7 + $0x860] sm:$0xf0]  ;;  %v3840_v29 = vld [vmem:[#allocation7 + $0x108] sm:$0xf] }
  0x9f   :  { %v5722_v34 = vld [vmem:[#allocation7 + $0xa44] sm:$0xf]  ;;  %v4301_v46 = vor.u32 %v5690_v32, %v4298_v33  ;;  %1638 = vmatpush.bf16.msra.mxu1 %v4173_v45  ;;  %v5577_v30 = vld [vmem:[#allocation7 + $0x124] sm:$0xf0]  ;;  %v4241_v32 = vor.u32 %v5677_v25, %v4240_v24 }
  0xa0   :  { %v4426_v39 = vld [vmem:[#allocation7 + $0xa60] sm:$0xf0]  ;;  %v3968_v31 = vld [vmem:[#allocation7 + $0x308] sm:$0xf] }
  0xa1   :  { %v5622_v41 = vld [vmem:[#allocation7 + $0x404] sm:$0xf]  ;;  %v4429_v50 = vor.u32 %v5722_v34, %v4426_v39  ;;  %1651 = vmatpush.bf16.msra.mxu2 %v4301_v46  ;;  %v5609_v33 = vld [vmem:[#allocation7 + $0x324] sm:$0xf0] }
  0xa2   :  { %v4026_v44 = vld [vmem:[#allocation7 + $0x420] sm:$0xf0]  ;;  %v4096_v34 = vld [vmem:[#allocation7 + $0x508] sm:$0xf]  ;;  %v3969_v45 = vor.u32 %v5609_v33, %v3968_v31  ;;  %v5587_v33 = vld [vmem:[#allocation7 + $0x1cc] sm:$0xf] }
  0xa3   :  { %v5654_v47 = vld [vmem:[#allocation7 + $0x604] sm:$0xf]  ;;  %v4029_v57 = vor.u32 %v5622_v41, %v4026_v44  ;;  %1664 = vmatpush.bf16.msra.mxu3 %v4429_v50  ;;  %v5641_v39 = vld [vmem:[#allocation7 + $0x524] sm:$0xf0]  ;;  %v3841_v44 = vor.u32 %v5577_v30, %v3840_v29 }
  0xa4   :  { %v4154_v48 = vld [vmem:[#allocation7 + $0x620] sm:$0xf0]  ;;  %v4224_v40 = vld [vmem:[#allocation7 + $0x708] sm:$0xf]  ;;  %v4097_v46 = vor.u32 %v5641_v39, %v4096_v34  ;;  %v3890_v34 = vld [vmem:[#allocation7 + $0x1e8] sm:$0xf0] }
  0xa5   :  { %v5686_v49 = vld [vmem:[#allocation7 + $0x804] sm:$0xf]  ;;  %v4157_v61 = vor.u32 %v5654_v47, %v4154_v48  ;;  %1626 = vmatpush.bf16.msra.mxu0 %v4029_v57  ;;  %v5673_v41 = vld [vmem:[#allocation7 + $0x724] sm:$0xf0] }
  0xa6   :  { %v4282_v51 = vld [vmem:[#allocation7 + $0x820] sm:$0xf0]  ;;  %v3824_v47 = vld [vmem:[#allocation7 + $0xc8] sm:$0xf]  ;;  %v4225_v50 = vor.u32 %v5673_v41, %v4224_v40  ;;  %v5619_v41 = vld [vmem:[#allocation7 + $0x3cc] sm:$0xf] }
  0xa7   :  { %v5718_v52 = vld [vmem:[#allocation7 + $0xa04] sm:$0xf]  ;;  %v4285_v62 = vor.u32 %v5686_v49, %v4282_v51  ;;  %1639 = vmatpush.bf16.msra.mxu1 %v4157_v61  ;;  %v5573_v48 = vld [vmem:[#allocation7 + $0xe4] sm:$0xf0] }
  0xa8   :  { %v4410_v53 = vld [vmem:[#allocation7 + $0xa20] sm:$0xf0]  ;;  %1627 = vmatmul.bf16.vlgmr.msra.gmra.mxu0 %v6261_v35  ;;  %v3952_v49 = vld [vmem:[#allocation7 + $0x2c8] sm:$0xf]  ;;  %v3825_v56 = vor.u32 %v5573_v48, %v3824_v47  ;;  %v3893_v48 = vor.u32 %v5587_v33, %v3890_v34 }
  0xa9   :  { %v4413_v1 = vor.u32 %v5718_v52, %v4410_v53  ;;  %1652 = vmatpush.bf16.msra.mxu2 %v4285_v62  ;;  %1671 = vmatpush.bf16.msrb.mxu0 %v3889_v2  ;;  %v5605_v51 = vld [vmem:[#allocation7 + $0x2e4] sm:$0xf0] }
  0xaa   :  { %1640 = vmatmul.bf16.vlgmr.msra.gmra.mxu1 %v6265_v42  ;;  %v4080_v52 = vld [vmem:[#allocation7 + $0x4c8] sm:$0xf]  ;;  %v3953_v57 = vor.u32 %v5605_v51, %v3952_v49 }
  0xab   :  { %1665 = vmatpush.bf16.msra.mxu3 %v4413_v1  ;;  %1684 = vmatpush.bf16.msrb.mxu1 %v4017_v3  ;;  %v5637_v53 = vld [vmem:[#allocation7 + $0x4e4] sm:$0xf0] }
  0xac   :  { %1653 = vmatmul.bf16.vlgmr.msra.gmra.mxu2 %v6273_v37  ;;  %v5669_v55 = vld [vmem:[#allocation7 + $0x6e4] sm:$0xf0]  ;;  %v4081_v58 = vor.u32 %v5637_v53, %v4080_v52 }
  0xad   :  { %1697 = vmatpush.bf16.msrb.mxu2 %v4145_v4  ;;  %1672 = vmatpush.bf16.msrb.mxu0 %v3873_v14  ;;  %v3808_v59 = vld [vmem:[#allocation7 + $0x88] sm:$0xf]  ;;  %v4209_v62 = vor.u32 %v5669_v55, %v4208_v54  ;;  %v5583_v54 = vld [vmem:[#allocation7 + $0x18c] sm:$0xf] }
  0xae   :  { %1666 = vmatmul.bf16.vlgmr.msra.gmra.mxu3 %v6275_v38  ;;  %v5569_v60 = vld [vmem:[#allocation7 + $0xa4] sm:$0xf0]  ;;  %v3874_v55 = vld [vmem:[#allocation7 + $0x1a8] sm:$0xf0] }
  0xaf   :  { %1710 = vmatpush.bf16.msrb.mxu3 %v4273_v8  ;;  %1685 = vmatpush.bf16.msrb.mxu1 %v4001_v15  ;;  %v3936_v61 = vld [vmem:[#allocation7 + $0x288] sm:$0xf]  ;;  %v3809_v4 = vor.u32 %v5569_v60, %v3808_v59  ;;  %v3877_v60 = vor.u32 %v5583_v54, %v3874_v55 }
  0xb0   :  { %v5601_v63 = vld [vmem:[#allocation7 + $0x2a4] sm:$0xf0] }
  0xb1   :  { %1698 = vmatpush.bf16.msrb.mxu2 %v4129_v16  ;;  %1673 = vmatpush.bf16.msrb.mxu0 %v3857_v26  ;;  %v4064_v0 = vld [vmem:[#allocation7 + $0x488] sm:$0xf]  ;;  %v3937_v5 = vor.u32 %v5601_v63, %v3936_v61 }
  0xb2   :  { %v5633_v1 = vld [vmem:[#allocation7 + $0x4a4] sm:$0xf0] }
  0xb3   :  { %1711 = vmatpush.bf16.msrb.mxu3 %v4257_v20  ;;  %1686 = vmatpush.bf16.msrb.mxu1 %v3985_v27  ;;  %v4192_v2 = vld [vmem:[#allocation7 + $0x688] sm:$0xf]  ;;  %v4065_v6 = vor.u32 %v5633_v1, %v4064_v0 }
  0xb4   :  { %v5665_v3 = vld [vmem:[#allocation7 + $0x6a4] sm:$0xf0] }
  0xb5   :  { %1699 = vmatpush.bf16.msrb.mxu2 %v4113_v28  ;;  %1674 = vmatpush.bf16.msrb.mxu0 %v3841_v44  ;;  %v3792_v7 = vld [vmem:[#allocation7 + $0x48] sm:$0xf]  ;;  %v4193_v10 = vor.u32 %v5665_v3, %v4192_v2  ;;  %v4018_v44 = vld [vmem:[#allocation7 + $0x3e8] sm:$0xf0] }
  0xb6   :  { %v5565_v8 = vld [vmem:[#allocation7 + $0x64] sm:$0xf0]  ;;  %v4021_v52 = vor.u32 %v5619_v41, %v4018_v44  ;;  %v5579_v2 = vld [vmem:[#allocation7 + $0x14c] sm:$0xf] }
  0xb7   :  { %1712 = vmatpush.bf16.msrb.mxu3 %v4241_v32  ;;  %1687 = vmatpush.bf16.msrb.mxu1 %v3969_v45  ;;  %v3920_v9 = vld [vmem:[#allocation7 + $0x248] sm:$0xf]  ;;  %v3793_v16 = vor.u32 %v5565_v8, %v3792_v7  ;;  %v3858_v3 = vld [vmem:[#allocation7 + $0x168] sm:$0xf0] }
  0xb8   :  { %v5597_v11 = vld [vmem:[#allocation7 + $0x264] sm:$0xf0]  ;;  %v3861_v8 = vor.u32 %v5579_v2, %v3858_v3  ;;  %v5567_v44 = vld [vmem:[#allocation7 + $0x8c] sm:$0xf] }
  0xb9   :  { %1700 = vmatpush.bf16.msrb.mxu2 %v4097_v46  ;;  %1675 = vmatpush.bf16.msrb.mxu0 %v3825_v56  ;;  %v4048_v12 = vld [vmem:[#allocation7 + $0x448] sm:$0xf]  ;;  %v3921_v19 = vor.u32 %v5597_v11, %v3920_v9  ;;  %v5615_v56 = vld [vmem:[#allocation7 + $0x38c] sm:$0xf] }
  0xba   :  { %v5629_v13 = vld [vmem:[#allocation7 + $0x464] sm:$0xf0]  ;;  %v5559_v3 = vld [vmem:[#allocation7 + $0xc] sm:$0xf] }
  0xbb   :  { %1713 = vmatpush.bf16.msrb.mxu3 %v4225_v50  ;;  %1688 = vmatpush.bf16.msrb.mxu1 %v3953_v57  ;;  %v4176_v14 = vld [vmem:[#allocation7 + $0x648] sm:$0xf]  ;;  %v4049_v20 = vor.u32 %v5629_v13, %v4048_v12  ;;  %v4002_v57 = vld [vmem:[#allocation7 + $0x3a8] sm:$0xf0] }
  0xbc   :  { %v5661_v15 = vld [vmem:[#allocation7 + $0x664] sm:$0xf0]  ;;  %v4005_v0 = vor.u32 %v5615_v56, %v4002_v57  ;;  %v5563_v56 = vld [vmem:[#allocation7 + $0x4c] sm:$0xf] }
  0xbd   :  { %1701 = vmatpush.bf16.msrb.mxu2 %v4081_v58  ;;  %1676 = vmatpush.bf16.msrb.mxu0 %v3809_v4  ;;  %v3776_v17 = vld [vmem:[#allocation7 + $0x8] sm:$0xf]  ;;  %v4177_v24 = vor.u32 %v5661_v15, %v4176_v14  ;;  %v5611_v4 = vld [vmem:[#allocation7 + $0x34c] sm:$0xf] }
  0xbe   :  { %v5561_v18 = vld [vmem:[#allocation7 + $0x24] sm:$0xf0]  ;;  %v5575_v14 = vld [vmem:[#allocation7 + $0x10c] sm:$0xf] }
  0xbf   :  { %1714 = vmatpush.bf16.msrb.mxu3 %v4209_v62  ;;  %1689 = vmatpush.bf16.msrb.mxu1 %v3937_v5  ;;  %v3904_v21 = vld [vmem:[#allocation7 + $0x208] sm:$0xf]  ;;  %v3777_v31 = vor.u32 %v5561_v18, %v3776_v17  ;;  %v3986_v5 = vld [vmem:[#allocation7 + $0x368] sm:$0xf0] }
  0xc0   :  { %v5593_v22 = vld [vmem:[#allocation7 + $0x224] sm:$0xf0]  ;;  %v3989_v12 = vor.u32 %v5611_v4, %v3986_v5  ;;  %v3842_v15 = vld [vmem:[#allocation7 + $0x128] sm:$0xf0] }
  0xc1   :  { %1702 = vmatpush.bf16.msrb.mxu2 %v4065_v6  ;;  %v4032_v23 = vld [vmem:[#allocation7 + $0x408] sm:$0xf]  ;;  %1677 = vmatpush.bf16.msrb.mxu0 %v3793_v16  ;;  %v3905_v39 = vor.u32 %v5593_v22, %v3904_v21  ;;  %v5607_v16 = vld [vmem:[#allocation7 + $0x30c] sm:$0xf] }
  0xc2   :  { %v5625_v25 = vld [vmem:[#allocation7 + $0x424] sm:$0xf0]  ;;  %v3970_v17 = vld [vmem:[#allocation7 + $0x328] sm:$0xf0] }
  0xc3   :  { %1715 = vmatpush.bf16.msrb.mxu3 %v4193_v10  ;;  %v4160_v26 = vld [vmem:[#allocation7 + $0x608] sm:$0xf]  ;;  %1690 = vmatpush.bf16.msrb.mxu1 %v3921_v19  ;;  %v4033_v40 = vor.u32 %v5625_v25, %v4032_v23  ;;  %v3794_v57 = vld [vmem:[#allocation7 + $0x68] sm:$0xf0] }
  0xc4   :  { %v5657_v27 = vld [vmem:[#allocation7 + $0x624] sm:$0xf0]  ;;  %v3778_v5 = vld [vmem:[#allocation7 + $0x28] sm:$0xf0] }
  0xc5   :  { %v4400_v28 = vld [vmem:[#allocation7 + $0x9c8] sm:$0xf]  ;;  %1703 = vmatpush.bf16.msrb.mxu2 %v4049_v20  ;;  %v4161_v45 = vor.u32 %v5657_v27, %v4160_v26  ;;  %1678 = vmatpush.bf16.msrb.mxu0 %v3777_v31  ;;  %v3845_v20 = vor.u32 %v5575_v14, %v3842_v15  ;;  %v5571_v26 = vld [vmem:[#allocation7 + $0xcc] sm:$0xf] }
  0xc6   :  { %v5717_v29 = vld [vmem:[#allocation7 + $0x9e4] sm:$0xf0]  ;;  %v3826_v27 = vld [vmem:[#allocation7 + $0xe8] sm:$0xf0] }
  0xc7   :  { %v4528_v30 = vld [vmem:[#allocation7 + $0xbc8] sm:$0xf]  ;;  %1716 = vmatpush.bf16.msrb.mxu3 %v4177_v24  ;;  %v4401_v46 = vor.u32 %v5717_v29, %v4400_v28  ;;  %1691 = vmatpush.bf16.msrb.mxu1 %v3905_v39  ;;  %v3973_v24 = vor.u32 %v5607_v16, %v3970_v17  ;;  %v5603_v28 = vld [vmem:[#allocation7 + $0x2cc] sm:$0xf]  ;;  %v3781_v16 = vor.u32 %v5559_v3, %v3778_v5 }
  0xc8   :  { %v5749_v32 = vld [vmem:[#allocation7 + $0xbe4] sm:$0xf0]  ;;  %1679 = vmatmul.bf16.vlgmr.msrb.gmra.mxu0 %v6263_v36  ;;  %v3954_v29 = vld [vmem:[#allocation7 + $0x2e8] sm:$0xf0] }
  0xc9   :  { %v4529_v47 = vor.u32 %v5749_v32, %v4528_v30  ;;  %v4384_v49 = vld [vmem:[#allocation7 + $0x988] sm:$0xf]  ;;  %1704 = vmatpush.bf16.msrb.mxu2 %v4033_v40  ;;  %1723 = vmatpush.bf16.msra.mxu0 %v4401_v46  ;;  %v3829_v32 = vor.u32 %v5571_v26, %v3826_v27  ;;  %v3957_v40 = vor.u32 %v5603_v28, %v3954_v29  ;;  %v5599_v46 = vld [vmem:[#allocation7 + $0x28c] sm:$0xf] }
  0xca   :  { %v5713_v50 = vld [vmem:[#allocation7 + $0x9a4] sm:$0xf0]  ;;  %1692 = vmatmul.bf16.vlgmr.msrb.gmra.mxu1 %v6267_v43  ;;  %v4402_v14 = vld [vmem:[#allocation7 + $0x9e8] sm:$0xf0] }
  0xcb   :  { %v4512_v51 = vld [vmem:[#allocation7 + $0xb88] sm:$0xf]  ;;  %1717 = vmatpush.bf16.msrb.mxu3 %v4161_v45  ;;  %v4385_v58 = vor.u32 %v5713_v50, %v4384_v49  ;;  %1736 = vmatpush.bf16.msra.mxu1 %v4529_v47  ;;  %v3810_v45 = vld [vmem:[#allocation7 + $0xa8] sm:$0xf0] }
  0xcc   :  { %v5745_v53 = vld [vmem:[#allocation7 + $0xba4] sm:$0xf0]  ;;  %1705 = vmatmul.bf16.vlgmr.msrb.gmra.mxu2 %v6261_v35  ;;  %v3938_v47 = vld [vmem:[#allocation7 + $0x2a8] sm:$0xf0]  ;;  %v3813_v50 = vor.u32 %v5567_v44, %v3810_v45 }
  0xcd   :  { %1749 = vmatpush.bf16.msra.mxu2 %v3893_v48  ;;  %v4513_v59 = vor.u32 %v5745_v53, %v4512_v51  ;;  %v4368_v61 = vld [vmem:[#allocation7 + $0x948] sm:$0xf]  ;;  %1724 = vmatpush.bf16.msra.mxu0 %v4385_v58  ;;  %v3941_v54 = vor.u32 %v5599_v46, %v3938_v47  ;;  %v5595_v58 = vld [vmem:[#allocation7 + $0x24c] sm:$0xf] }
  0xce   :  { %v5709_v62 = vld [vmem:[#allocation7 + $0x964] sm:$0xf0]  ;;  %1718 = vmatmul.bf16.vlgmr.msrb.gmra.mxu3 %v6265_v42  ;;  %v5747_v17 = vld [vmem:[#allocation7 + $0xbcc] sm:$0xf] }
  0xcf   :  { %v4496_v63 = vld [vmem:[#allocation7 + $0xb48] sm:$0xf]  ;;  %1762 = vmatpush.bf16.msra.mxu3 %v4021_v52  ;;  %v4369_v6 = vor.u32 %v5709_v62, %v4368_v61  ;;  %1737 = vmatpush.bf16.msra.mxu1 %v4513_v59  ;;  %v3922_v59 = vld [vmem:[#allocation7 + $0x268] sm:$0xf0] }
  0xd0   :  { %v5741_v1 = vld [vmem:[#allocation7 + $0xb64] sm:$0xf0]  ;;  %v3925_v4 = vor.u32 %v5595_v58, %v3922_v59  ;;  %v4258_v27 = vld [vmem:[#allocation7 + $0x7a8] sm:$0xf0] }
  0xd1   :  { %1750 = vmatpush.bf16.msra.mxu2 %v3877_v60  ;;  %v4497_v7 = vor.u32 %v5741_v1, %v4496_v63  ;;  %v4352_v9 = vld [vmem:[#allocation7 + $0x908] sm:$0xf]  ;;  %1725 = vmatpush.bf16.msra.mxu0 %v4369_v6  ;;  %v5591_v6 = vld [vmem:[#allocation7 + $0x20c] sm:$0xf] }
  0xd2   :  { %v5705_v10 = vld [vmem:[#allocation7 + $0x924] sm:$0xf0]  ;;  %v5711_v28 = vld [vmem:[#allocation7 + $0x98c] sm:$0xf] }
  0xd3   :  { %v4480_v11 = vld [vmem:[#allocation7 + $0xb08] sm:$0xf]  ;;  %1763 = vmatpush.bf16.msra.mxu3 %v4005_v0  ;;  %v4353_v18 = vor.u32 %v5705_v10, %v4352_v9  ;;  %1738 = vmatpush.bf16.msra.mxu1 %v4497_v7  ;;  %v3797_v0 = vor.u32 %v5563_v56, %v3794_v57  ;;  %v3906_v7 = vld [vmem:[#allocation7 + $0x228] sm:$0xf0] }
  0xd4   :  { %v5737_v13 = vld [vmem:[#allocation7 + $0xb24] sm:$0xf0]  ;;  %v4146_v9 = vld [vmem:[#allocation7 + $0x5e8] sm:$0xf0] }
  0xd5   :  { %1751 = vmatpush.bf16.msra.mxu2 %v3861_v8  ;;  %v4481_v19 = vor.u32 %v5737_v13, %v4480_v11  ;;  %v4336_v21 = vld [vmem:[#allocation7 + $0x8c8] sm:$0xf]  ;;  %1726 = vmatpush.bf16.msra.mxu0 %v4353_v18  ;;  %v5651_v8 = vld [vmem:[#allocation7 + $0x5cc] sm:$0xf] }
  0xd6   :  { %v5701_v22 = vld [vmem:[#allocation7 + $0x8e4] sm:$0xf0]  ;;  %v5683_v10 = vld [vmem:[#allocation7 + $0x7cc] sm:$0xf] }
  0xd7   :  { %v4464_v23 = vld [vmem:[#allocation7 + $0xac8] sm:$0xf]  ;;  %1764 = vmatpush.bf16.msra.mxu3 %v3989_v12  ;;  %v4337_v30 = vor.u32 %v5701_v22, %v4336_v21  ;;  %1739 = vmatpush.bf16.msra.mxu1 %v4481_v19  ;;  %v4274_v12 = vld [vmem:[#allocation7 + $0x7e8] sm:$0xf0]  ;;  %v3909_v19 = vor.u32 %v5591_v6, %v3906_v7 }
  0xd8   :  { %v5733_v25 = vld [vmem:[#allocation7 + $0xae4] sm:$0xf0]  ;;  %v5715_v13 = vld [vmem:[#allocation7 + $0x9cc] sm:$0xf]  ;;  %v4277_v21 = vor.u32 %v5683_v10, %v4274_v12 }
  0xd9   :  { %1752 = vmatpush.bf16.msra.mxu2 %v3845_v20  ;;  %v4465_v31 = vor.u32 %v5733_v25, %v4464_v23  ;;  %v4320_v33 = vld [vmem:[#allocation7 + $0x888] sm:$0xf]  ;;  %1727 = vmatpush.bf16.msra.mxu0 %v4337_v30  ;;  %v4530_v18 = vld [vmem:[#allocation7 + $0xbe8] sm:$0xf0]  ;;  %v4149_v20 = vor.u32 %v5651_v8, %v4146_v9  ;;  %v4405_v22 = vor.u32 %v5715_v13, %v4402_v14 }
  0xda   :  { %v5697_v34 = vld [vmem:[#allocation7 + $0x8a4] sm:$0xf0]  ;;  %v5647_v23 = vld [vmem:[#allocation7 + $0x58c] sm:$0xf]  ;;  %v4533_v26 = vor.u32 %v5747_v17, %v4530_v18  ;;  %v6293_v18 = vld [vmem:[#allocation8] sm:$0xf] }
  0xdb   :  { %v4448_v39 = vld [vmem:[#allocation7 + $0xa88] sm:$0xf]  ;;  %1765 = vmatpush.bf16.msra.mxu3 %v3973_v24  ;;  %v4321_v48 = vor.u32 %v5697_v34, %v4320_v33  ;;  %1740 = vmatpush.bf16.msra.mxu1 %v4465_v31  ;;  %v4130_v24 = vld [vmem:[#allocation7 + $0x5a8] sm:$0xf0] }
  0xdc   :  { %v5729_v41 = vld [vmem:[#allocation7 + $0xaa4] sm:$0xf0]  ;;  %v5679_v25 = vld [vmem:[#allocation7 + $0x78c] sm:$0xf] }
  0xdd   :  { %1753 = vmatpush.bf16.msra.mxu2 %v3829_v32  ;;  %v4449_v49 = vor.u32 %v5729_v41, %v4448_v39  ;;  %v4304_v51 = vld [vmem:[#allocation7 + $0x848] sm:$0xf]  ;;  %1728 = vmatpush.bf16.msra.mxu0 %v4321_v48  ;;  %v4386_v29 = vld [vmem:[#allocation7 + $0x9a8] sm:$0xf0]  ;;  %v4133_v32 = vor.u32 %v5647_v23, %v4130_v24  ;;  %v4261_v33 = vor.u32 %v5679_v25, %v4258_v27  ;;  %v547_v27 = vperm.slane %v6293_v18, 0 }
  0xde   :  { %v5693_v52 = vld [vmem:[#allocation7 + $0x864] sm:$0xf0]  ;;  %v5743_v30 = vld [vmem:[#allocation7 + $0xb8c] sm:$0xf]  ;;  %v4389_v34 = vor.u32 %v5711_v28, %v4386_v29 }
  0xdf   :  { %v4432_v53 = vld [vmem:[#allocation7 + $0xa48] sm:$0xf]  ;;  %1766 = vmatpush.bf16.msra.mxu3 %v3957_v40  ;;  %v4305_v60 = vor.u32 %v5693_v52, %v4304_v51  ;;  %1741 = vmatpush.bf16.msra.mxu1 %v4449_v49  ;;  %v4514_v31 = vld [vmem:[#allocation7 + $0xba8] sm:$0xf0] }
  0xe0   :  { %v5725_v55 = vld [vmem:[#allocation7 + $0xa64] sm:$0xf0]  ;;  %v5643_v39 = vld [vmem:[#allocation7 + $0x54c] sm:$0xf]  ;;  %v4517_v44 = vor.u32 %v5743_v30, %v4514_v31 }
  0xe1   :  { %v4288_v61 = vld [vmem:[#allocation7 + $0x808] sm:$0xf]  ;;  %1754 = vmatpush.bf16.msra.mxu2 %v3813_v50  ;;  %v4433_v63 = vor.u32 %v5725_v55, %v4432_v53  ;;  %1729 = vmatpush.bf16.msra.mxu0 %v4305_v60  ;;  %v4114_v40 = vld [vmem:[#allocation7 + $0x568] sm:$0xf0] }
  0xe2   :  { %v5689_v62 = vld [vmem:[#allocation7 + $0x824] sm:$0xf0]  ;;  %v5675_v41 = vld [vmem:[#allocation7 + $0x74c] sm:$0xf]  ;;  %v4117_v50 = vor.u32 %v5643_v39, %v4114_v40 }
  0xe3   :  { %v4416_v1 = vld [vmem:[#allocation7 + $0xa08] sm:$0xf]  ;;  %1767 = vmatpush.bf16.msra.mxu3 %v3941_v54  ;;  %v4289_v11 = vor.u32 %v5689_v62, %v4288_v61  ;;  %1742 = vmatpush.bf16.msra.mxu1 %v4433_v63  ;;  %v4242_v45 = vld [vmem:[#allocation7 + $0x768] sm:$0xf0] }
  0xe4   :  { %v5721_v2 = vld [vmem:[#allocation7 + $0xa24] sm:$0xf0]  ;;  %v5707_v46 = vld [vmem:[#allocation7 + $0x94c] sm:$0xf]  ;;  %v4245_v51 = vor.u32 %v5675_v41, %v4242_v45 }
  0xe5   :  { %1755 = vmatpush.bf16.msra.mxu2 %v3797_v0  ;;  %v4417_v15 = vor.u32 %v5721_v2, %v4416_v1  ;;  %1730 = vmatpush.bf16.msra.mxu0 %v4289_v11  ;;  %v4370_v47 = vld [vmem:[#allocation7 + $0x968] sm:$0xf0] }
  0xe6   :  { %v5739_v48 = vld [vmem:[#allocation7 + $0xb4c] sm:$0xf]  ;;  %v4373_v52 = vor.u32 %v5707_v46, %v4370_v47 }
  0xe7   :  { %1768 = vmatpush.bf16.msra.mxu3 %v3925_v4  ;;  %1743 = vmatpush.bf16.msra.mxu1 %v4417_v15  ;;  %v4498_v49 = vld [vmem:[#allocation7 + $0xb68] sm:$0xf0] }
  0xe8   :  { %1731 = vmatmul.bf16.vlgmr.msra.gmra.mxu0 %v6273_v37  ;;  %v5639_v53 = vld [vmem:[#allocation7 + $0x50c] sm:$0xf]  ;;  %v4501_v56 = vor.u32 %v5739_v48, %v4498_v49 }
  0xe9   :  { %1756 = vmatpush.bf16.msra.mxu2 %v3781_v16  ;;  %1775 = vmatpush.bf16.msrb.mxu0 %v4149_v20  ;;  %v4098_v54 = vld [vmem:[#allocation7 + $0x528] sm:$0xf0] }
  0xea   :  { %1744 = vmatmul.bf16.vlgmr.msra.gmra.mxu1 %v6275_v38  ;;  %v5671_v55 = vld [vmem:[#allocation7 + $0x70c] sm:$0xf] }
  0xeb   :  { %1769 = vmatpush.bf16.msra.mxu3 %v3909_v19  ;;  %1788 = vmatpush.bf16.msrb.mxu1 %v4277_v21  ;;  %v4226_v57 = vld [vmem:[#allocation7 + $0x728] sm:$0xf0] }
  0xec   :  { %1757 = vmatmul.bf16.vlgmr.msra.gmra.mxu2 %v6263_v36  ;;  %v5703_v58 = vld [vmem:[#allocation7 + $0x90c] sm:$0xf]  ;;  %v4101_v36 = vor.u32 %v5639_v53, %v4098_v54  ;;  %v4229_v62 = vor.u32 %v5671_v55, %v4226_v57  ;;  %v4648_v54 = vld [vmem:[#allocation7 + $0x1d0] sm:$0xf]  ;;  %v1537_v57 = vpop.f32.mrf.mxu1 }
  0xed   :  { %1801 = vmatpush.bf16.msrb.mxu2 %v4405_v22  ;;  %1776 = vmatpush.bf16.msrb.mxu0 %v4133_v32  ;;  %v4354_v59 = vld [vmem:[#allocation7 + $0x928] sm:$0xf0]  ;;  %v5780_v55 = vld [vmem:[#allocation7 + $0x1ec] sm:$0xf0] }
  0xee   :  { %1770 = vmatmul.bf16.vlgmr.msra.gmra.mxu3 %v6267_v43  ;;  %v5735_v60 = vld [vmem:[#allocation7 + $0xb0c] sm:$0xf]  ;;  %v4357_v43 = vor.u32 %v5703_v58, %v4354_v59  ;;  %v5812_v59 = vld [vmem:[#allocation7 + $0x3ec] sm:$0xf0] }
  0xef   :  { %1814 = vmatpush.bf16.msrb.mxu3 %v4533_v26  ;;  %1789 = vmatpush.bf16.msrb.mxu1 %v4261_v33  ;;  %v4482_v61 = vld [vmem:[#allocation7 + $0xb28] sm:$0xf0] }
  0xf0   :  { %v5635_v63 = vld [vmem:[#allocation7 + $0x4cc] sm:$0xf]  ;;  %v4485_v2 = vor.u32 %v5735_v60, %v4482_v61  ;;  %v4904_v60 = vld [vmem:[#allocation7 + $0x5d0] sm:$0xf] }
  0xf1   :  { %1802 = vmatpush.bf16.msrb.mxu2 %v4389_v34  ;;  %1777 = vmatpush.bf16.msrb.mxu0 %v4117_v50  ;;  %v4082_v0 = vld [vmem:[#allocation7 + $0x4e8] sm:$0xf0]  ;;  %v5844_v61 = vld [vmem:[#allocation7 + $0x5ec] sm:$0xf0] }
  0xf2   :  { %v5667_v1 = vld [vmem:[#allocation7 + $0x6cc] sm:$0xf]  ;;  %v4085_v8 = vor.u32 %v5635_v63, %v4082_v0  ;;  %v5032_v63 = vld [vmem:[#allocation7 + $0x7d0] sm:$0xf] }
  0xf3   :  { %1815 = vmatpush.bf16.msrb.mxu3 %v4517_v44  ;;  %1790 = vmatpush.bf16.msrb.mxu1 %v4245_v51  ;;  %v4210_v3 = vld [vmem:[#allocation7 + $0x6e8] sm:$0xf0]  ;;  %v5876_v0 = vld [vmem:[#allocation7 + $0x7ec] sm:$0xf0] }
  0xf4   :  { %v5699_v4 = vld [vmem:[#allocation7 + $0x8cc] sm:$0xf]  ;;  %v4213_v10 = vor.u32 %v5667_v1, %v4210_v3  ;;  %v1524_v41 = vpop.f32.mrf.mxu0  ;;  %v1550_v3 = vpop.f32.mrf.mxu2 }
  0xf5   :  { %1803 = vmatpush.bf16.msrb.mxu2 %v4373_v52  ;;  %v4338_v5 = vld [vmem:[#allocation7 + $0x8e8] sm:$0xf0]  ;;  %1778 = vmatpush.bf16.msrb.mxu0 %v4101_v36  ;;  %v1525_v49 = vadd.f32 %v1524_v41, %v547_v27  ;;  %v4600_v41 = vld [vmem:[#allocation7 + $0x110] sm:$0xf] }
  0xf6   :  { %v5731_v6 = vld [vmem:[#allocation7 + $0xacc] sm:$0xf]  ;;  %v4341_v11 = vor.u32 %v5699_v4, %v4338_v5  ;;  %v4905_v5 = vor.u32 %v5844_v61, %v4904_v60  ;;  %v4840_v60 = vld [vmem:[#allocation7 + $0x4d0] sm:$0xf] }
  0xf7   :  { %1816 = vmatpush.bf16.msrb.mxu3 %v4501_v56  ;;  %v4466_v7 = vld [vmem:[#allocation7 + $0xae8] sm:$0xf0]  ;;  %1791 = vmatpush.bf16.msrb.mxu1 %v4229_v62  ;;  %v4776_v56 = vld [vmem:[#allocation7 + $0x3d0] sm:$0xf]  ;;  %v1538_v36 = vadd.f32 %v1537_v57, %v1525_v49 }
  0xf8   :  { %v5631_v9 = vld [vmem:[#allocation7 + $0x48c] sm:$0xf]  ;;  %v4469_v15 = vor.u32 %v5731_v6, %v4466_v7  ;;  %v4777_v4 = vor.u32 %v5812_v59, %v4776_v56  ;;  %v4632_v6 = vld [vmem:[#allocation7 + $0x190] sm:$0xf] }
  0xf9   :  { %1804 = vmatpush.bf16.msrb.mxu2 %v4357_v43  ;;  %v4066_v12 = vld [vmem:[#allocation7 + $0x4a8] sm:$0xf0]  ;;  %1779 = vmatpush.bf16.msrb.mxu0 %v4085_v8  ;;  %v5776_v7 = vld [vmem:[#allocation7 + $0x1ac] sm:$0xf0] }
  0xfa   :  { %v5663_v13 = vld [vmem:[#allocation7 + $0x68c] sm:$0xf]  ;;  %v4069_v21 = vor.u32 %v5631_v9, %v4066_v12  ;;  %v4760_v8 = vld [vmem:[#allocation7 + $0x390] sm:$0xf]  ;;  %v1551_v9 = vadd.f32 %v1550_v3, %v1538_v36 }
  0xfb   :  { %v4194_v14 = vld [vmem:[#allocation7 + $0x6a8] sm:$0xf0]  ;;  %1817 = vmatpush.bf16.msrb.mxu3 %v4485_v2  ;;  %1792 = vmatpush.bf16.msrb.mxu1 %v4213_v10  ;;  %v4649_v2 = vor.u32 %v5780_v55, %v4648_v54  ;;  %v1563_v10 = vpop.f32.mrf.mxu3  ;;  %v5808_v12 = vld [vmem:[#allocation7 + $0x3ac] sm:$0xf0] }
  0xfc   :  { %v5695_v16 = vld [vmem:[#allocation7 + $0x88c] sm:$0xf]  ;;  %v4197_v23 = vor.u32 %v5663_v13, %v4194_v14  ;;  %v4888_v13 = vld [vmem:[#allocation7 + $0x590] sm:$0xf] }
  0xfd   :  { %v4322_v17 = vld [vmem:[#allocation7 + $0x8a8] sm:$0xf0]  ;;  %1805 = vmatpush.bf16.msrb.mxu2 %v4341_v11  ;;  %1780 = vmatpush.bf16.msrb.mxu0 %v4069_v21  ;;  %v5033_v11 = vor.u32 %v5876_v0, %v5032_v63  ;;  %v5840_v14 = vld [vmem:[#allocation7 + $0x5ac] sm:$0xf0]  ;;  %v4761_v21 = vor.u32 %v5808_v12, %v4760_v8  ;;  %v548_v63 = vperm.slane %v6293_v18, 1 }
  0xfe   :  { %v5727_v19 = vld [vmem:[#allocation7 + $0xa8c] sm:$0xf]  ;;  %v4325_v24 = vor.u32 %v5695_v16, %v4322_v17  ;;  %v5016_v16 = vld [vmem:[#allocation7 + $0x790] sm:$0xf] }
  0xff   :  { %v4450_v20 = vld [vmem:[#allocation7 + $0xaa8] sm:$0xf0]  ;;  %1818 = vmatpush.bf16.msrb.mxu3 %v4469_v15  ;;  %1793 = vmatpush.bf16.msrb.mxu1 %v4197_v23  ;;  %v1526_v15 = vpop.f32.mrf.mxu0  ;;  %v5872_v17 = vld [vmem:[#allocation7 + $0x7ac] sm:$0xf0] }
 0x100   :  { %v5627_v22 = vld [vmem:[#allocation7 + $0x44c] sm:$0xf]  ;;  %v4453_v28 = vor.u32 %v5727_v19, %v4450_v20  ;;  %v1564_v19 = vadd.f32 %v1563_v10, %v1551_v9  ;;  %v4633_v20 = vor.u32 %v5776_v7, %v4632_v6  ;;  %v4616_v23 = vld [vmem:[#allocation7 + $0x150] sm:$0xf]  ;;  %v5017_v27 = vor.u32 %v5872_v17, %v5016_v16 }
 0x101   :  { %v4050_v25 = vld [vmem:[#allocation7 + $0x468] sm:$0xf0]  ;;  %1806 = vmatpush.bf16.msrb.mxu2 %v4325_v24  ;;  %v5772_v24 = vld [vmem:[#allocation7 + $0x16c] sm:$0xf0] }
 0x102   :  { %v5659_v26 = vld [vmem:[#allocation7 + $0x64c] sm:$0xf]  ;;  %v4053_v34 = vor.u32 %v5627_v22, %v4050_v25  ;;  %v4889_v22 = vor.u32 %v5840_v14, %v4888_v13  ;;  %v4744_v25 = vld [vmem:[#allocation7 + $0x350] sm:$0xf] }
 0x103   :  { %v4178_v29 = vld [vmem:[#allocation7 + $0x668] sm:$0xf0]  ;;  %1819 = vmatpush.bf16.msrb.mxu3 %v4453_v28  ;;  %v5804_v28 = vld [vmem:[#allocation7 + $0x36c] sm:$0xf0] }
 0x104   :  { %v5691_v30 = vld [vmem:[#allocation7 + $0x84c] sm:$0xf]  ;;  %v4181_v44 = vor.u32 %v5659_v26, %v4178_v29  ;;  %1781 = vmatpush.bf16.msrb.mxu0 %v4053_v34  ;;  %v1539_v26 = vpop.f32.mrf.mxu1  ;;  %v4872_v29 = vld [vmem:[#allocation7 + $0x550] sm:$0xf]  ;;  %v1552_v34 = vpop.f32.mrf.mxu2 }
 0x105   :  { %v4306_v31 = vld [vmem:[#allocation7 + $0x868] sm:$0xf0]  ;;  %v4984_v49 = vld [vmem:[#allocation7 + $0x710] sm:$0xf] }
 0x106   :  { %v5723_v32 = vld [vmem:[#allocation7 + $0xa4c] sm:$0xf]  ;;  %v4309_v45 = vor.u32 %v5691_v30, %v4306_v31  ;;  %1794 = vmatpush.bf16.msrb.mxu1 %v4181_v44  ;;  %v5836_v30 = vld [vmem:[#allocation7 + $0x56c] sm:$0xf0] }
 0x107   :  { %v4434_v33 = vld [vmem:[#allocation7 + $0xa68] sm:$0xf0]  ;;  %v5000_v31 = vld [vmem:[#allocation7 + $0x750] sm:$0xf] }
 0x108   :  { %v5623_v39 = vld [vmem:[#allocation7 + $0x40c] sm:$0xf]  ;;  %v4437_v50 = vor.u32 %v5723_v32, %v4434_v33  ;;  %1807 = vmatpush.bf16.msrb.mxu2 %v4309_v45  ;;  %v5868_v32 = vld [vmem:[#allocation7 + $0x76c] sm:$0xf0]  ;;  %v4617_v33 = vor.u32 %v5772_v24, %v4616_v23  ;;  %v1565_v45 = vpop.f32.mrf.mxu3 }
 0x109   :  { %v4034_v40 = vld [vmem:[#allocation7 + $0x428] sm:$0xf0]  ;;  %v4728_v44 = vld [vmem:[#allocation7 + $0x310] sm:$0xf] }
 0x10a   :  { %v5655_v46 = vld [vmem:[#allocation7 + $0x60c] sm:$0xf]  ;;  %v4037_v58 = vor.u32 %v5623_v39, %v4034_v40  ;;  %1820 = vmatpush.bf16.msrb.mxu3 %v4437_v50  ;;  %v4745_v39 = vor.u32 %v5804_v28, %v4744_v25  ;;  %v4873_v40 = vor.u32 %v5836_v30, %v4872_v29  ;;  %v1576_v50 = vpop.f32.mrf.mxu0  ;;  %v4584_v54 = vld [vmem:[#allocation7 + $0xd0] sm:$0xf] }
 0x10b   :  { %v4162_v47 = vld [vmem:[#allocation7 + $0x628] sm:$0xf0]  ;;  %v5764_v55 = vld [vmem:[#allocation7 + $0xec] sm:$0xf0] }
 0x10c   :  { %v5687_v48 = vld [vmem:[#allocation7 + $0x80c] sm:$0xf]  ;;  %v4165_v62 = vor.u32 %v5655_v46, %v4162_v47  ;;  %1782 = vmatpush.bf16.msrb.mxu0 %v4037_v58  ;;  %v5001_v46 = vor.u32 %v5868_v32, %v5000_v31  ;;  %v5800_v47 = vld [vmem:[#allocation7 + $0x32c] sm:$0xf0]  ;;  %v1589_v57 = vpop.f32.mrf.mxu1  ;;  %v4585_v0 = vor.u32 %v5764_v55, %v4584_v54  ;;  %v1602_v10 = vpop.f32.mrf.mxu2  ;;  %v5810_v54 = vld [vmem:[#allocation7 + $0x3d4] sm:$0xf] }
 0x10d   :  { %v4290_v51 = vld [vmem:[#allocation7 + $0x828] sm:$0xf0]  ;;  %v4712_v56 = vld [vmem:[#allocation7 + $0x2d0] sm:$0xf]  ;;  %v1603_v14 = vadd.f32 %v1602_v10, %v548_v63  ;;  %v4778_v55 = vld [vmem:[#allocation7 + $0x3f0] sm:$0xf0] }
 0x10e   :  { %v5719_v52 = vld [vmem:[#allocation7 + $0xa0c] sm:$0xf]  ;;  %v4293_v43 = vor.u32 %v5687_v48, %v4290_v51  ;;  %1795 = vmatpush.bf16.msrb.mxu1 %v4165_v62  ;;  %v4856_v48 = vld [vmem:[#allocation7 + $0x510] sm:$0xf]  ;;  %v4762_v10 = vld [vmem:[#allocation7 + $0x3b0] sm:$0xf0] }
 0x10f   :  { %v4418_v53 = vld [vmem:[#allocation7 + $0xa28] sm:$0xf0]  ;;  %1783 = vmatmul.bf16.vlgmr.msrb.gmra.mxu0 %v6261_v35  ;;  %v5832_v35 = vld [vmem:[#allocation7 + $0x52c] sm:$0xf0] }
 0x110   :  { %v4421_v1 = vor.u32 %v5719_v52, %v4418_v53  ;;  %1808 = vmatpush.bf16.msrb.mxu2 %v4293_v43  ;;  %2800 = vmatpush.bf16.msra.mxu0 %v4649_v2  ;;  %v4729_v52 = vor.u32 %v5800_v47, %v4728_v44  ;;  %v4857_v53 = vor.u32 %v5832_v35, %v4856_v48  ;;  %v5796_v59 = vld [vmem:[#allocation7 + $0x2ec] sm:$0xf0]  ;;  %v145_v63 = vld.sshfl [vmem:[#allocation1 + $0x18] sm:$0xff pattern:$0x73625140] }
 0x111   :  { %1796 = vmatmul.bf16.vlgmr.msrb.gmra.mxu1 %v6265_v42  ;;  %v1577_v42 = vadd.f32 %v1576_v50, %v1564_v19  ;;  %v5828_v61 = vld [vmem:[#allocation7 + $0x4ec] sm:$0xf0] }
 0x112   :  { %1821 = vmatpush.bf16.msrb.mxu3 %v4421_v1  ;;  %2813 = vmatpush.bf16.msra.mxu1 %v4777_v4  ;;  %v4968_v62 = vld [vmem:[#allocation7 + $0x6d0] sm:$0xf]  ;;  %v4713_v1 = vor.u32 %v5796_v59, %v4712_v56  ;;  %v4841_v2 = vor.u32 %v5828_v61, %v4840_v60  ;;  %v1578_v15 = vpop.f32.mrf.mxu0 }
 0x113   :  { %1809 = vmatmul.bf16.vlgmr.msrb.gmra.mxu2 %v6273_v37  ;;  %v5768_v37 = vld [vmem:[#allocation7 + $0x12c] sm:$0xf0]  ;;  %v6300_v36 = vadd.f32 %v1589_v57, %v1577_v42  ;;  %v5778_v42 = vld [vmem:[#allocation7 + $0x1d4] sm:$0xf] }
 0x114   :  { %2826 = vmatpush.bf16.msra.mxu2 %v4905_v5  ;;  %2801 = vmatpush.bf16.msra.mxu0 %v4633_v20  ;;  %v4601_v51 = vor.u32 %v5768_v37, %v4600_v41  ;;  %v5860_v43 = vld [vmem:[#allocation7 + $0x6ec] sm:$0xf0]  ;;  %v1591_v24 = vpop.f32.mrf.mxu1 }
 0x115   :  { %1822 = vmatmul.bf16.vlgmr.msrb.gmra.mxu3 %v6275_v38  ;;  %v5864_v38 = vld [vmem:[#allocation7 + $0x72c] sm:$0xf0]  ;;  %v4969_v6 = vor.u32 %v5860_v43, %v4968_v62  ;;  %v142_v43 = vld.sshfl [vmem:[#allocation1] sm:$0xff pattern:$0x73625140] }
 0x116   :  { %2839 = vmatpush.bf16.msra.mxu3 %v5033_v11  ;;  %2814 = vmatpush.bf16.msra.mxu1 %v4761_v21  ;;  %v4985_v58 = vor.u32 %v5864_v38, %v4984_v49  ;;  %v4568_v3 = vld [vmem:[#allocation7 + $0x90] sm:$0xf]  ;;  %v1615_v11 = vpop.f32.mrf.mxu3  ;;  %v1604_v49 = vpop.f32.mrf.mxu2  ;;  %v5770_v24 = vld [vmem:[#allocation7 + $0x154] sm:$0xf] }
 0x117   :  { %v5760_v4 = vld [vmem:[#allocation7 + $0xac] sm:$0xf0]  ;;  %v6303_v23 = vadd.f32 %v1615_v11, %v1603_v14  ;;  %v6307_v11 = vpack.c.bf16 %v142_v43, %v142_v43 }
 0x118   :  { %2827 = vmatpush.bf16.msra.mxu2 %v4889_v22  ;;  %2802 = vmatpush.bf16.msra.mxu0 %v4617_v33  ;;  %v4696_v5 = vld [vmem:[#allocation7 + $0x290] sm:$0xf]  ;;  %v4569_v16 = vor.u32 %v5760_v4, %v4568_v3  ;;  %v143_v3 = vld.sshfl [vmem:[#allocation1 + $0x8] sm:$0xff pattern:$0x73625140]  ;;  %v4781_v4 = vor.u32 %v5810_v54, %v4778_v55 }
 0x119   :  { %v5792_v7 = vld [vmem:[#allocation7 + $0x2ac] sm:$0xf0]  ;;  %v6311_v14 = vpack.c.bf16 %v143_v3, %v143_v3  ;;  %v4586_v54 = vld [vmem:[#allocation7 + $0xf0] sm:$0xf0] }
 0x11a   :  { %2840 = vmatpush.bf16.msra.mxu3 %v5017_v27  ;;  %2815 = vmatpush.bf16.msra.mxu1 %v4745_v39  ;;  %v4824_v8 = vld [vmem:[#allocation7 + $0x490] sm:$0xf]  ;;  %v4697_v17 = vor.u32 %v5792_v7, %v4696_v5  ;;  %v4634_v7 = vld [vmem:[#allocation7 + $0x1b0] sm:$0xf0] }
 0x11b   :  { %v5824_v9 = vld [vmem:[#allocation7 + $0x4ac] sm:$0xf0]  ;;  %v5794_v55 = vld [vmem:[#allocation7 + $0x2d4] sm:$0xf] }
 0x11c   :  { %2828 = vmatpush.bf16.msra.mxu2 %v4873_v40  ;;  %2803 = vmatpush.bf16.msra.mxu0 %v4601_v51  ;;  %v4952_v12 = vld [vmem:[#allocation7 + $0x690] sm:$0xf]  ;;  %v4825_v19 = vor.u32 %v5824_v9, %v4824_v8  ;;  %v5806_v9 = vld [vmem:[#allocation7 + $0x394] sm:$0xf] }
 0x11d   :  { %v5856_v13 = vld [vmem:[#allocation7 + $0x6ac] sm:$0xf0] }
 0x11e   :  { %2841 = vmatpush.bf16.msra.mxu3 %v5001_v46  ;;  %2816 = vmatpush.bf16.msra.mxu1 %v4729_v52  ;;  %v4552_v20 = vld [vmem:[#allocation7 + $0x50] sm:$0xf]  ;;  %v4953_v25 = vor.u32 %v5856_v13, %v4952_v12  ;;  %v1617_v38 = vpop.f32.mrf.mxu3  ;;  %v6309_v12 = vpack.c.bf16 %v145_v63, %v145_v63 }
 0x11f   :  { %v5756_v21 = vld [vmem:[#allocation7 + $0x6c] sm:$0xf0] }
 0x120   :  { %2829 = vmatpush.bf16.msra.mxu2 %v4857_v53  ;;  %2804 = vmatpush.bf16.msra.mxu0 %v4585_v0  ;;  %v4680_v22 = vld [vmem:[#allocation7 + $0x250] sm:$0xf]  ;;  %v4553_v32 = vor.u32 %v5756_v21, %v4552_v20  ;;  %v4650_v53 = vld [vmem:[#allocation7 + $0x1f0] sm:$0xf0]  ;;  %v4765_v21 = vor.u32 %v5806_v9, %v4762_v10 }
 0x121   :  { %v5788_v26 = vld [vmem:[#allocation7 + $0x26c] sm:$0xf0] }
 0x122   :  { %2842 = vmatpush.bf16.msra.mxu3 %v4985_v58  ;;  %2817 = vmatpush.bf16.msra.mxu1 %v4713_v1  ;;  %v4808_v27 = vld [vmem:[#allocation7 + $0x450] sm:$0xf]  ;;  %v4681_v40 = vor.u32 %v5788_v26, %v4680_v22  ;;  %v4653_v1 = vor.u32 %v5778_v42, %v4650_v53  ;;  %v5802_v26 = vld [vmem:[#allocation7 + $0x354] sm:$0xf] }
 0x123   :  { %v5820_v28 = vld [vmem:[#allocation7 + $0x46c] sm:$0xf0]  ;;  %v5762_v53 = vld [vmem:[#allocation7 + $0xd4] sm:$0xf] }
 0x124   :  { %2830 = vmatpush.bf16.msra.mxu2 %v4841_v2  ;;  %v4936_v29 = vld [vmem:[#allocation7 + $0x650] sm:$0xf]  ;;  %2805 = vmatpush.bf16.msra.mxu0 %v4569_v16  ;;  %v4809_v41 = vor.u32 %v5820_v28, %v4808_v27  ;;  %v4746_v27 = vld [vmem:[#allocation7 + $0x370] sm:$0xf0] }
 0x125   :  { %v5852_v30 = vld [vmem:[#allocation7 + $0x66c] sm:$0xf0] }
 0x126   :  { %2843 = vmatpush.bf16.msra.mxu3 %v4969_v6  ;;  %v4536_v31 = vld [vmem:[#allocation7 + $0x10] sm:$0xf]  ;;  %2818 = vmatpush.bf16.msra.mxu1 %v4697_v17  ;;  %v4937_v46 = vor.u32 %v5852_v30, %v4936_v29  ;;  %v5774_v6 = vld [vmem:[#allocation7 + $0x194] sm:$0xf] }
 0x127   :  { %v5752_v33 = vld [vmem:[#allocation7 + $0x2c] sm:$0xf0]  ;;  %v4637_v16 = vor.u32 %v5774_v6, %v4634_v7  ;;  %v4698_v6 = vld [vmem:[#allocation7 + $0x2b0] sm:$0xf0] }
 0x128   :  { %v4664_v34 = vld [vmem:[#allocation7 + $0x210] sm:$0xf]  ;;  %2831 = vmatpush.bf16.msra.mxu2 %v4825_v19  ;;  %2806 = vmatpush.bf16.msra.mxu0 %v4553_v32  ;;  %v4537_v52 = vor.u32 %v5752_v33, %v4536_v31 }
 0x129   :  { %v5784_v39 = vld [vmem:[#allocation7 + $0x22c] sm:$0xf0] }
 0x12a   :  { %v4792_v37 = vld [vmem:[#allocation7 + $0x410] sm:$0xf]  ;;  %2844 = vmatpush.bf16.msra.mxu3 %v4953_v25  ;;  %2819 = vmatpush.bf16.msra.mxu1 %v4681_v40  ;;  %v4665_v56 = vor.u32 %v5784_v39, %v4664_v34  ;;  %v4618_v25 = vld [vmem:[#allocation7 + $0x170] sm:$0xf0]  ;;  %v4749_v34 = vor.u32 %v5802_v26, %v4746_v27 }
 0x12b   :  { %v5816_v44 = vld [vmem:[#allocation7 + $0x42c] sm:$0xf0]  ;;  %v4621_v30 = vor.u32 %v5770_v24, %v4618_v25  ;;  %v5766_v40 = vld [vmem:[#allocation7 + $0x114] sm:$0xf] }
 0x12c   :  { %v4920_v45 = vld [vmem:[#allocation7 + $0x610] sm:$0xf]  ;;  %2832 = vmatpush.bf16.msra.mxu2 %v4809_v41  ;;  %v4793_v57 = vor.u32 %v5816_v44, %v4792_v37  ;;  %2807 = vmatpush.bf16.msra.mxu0 %v4537_v52  ;;  %v4602_v41 = vld [vmem:[#allocation7 + $0x130] sm:$0xf0] }
 0x12d   :  { %v5848_v47 = vld [vmem:[#allocation7 + $0x62c] sm:$0xf0]  ;;  %v5798_v37 = vld [vmem:[#allocation7 + $0x314] sm:$0xf] }
 0x12e   :  { %v5160_v48 = vld [vmem:[#allocation7 + $0x9d0] sm:$0xf]  ;;  %2845 = vmatpush.bf16.msra.mxu3 %v4937_v46  ;;  %v4921_v61 = vor.u32 %v5848_v47, %v4920_v45  ;;  %2820 = vmatpush.bf16.msra.mxu1 %v4665_v56  ;;  %v4730_v44 = vld [vmem:[#allocation7 + $0x330] sm:$0xf0]  ;;  %v1628_v46 = vpop.f32.mrf.mxu0 }
 0x12f   :  { %v5908_v35 = vld [vmem:[#allocation7 + $0x9ec] sm:$0xf0]  ;;  %2808 = vmatmul.bf16.vlgmr.msra.gmra.mxu0 %v6307_v11  ;;  %v4733_v42 = vor.u32 %v5798_v37, %v4730_v44  ;;  %v4714_v56 = vld [vmem:[#allocation7 + $0x2f0] sm:$0xf0]  ;;  %v1654_v63 = vpop.f32.mrf.mxu2 }
 0x130   :  { %v5288_v50 = vld [vmem:[#allocation7 + $0xbd0] sm:$0xf]  ;;  %v5161_v62 = vor.u32 %v5908_v35, %v5160_v48  ;;  %2833 = vmatpush.bf16.msra.mxu2 %v4793_v57  ;;  %v4605_v48 = vor.u32 %v5766_v40, %v4602_v41  ;;  %v5754_v24 = vld [vmem:[#allocation7 + $0x54] sm:$0xf] }
 0x131   :  { %v5940_v51 = vld [vmem:[#allocation7 + $0xbec] sm:$0xf0]  ;;  %2821 = vmatmul.bf16.vlgmr.msra.gmra.mxu1 %v6311_v14  ;;  %v4554_v25 = vld [vmem:[#allocation7 + $0x70] sm:$0xf0] }
 0x132   :  { %v5144_v58 = vld [vmem:[#allocation7 + $0x990] sm:$0xf]  ;;  %v5289_v0 = vor.u32 %v5940_v51, %v5288_v50  ;;  %2846 = vmatpush.bf16.msra.mxu3 %v4921_v61  ;;  %2852 = vmatpush.bf16.msrb.mxu0 %v5161_v62  ;;  %v1629_v50 = vadd.f32 %v1628_v46, %v6303_v23  ;;  %v1641_v51 = vpop.f32.mrf.mxu1  ;;  %v4717_v23 = vor.u32 %v5794_v55, %v4714_v56  ;;  %v5786_v26 = vld [vmem:[#allocation7 + $0x254] sm:$0xf] }
 0x133   :  { %v5904_v59 = vld [vmem:[#allocation7 + $0x9ac] sm:$0xf0]  ;;  %v4682_v27 = vld [vmem:[#allocation7 + $0x270] sm:$0xf0] }
 0x134   :  { %v144_v60 = vld.sshfl [vmem:[#allocation1 + $0x10] sm:$0xff pattern:$0x73625140]  ;;  %v5145_v13 = vor.u32 %v5904_v59, %v5144_v58  ;;  %2865 = vmatpush.bf16.msrb.mxu1 %v5289_v0  ;;  %2878 = vmatpush.bf16.msrb.mxu2 %v4653_v1  ;;  %v1642_v57 = vadd.f32 %v1641_v51, %v1629_v50  ;;  %v4685_v37 = vor.u32 %v5786_v26, %v4682_v27  ;;  %v146_v55 = vld.sshfl [vmem:[#allocation1 + $0x20] sm:$0xff pattern:$0x73625140] }
 0x135   :  { %v5272_v2 = vld [vmem:[#allocation7 + $0xb90] sm:$0xf]  ;;  %v6305_v8 = vpack.c.bf16 %v144_v60, %v144_v60  ;;  %2847 = vmatmul.bf16.vlgmr.msra.gmra.mxu3 %v6309_v12  ;;  %v4589_v60 = vor.u32 %v5762_v53, %v4586_v54  ;;  %v5758_v1 = vld [vmem:[#allocation7 + $0x94] sm:$0xf] }
 0x136   :  { %v5936_v5 = vld [vmem:[#allocation7 + $0xbac] sm:$0xf0]  ;;  %2891 = vmatpush.bf16.msrb.mxu3 %v4781_v4  ;;  %2853 = vmatpush.bf16.msrb.mxu0 %v5145_v13  ;;  %v1655_v3 = vadd.f32 %v1654_v63, %v1642_v57  ;;  %v1667_v4 = vpop.f32.mrf.mxu3  ;;  %v1630_v10 = vpop.f32.mrf.mxu0  ;;  %v4538_v40 = vld [vmem:[#allocation7 + $0x30] sm:$0xf0] }
 0x137   :  { %v5273_v15 = vor.u32 %v5936_v5, %v5272_v2  ;;  %v5128_v17 = vld [vmem:[#allocation7 + $0x950] sm:$0xf]  ;;  %2834 = vmatmul.bf16.vlgmr.msra.gmra.mxu2 %v6305_v8  ;;  %v4570_v2 = vld [vmem:[#allocation7 + $0xb0] sm:$0xf0]  ;;  %v1656_v41 = vpop.f32.mrf.mxu2 }
 0x138   :  { %v5900_v19 = vld [vmem:[#allocation7 + $0x96c] sm:$0xf0]  ;;  %2879 = vmatpush.bf16.msrb.mxu2 %v4637_v16  ;;  %v5790_v5 = vld [vmem:[#allocation7 + $0x294] sm:$0xf]  ;;  %v6318_v9 = vadd.f32 %v1667_v4, %v1655_v3 }
 0x139   :  { %v5256_v20 = vld [vmem:[#allocation7 + $0xb50] sm:$0xf]  ;;  %v5129_v28 = vor.u32 %v5900_v19, %v5128_v17  ;;  %2866 = vmatpush.bf16.msrb.mxu1 %v5273_v15  ;;  %v4573_v15 = vor.u32 %v5758_v1, %v4570_v2  ;;  %v5782_v44 = vld [vmem:[#allocation7 + $0x214] sm:$0xf]  ;;  %v6320_v2 = vpack.c.bf16 %v146_v55, %v146_v55 }
 0x13a   :  { %v5932_v22 = vld [vmem:[#allocation7 + $0xb6c] sm:$0xf0]  ;;  %2892 = vmatpush.bf16.msrb.mxu3 %v4765_v21  ;;  %v4701_v21 = vor.u32 %v5790_v5, %v4698_v6  ;;  %v5842_v46 = vld [vmem:[#allocation7 + $0x5d4] sm:$0xf] }
 0x13b   :  { %v5257_v29 = vor.u32 %v5932_v22, %v5256_v20  ;;  %v5112_v31 = vld [vmem:[#allocation7 + $0x910] sm:$0xf]  ;;  %2854 = vmatpush.bf16.msrb.mxu0 %v5129_v28  ;;  %v1643_v20 = vpop.f32.mrf.mxu1  ;;  %v5906_v50 = vld [vmem:[#allocation7 + $0x9d4] sm:$0xf] }
 0x13c   :  { %v5896_v32 = vld [vmem:[#allocation7 + $0x92c] sm:$0xf0]  ;;  %2880 = vmatpush.bf16.msrb.mxu2 %v4621_v30  ;;  %v5162_v51 = vld [vmem:[#allocation7 + $0x9f0] sm:$0xf0] }
 0x13d   :  { %v5240_v33 = vld [vmem:[#allocation7 + $0xb10] sm:$0xf]  ;;  %v5113_v45 = vor.u32 %v5896_v32, %v5112_v31  ;;  %2867 = vmatpush.bf16.msrb.mxu1 %v5257_v29  ;;  %v5290_v54 = vld [vmem:[#allocation7 + $0xbf0] sm:$0xf0] }
 0x13e   :  { %v5928_v39 = vld [vmem:[#allocation7 + $0xb2c] sm:$0xf0]  ;;  %2893 = vmatpush.bf16.msrb.mxu3 %v4749_v34  ;;  %v5146_v1 = vld [vmem:[#allocation7 + $0x9b0] sm:$0xf0] }
 0x13f   :  { %v5241_v47 = vor.u32 %v5928_v39, %v5240_v33  ;;  %v5096_v35 = vld [vmem:[#allocation7 + $0x8d0] sm:$0xf]  ;;  %2855 = vmatpush.bf16.msrb.mxu0 %v5113_v45  ;;  %v4557_v33 = vor.u32 %v5754_v24, %v4554_v25  ;;  %v5750_v39 = vld [vmem:[#allocation7 + $0x14] sm:$0xf] }
 0x140   :  { %v5892_v49 = vld [vmem:[#allocation7 + $0x8ec] sm:$0xf0]  ;;  %2881 = vmatpush.bf16.msrb.mxu2 %v4605_v48  ;;  %v4666_v45 = vld [vmem:[#allocation7 + $0x230] sm:$0xf0]  ;;  %v4541_v53 = vor.u32 %v5750_v39, %v4538_v40 }
 0x141   :  { %v5224_v38 = vld [vmem:[#allocation7 + $0xad0] sm:$0xf]  ;;  %v5097_v58 = vor.u32 %v5892_v49, %v5096_v35  ;;  %2868 = vmatpush.bf16.msrb.mxu1 %v5241_v47  ;;  %v1669_v47 = vpop.f32.mrf.mxu3  ;;  %v4906_v48 = vld [vmem:[#allocation7 + $0x5f0] sm:$0xf0]  ;;  %v4669_v56 = vor.u32 %v5782_v44, %v4666_v45 }
 0x142   :  { %v5924_v52 = vld [vmem:[#allocation7 + $0xaec] sm:$0xf0]  ;;  %2894 = vmatpush.bf16.msrb.mxu3 %v4733_v42  ;;  %v5874_v35 = vld [vmem:[#allocation7 + $0x7d4] sm:$0xf]  ;;  %v4909_v57 = vor.u32 %v5842_v46, %v4906_v48 }
 0x143   :  { %v5225_v59 = vor.u32 %v5924_v52, %v5224_v38  ;;  %v5080_v61 = vld [vmem:[#allocation7 + $0x890] sm:$0xf]  ;;  %2856 = vmatpush.bf16.msrb.mxu0 %v5097_v58  ;;  %v5034_v49 = vld [vmem:[#allocation7 + $0x7f0] sm:$0xf0] }
 0x144   :  { %v5888_v62 = vld [vmem:[#allocation7 + $0x8ac] sm:$0xf0]  ;;  %2882 = vmatpush.bf16.msrb.mxu2 %v4589_v60  ;;  %v5938_v42 = vld [vmem:[#allocation7 + $0xbd4] sm:$0xf]  ;;  %v5165_v60 = vor.u32 %v5906_v50, %v5162_v51 }
 0x145   :  { %v5208_v43 = vld [vmem:[#allocation7 + $0xa90] sm:$0xf]  ;;  %v5081_v7 = vor.u32 %v5888_v62, %v5080_v61  ;;  %2869 = vmatpush.bf16.msrb.mxu1 %v5225_v59  ;;  %v147_v58 = vld.sshfl [vmem:[#allocation1 + $0x28] sm:$0xff pattern:$0x73625140]  ;;  %v5037_v59 = vor.u32 %v5874_v35, %v5034_v49  ;;  %v5293_v63 = vor.u32 %v5938_v42, %v5290_v54  ;;  %v1680_v44 = vpop.f32.mrf.mxu0 }
 0x146   :  { %v5920_v0 = vld [vmem:[#allocation7 + $0xaac] sm:$0xf0]  ;;  %2895 = vmatpush.bf16.msrb.mxu3 %v4717_v23  ;;  %v5838_v61 = vld [vmem:[#allocation7 + $0x594] sm:$0xf]  ;;  %v6322_v5 = vpack.c.bf16 %v147_v58, %v147_v58 }
 0x147   :  { %v5209_v13 = vor.u32 %v5920_v0, %v5208_v43  ;;  %v5064_v16 = vld [vmem:[#allocation7 + $0x850] sm:$0xf]  ;;  %2857 = vmatpush.bf16.msrb.mxu0 %v5081_v7  ;;  %v4890_v62 = vld [vmem:[#allocation7 + $0x5b0] sm:$0xf0] }
 0x148   :  { %v5884_v17 = vld [vmem:[#allocation7 + $0x86c] sm:$0xf0]  ;;  %2883 = vmatpush.bf16.msrb.mxu2 %v4573_v15  ;;  %v5870_v43 = vld [vmem:[#allocation7 + $0x794] sm:$0xf]  ;;  %v4893_v6 = vor.u32 %v5838_v61, %v4890_v62 }
 0x149   :  { %v5192_v19 = vld [vmem:[#allocation7 + $0xa50] sm:$0xf]  ;;  %v5065_v28 = vor.u32 %v5884_v17, %v5064_v16  ;;  %2870 = vmatpush.bf16.msrb.mxu1 %v5209_v13  ;;  %v5018_v23 = vld [vmem:[#allocation7 + $0x7b0] sm:$0xf0] }
 0x14a   :  { %v5916_v22 = vld [vmem:[#allocation7 + $0xa6c] sm:$0xf0]  ;;  %2896 = vmatpush.bf16.msrb.mxu3 %v4701_v21  ;;  %v5902_v0 = vld [vmem:[#allocation7 + $0x994] sm:$0xf]  ;;  %v5021_v7 = vor.u32 %v5870_v43, %v5018_v23 }
 0x14b   :  { %v5048_v29 = vld [vmem:[#allocation7 + $0x810] sm:$0xf]  ;;  %v5193_v32 = vor.u32 %v5916_v22, %v5192_v19  ;;  %2858 = vmatpush.bf16.msrb.mxu0 %v5065_v28  ;;  %v5934_v3 = vld [vmem:[#allocation7 + $0xb94] sm:$0xf]  ;;  %v5149_v10 = vor.u32 %v5902_v0, %v5146_v1 }
 0x14c   :  { %v5880_v30 = vld [vmem:[#allocation7 + $0x82c] sm:$0xf0]  ;;  %2884 = vmatpush.bf16.msrb.mxu2 %v4557_v33  ;;  %v5274_v4 = vld [vmem:[#allocation7 + $0xbb0] sm:$0xf0] }
 0x14d   :  { %v5176_v31 = vld [vmem:[#allocation7 + $0xa10] sm:$0xf]  ;;  %v5049_v38 = vor.u32 %v5880_v30, %v5048_v29  ;;  %2871 = vmatpush.bf16.msrb.mxu1 %v5193_v32  ;;  %v5834_v13 = vld [vmem:[#allocation7 + $0x554] sm:$0xf]  ;;  %v5277_v17 = vor.u32 %v5934_v3, %v5274_v4 }
 0x14e   :  { %v5912_v34 = vld [vmem:[#allocation7 + $0xa2c] sm:$0xf0]  ;;  %2897 = vmatpush.bf16.msrb.mxu3 %v4685_v37  ;;  %v4874_v15 = vld [vmem:[#allocation7 + $0x570] sm:$0xf0] }
 0x14f   :  { %v5177_v52 = vor.u32 %v5912_v34, %v5176_v31  ;;  %2859 = vmatpush.bf16.msrb.mxu0 %v5049_v38  ;;  %v5866_v16 = vld [vmem:[#allocation7 + $0x754] sm:$0xf]  ;;  %v4877_v25 = vor.u32 %v5834_v13, %v4874_v15  ;;  %v549_v31 = vperm.slane %v6293_v18, 2  ;;  %v1693_v38 = vpop.f32.mrf.mxu1  ;;  %v1706_v61 = vpop.f32.mrf.mxu2 }
 0x150   :  { %2885 = vmatpush.bf16.msrb.mxu2 %v4541_v53  ;;  %v5002_v19 = vld [vmem:[#allocation7 + $0x770] sm:$0xf0] }
 0x151   :  { %2872 = vmatpush.bf16.msrb.mxu1 %v5177_v52  ;;  %v5898_v20 = vld [vmem:[#allocation7 + $0x954] sm:$0xf]  ;;  %v5005_v27 = vor.u32 %v5866_v16, %v5002_v19  ;;  %v1681_v49 = vadd.f32 %v1680_v44, %v549_v31  ;;  %v1719_v1 = vpop.f32.mrf.mxu3 }
 0x152   :  { %2898 = vmatpush.bf16.msrb.mxu3 %v4669_v56  ;;  %v5130_v21 = vld [vmem:[#allocation7 + $0x970] sm:$0xf0]  ;;  %2860 = vmatmul.bf16.vlgmr.msrb.gmra.mxu0 %v6320_v2 }
 0x153   :  { %2904 = vmatpush.bf16.msra.mxu0 %v4909_v57  ;;  %v5930_v22 = vld [vmem:[#allocation7 + $0xb54] sm:$0xf]  ;;  %2886 = vmatmul.bf16.vlgmr.msrb.gmra.mxu2 %v6307_v11  ;;  %v5133_v28 = vor.u32 %v5898_v20, %v5130_v21  ;;  %v1694_v54 = vadd.f32 %v1693_v38, %v1681_v49  ;;  %v5813_v38 = vld [vmem:[#allocation7 + $0x3f4] sm:$0xf0] }
 0x154   :  { %2930 = vmatpush.bf16.msra.mxu2 %v5165_v60  ;;  %v5258_v24 = vld [vmem:[#allocation7 + $0xb70] sm:$0xf0]  ;;  %2873 = vmatmul.bf16.vlgmr.msrb.gmra.mxu1 %v6322_v5 }
 0x155   :  { %2917 = vmatpush.bf16.msra.mxu1 %v5037_v59  ;;  %v5830_v26 = vld [vmem:[#allocation7 + $0x514] sm:$0xf]  ;;  %2899 = vmatmul.bf16.vlgmr.msrb.gmra.mxu3 %v6311_v14  ;;  %v5261_v32 = vor.u32 %v5930_v22, %v5258_v24  ;;  %v1707_v0 = vadd.f32 %v1706_v61, %v1694_v54 }
 0x156   :  { %2943 = vmatpush.bf16.msra.mxu3 %v5293_v63  ;;  %v4858_v29 = vld [vmem:[#allocation7 + $0x530] sm:$0xf0] }
 0x157   :  { %2905 = vmatpush.bf16.msra.mxu0 %v4893_v6  ;;  %v5862_v30 = vld [vmem:[#allocation7 + $0x714] sm:$0xf]  ;;  %v4861_v37 = vor.u32 %v5830_v26, %v4858_v29  ;;  %v1695_v20 = vpop.f32.mrf.mxu1 }
 0x158   :  { %2931 = vmatpush.bf16.msra.mxu2 %v5149_v10  ;;  %v4986_v33 = vld [vmem:[#allocation7 + $0x730] sm:$0xf0]  ;;  %v1682_v10 = vpop.f32.mrf.mxu0  ;;  %v5008_v20 = vld [vmem:[#allocation7 + $0x758] sm:$0xf] }
 0x159   :  { %2918 = vmatpush.bf16.msra.mxu1 %v5021_v7  ;;  %v5894_v34 = vld [vmem:[#allocation7 + $0x914] sm:$0xf]  ;;  %v4989_v45 = vor.u32 %v5862_v30, %v4986_v33  ;;  %v6329_v7 = vadd.f32 %v1719_v1, %v1707_v0  ;;  %v5873_v0 = vld [vmem:[#allocation7 + $0x7b4] sm:$0xf0] }
 0x15a   :  { %2944 = vmatpush.bf16.msra.mxu3 %v5277_v17  ;;  %v5114_v39 = vld [vmem:[#allocation7 + $0x930] sm:$0xf0]  ;;  %v5773_v10 = vld [vmem:[#allocation7 + $0x174] sm:$0xf0] }
 0x15b   :  { %v5926_v40 = vld [vmem:[#allocation7 + $0xb14] sm:$0xf]  ;;  %2906 = vmatpush.bf16.msra.mxu0 %v4877_v25  ;;  %v5117_v46 = vor.u32 %v5894_v34, %v5114_v39 }
 0x15c   :  { %v5242_v41 = vld [vmem:[#allocation7 + $0xb30] sm:$0xf0]  ;;  %2932 = vmatpush.bf16.msra.mxu2 %v5133_v28 }
 0x15d   :  { %2919 = vmatpush.bf16.msra.mxu1 %v5005_v27  ;;  %v5826_v47 = vld [vmem:[#allocation7 + $0x4d4] sm:$0xf]  ;;  %v5245_v18 = vor.u32 %v5926_v40, %v5242_v41  ;;  %v1708_v40 = vpop.f32.mrf.mxu2 }
 0x15e   :  { %v4842_v48 = vld [vmem:[#allocation7 + $0x4f0] sm:$0xf0]  ;;  %2945 = vmatpush.bf16.msra.mxu3 %v5261_v32 }
 0x15f   :  { %v5858_v35 = vld [vmem:[#allocation7 + $0x6d4] sm:$0xf]  ;;  %2907 = vmatpush.bf16.msra.mxu0 %v4861_v37  ;;  %v4845_v55 = vor.u32 %v5826_v47, %v4842_v48  ;;  %v4656_v47 = vld [vmem:[#allocation7 + $0x1d8] sm:$0xf] }
 0x160   :  { %v4970_v50 = vld [vmem:[#allocation7 + $0x6f0] sm:$0xf0]  ;;  %2933 = vmatpush.bf16.msra.mxu2 %v5117_v46  ;;  %v1721_v46 = vpop.f32.mrf.mxu3  ;;  %v5781_v48 = vld [vmem:[#allocation7 + $0x1f4] sm:$0xf0] }
 0x161   :  { %v5890_v51 = vld [vmem:[#allocation7 + $0x8d4] sm:$0xf]  ;;  %2920 = vmatpush.bf16.msra.mxu1 %v4989_v45  ;;  %v4973_v56 = vor.u32 %v5858_v35, %v4970_v50  ;;  %v4784_v35 = vld [vmem:[#allocation7 + $0x3d8] sm:$0xf] }
 0x162   :  { %v5098_v42 = vld [vmem:[#allocation7 + $0x8f0] sm:$0xf0]  ;;  %2946 = vmatpush.bf16.msra.mxu3 %v5245_v18  ;;  %v4912_v18 = vld [vmem:[#allocation7 + $0x5d8] sm:$0xf] }
 0x163   :  { %v5922_v52 = vld [vmem:[#allocation7 + $0xad4] sm:$0xf]  ;;  %v5101_v57 = vor.u32 %v5890_v51, %v5098_v42  ;;  %2908 = vmatpush.bf16.msra.mxu0 %v4845_v55  ;;  %v5845_v50 = vld [vmem:[#allocation7 + $0x5f4] sm:$0xf0]  ;;  %v4657_v55 = vor.u32 %v5781_v48, %v4656_v47 }
 0x164   :  { %v5226_v53 = vld [vmem:[#allocation7 + $0xaf0] sm:$0xf0]  ;;  %v4592_v46 = vld [vmem:[#allocation7 + $0xd8] sm:$0xf] }
 0x165   :  { %v5822_v58 = vld [vmem:[#allocation7 + $0x494] sm:$0xf]  ;;  %v5229_v62 = vor.u32 %v5922_v52, %v5226_v53  ;;  %2921 = vmatpush.bf16.msra.mxu1 %v4973_v56  ;;  %2934 = vmatpush.bf16.msra.mxu2 %v5101_v57  ;;  %v5040_v52 = vld [vmem:[#allocation7 + $0x7d8] sm:$0xf]  ;;  %v4785_v56 = vor.u32 %v5813_v38, %v4784_v35  ;;  %v4913_v57 = vor.u32 %v5845_v50, %v4912_v18 }
 0x166   :  { %v4826_v59 = vld [vmem:[#allocation7 + $0x4b0] sm:$0xf0]  ;;  %v5877_v53 = vld [vmem:[#allocation7 + $0x7f4] sm:$0xf0] }
 0x167   :  { %v5854_v60 = vld [vmem:[#allocation7 + $0x694] sm:$0xf]  ;;  %v4829_v6 = vor.u32 %v5822_v58, %v4826_v59  ;;  %2947 = vmatpush.bf16.msra.mxu3 %v5229_v62  ;;  %v4640_v58 = vld [vmem:[#allocation7 + $0x198] sm:$0xf]  ;;  %v5041_v61 = vor.u32 %v5877_v53, %v5040_v52  ;;  %v6018_v52 = vld [vmem:[#allocation8] sm:$0xf] }
 0x168   :  { %v4954_v43 = vld [vmem:[#allocation7 + $0x6b0] sm:$0xf0]  ;;  %v5777_v59 = vld [vmem:[#allocation7 + $0x1b4] sm:$0xf0]  ;;  %v550_v53 = vperm.slane %v6018_v52, 3 }
 0x169   :  { %v5886_v63 = vld [vmem:[#allocation7 + $0x894] sm:$0xf]  ;;  %v4957_v13 = vor.u32 %v5854_v60, %v4954_v43  ;;  %2909 = vmatpush.bf16.msra.mxu0 %v4829_v6  ;;  %v4768_v60 = vld [vmem:[#allocation7 + $0x398] sm:$0xf]  ;;  %v4641_v1 = vor.u32 %v5777_v59, %v4640_v58  ;;  %v5811_v52 = vld [vmem:[#allocation7 + $0x3dc] sm:$0xf] }
 0x16a   :  { %v5082_v23 = vld [vmem:[#allocation7 + $0x8b0] sm:$0xf0]  ;;  %v5809_v62 = vld [vmem:[#allocation7 + $0x3b4] sm:$0xf0] }
 0x16b   :  { %v5918_v3 = vld [vmem:[#allocation7 + $0xa94] sm:$0xf]  ;;  %v5085_v15 = vor.u32 %v5886_v63, %v5082_v23  ;;  %2922 = vmatpush.bf16.msra.mxu1 %v4957_v13  ;;  %v4896_v43 = vld [vmem:[#allocation7 + $0x598] sm:$0xf] }
 0x16c   :  { %v5210_v4 = vld [vmem:[#allocation7 + $0xab0] sm:$0xf0]  ;;  %v5841_v63 = vld [vmem:[#allocation7 + $0x5b4] sm:$0xf0] }
 0x16d   :  { %v5818_v16 = vld [vmem:[#allocation7 + $0x454] sm:$0xf]  ;;  %v5213_v21 = vor.u32 %v5918_v3, %v5210_v4  ;;  %2935 = vmatpush.bf16.msra.mxu2 %v5085_v15  ;;  %v5024_v23 = vld [vmem:[#allocation7 + $0x798] sm:$0xf]  ;;  %v4769_v3 = vor.u32 %v5809_v62, %v4768_v60  ;;  %v4897_v4 = vor.u32 %v5841_v63, %v4896_v43 }
 0x16e   :  { %v4810_v17 = vld [vmem:[#allocation7 + $0x470] sm:$0xf0]  ;;  %v4624_v6 = vld [vmem:[#allocation7 + $0x158] sm:$0xf]  ;;  %v5025_v15 = vor.u32 %v5873_v0, %v5024_v23 }
 0x16f   :  { %v5850_v19 = vld [vmem:[#allocation7 + $0x654] sm:$0xf]  ;;  %v4813_v28 = vor.u32 %v5818_v16, %v4810_v17  ;;  %2948 = vmatpush.bf16.msra.mxu3 %v5213_v21  ;;  %v4752_v13 = vld [vmem:[#allocation7 + $0x358] sm:$0xf]  ;;  %v1758_v43 = vpop.f32.mrf.mxu2 }
 0x170   :  { %v4938_v22 = vld [vmem:[#allocation7 + $0x670] sm:$0xf0]  ;;  %v5805_v16 = vld [vmem:[#allocation7 + $0x374] sm:$0xf0]  ;;  %v1759_v0 = vadd.f32 %v1758_v43, %v550_v53  ;;  %v4786_v53 = vld [vmem:[#allocation7 + $0x3f8] sm:$0xf0] }
 0x171   :  { %v5882_v24 = vld [vmem:[#allocation7 + $0x854] sm:$0xf]  ;;  %v4941_v31 = vor.u32 %v5850_v19, %v4938_v22  ;;  %2910 = vmatpush.bf16.msra.mxu0 %v4813_v28  ;;  %v4880_v17 = vld [vmem:[#allocation7 + $0x558] sm:$0xf]  ;;  %v4625_v22 = vor.u32 %v5773_v10, %v4624_v6  ;;  %v4642_v43 = vld [vmem:[#allocation7 + $0x1b8] sm:$0xf0] }
 0x172   :  { %v5066_v25 = vld [vmem:[#allocation7 + $0x870] sm:$0xf0]  ;;  %v5837_v19 = vld [vmem:[#allocation7 + $0x574] sm:$0xf0] }
 0x173   :  { %v5914_v26 = vld [vmem:[#allocation7 + $0xa54] sm:$0xf]  ;;  %v5069_v32 = vor.u32 %v5882_v24, %v5066_v25  ;;  %2923 = vmatpush.bf16.msra.mxu1 %v4941_v31  ;;  %v5869_v21 = vld [vmem:[#allocation7 + $0x774] sm:$0xf0]  ;;  %v4753_v24 = vor.u32 %v5805_v16, %v4752_v13  ;;  %v4881_v25 = vor.u32 %v5837_v19, %v4880_v17 }
 0x174   :  { %v5194_v27 = vld [vmem:[#allocation7 + $0xa70] sm:$0xf0]  ;;  %v4736_v28 = vld [vmem:[#allocation7 + $0x318] sm:$0xf] }
 0x175   :  { %v5814_v29 = vld [vmem:[#allocation7 + $0x414] sm:$0xf]  ;;  %v5197_v41 = vor.u32 %v5914_v26, %v5194_v27  ;;  %2936 = vmatpush.bf16.msra.mxu2 %v5069_v32  ;;  %v4608_v26 = vld [vmem:[#allocation7 + $0x118] sm:$0xf] }
 0x176   :  { %v4794_v30 = vld [vmem:[#allocation7 + $0x430] sm:$0xf0]  ;;  %v5769_v27 = vld [vmem:[#allocation7 + $0x134] sm:$0xf0] }
 0x177   :  { %v5846_v33 = vld [vmem:[#allocation7 + $0x614] sm:$0xf]  ;;  %v4797_v49 = vor.u32 %v5814_v29, %v4794_v30  ;;  %2949 = vmatpush.bf16.msra.mxu3 %v5197_v41  ;;  %v5009_v29 = vor.u32 %v5869_v21, %v5008_v20  ;;  %v5801_v30 = vld [vmem:[#allocation7 + $0x334] sm:$0xf0]  ;;  %v4609_v40 = vor.u32 %v5769_v27, %v4608_v26 }
 0x178   :  { %v4922_v34 = vld [vmem:[#allocation7 + $0x630] sm:$0xf0]  ;;  %v4864_v31 = vld [vmem:[#allocation7 + $0x518] sm:$0xf] }
 0x179   :  { %v5878_v39 = vld [vmem:[#allocation7 + $0x814] sm:$0xf]  ;;  %v4925_v51 = vor.u32 %v5846_v33, %v4922_v34  ;;  %2911 = vmatpush.bf16.msra.mxu0 %v4797_v49  ;;  %v5833_v32 = vld [vmem:[#allocation7 + $0x534] sm:$0xf0] }
 0x17a   :  { %v5050_v37 = vld [vmem:[#allocation7 + $0x830] sm:$0xf0]  ;;  %v4992_v33 = vld [vmem:[#allocation7 + $0x718] sm:$0xf] }
 0x17b   :  { %v5910_v44 = vld [vmem:[#allocation7 + $0xa14] sm:$0xf]  ;;  %v5053_v42 = vor.u32 %v5878_v39, %v5050_v37  ;;  %2924 = vmatpush.bf16.msra.mxu1 %v4925_v51  ;;  %v5865_v34 = vld [vmem:[#allocation7 + $0x734] sm:$0xf0]  ;;  %v1732_v39 = vpop.f32.mrf.mxu0  ;;  %v1745_v37 = vpop.f32.mrf.mxu1 }
 0x17c   :  { %v5178_v45 = vld [vmem:[#allocation7 + $0xa30] sm:$0xf0]  ;;  %2912 = vmatmul.bf16.vlgmr.msra.gmra.mxu0 %v6305_v8  ;;  %v1733_v41 = vadd.f32 %v1732_v39, %v6329_v7  ;;  %v5765_v47 = vld [vmem:[#allocation7 + $0xf4] sm:$0xf0]  ;;  %v4993_v35 = vor.u32 %v5865_v34, %v4992_v33 }
 0x17d   :  { %v5181_v54 = vor.u32 %v5910_v44, %v5178_v45  ;;  %2937 = vmatpush.bf16.msra.mxu2 %v5053_v42  ;;  %2956 = vmatpush.bf16.msrb.mxu0 %v4657_v55  ;;  %v4737_v44 = vor.u32 %v5801_v30, %v4736_v28  ;;  %v4865_v45 = vor.u32 %v5833_v32, %v4864_v31  ;;  %v4720_v48 = vld [vmem:[#allocation7 + $0x2d8] sm:$0xf] }
 0x17e   :  { %2925 = vmatmul.bf16.vlgmr.msra.gmra.mxu1 %v6309_v12  ;;  %v5797_v49 = vld [vmem:[#allocation7 + $0x2f4] sm:$0xf0]  ;;  %v6336_v50 = vadd.f32 %v1745_v37, %v1733_v41  ;;  %v4593_v7 = vor.u32 %v5765_v47, %v4592_v46 }
 0x17f   :  { %2950 = vmatpush.bf16.msra.mxu3 %v5181_v54  ;;  %2969 = vmatpush.bf16.msrb.mxu1 %v4785_v56  ;;  %v4848_v38 = vld [vmem:[#allocation7 + $0x4d8] sm:$0xf]  ;;  %v4721_v54 = vor.u32 %v5797_v49, %v4720_v48 }
 0x180   :  { %2938 = vmatmul.bf16.vlgmr.msra.gmra.mxu2 %v6320_v2  ;;  %v5829_v18 = vld [vmem:[#allocation7 + $0x4f4] sm:$0xf0] }
 0x181   :  { %2982 = vmatpush.bf16.msrb.mxu2 %v4913_v57  ;;  %2957 = vmatpush.bf16.msrb.mxu0 %v4641_v1  ;;  %v4976_v51 = vld [vmem:[#allocation7 + $0x6d8] sm:$0xf]  ;;  %v4849_v55 = vor.u32 %v5829_v18, %v4848_v38  ;;  %v1771_v1 = vpop.f32.mrf.mxu3  ;;  %v5779_v38 = vld [vmem:[#allocation7 + $0x1dc] sm:$0xf] }
 0x182   :  { %2951 = vmatmul.bf16.vlgmr.msra.gmra.mxu3 %v6322_v5  ;;  %v5861_v42 = vld [vmem:[#allocation7 + $0x6f4] sm:$0xf0]  ;;  %v6338_v19 = vadd.f32 %v1771_v1, %v1759_v0  ;;  %v4658_v18 = vld [vmem:[#allocation7 + $0x1f8] sm:$0xf0] }
 0x183   :  { %2995 = vmatpush.bf16.msrb.mxu3 %v5041_v61  ;;  %2970 = vmatpush.bf16.msrb.mxu1 %v4769_v3  ;;  %v4576_v56 = vld [vmem:[#allocation7 + $0x98] sm:$0xf]  ;;  %v4977_v59 = vor.u32 %v5861_v42, %v4976_v51  ;;  %v1734_v3 = vpop.f32.mrf.mxu0  ;;  %v1747_v6 = vpop.f32.mrf.mxu1 }
 0x184   :  { %v5761_v57 = vld [vmem:[#allocation7 + $0xb4] sm:$0xf0] }
 0x185   :  { %2983 = vmatpush.bf16.msrb.mxu2 %v4897_v4  ;;  %2958 = vmatpush.bf16.msrb.mxu0 %v4625_v22  ;;  %v4704_v58 = vld [vmem:[#allocation7 + $0x298] sm:$0xf]  ;;  %v4577_v4 = vor.u32 %v5761_v57, %v4576_v56  ;;  %v4661_v56 = vor.u32 %v5779_v38, %v4658_v18  ;;  %v5763_v38 = vld [vmem:[#allocation7 + $0xdc] sm:$0xf] }
 0x186   :  { %v5793_v60 = vld [vmem:[#allocation7 + $0x2b4] sm:$0xf0]  ;;  %v4594_v18 = vld [vmem:[#allocation7 + $0xf8] sm:$0xf0] }
 0x187   :  { %2996 = vmatpush.bf16.msrb.mxu3 %v5025_v15  ;;  %2971 = vmatpush.bf16.msrb.mxu1 %v4753_v24  ;;  %v4832_v61 = vld [vmem:[#allocation7 + $0x498] sm:$0xf]  ;;  %v4705_v10 = vor.u32 %v5793_v60, %v4704_v58  ;;  %v4789_v60 = vor.u32 %v5811_v52, %v4786_v53 }
 0x188   :  { %v5825_v62 = vld [vmem:[#allocation7 + $0x4b4] sm:$0xf0] }
 0x189   :  { %2984 = vmatpush.bf16.msrb.mxu2 %v4881_v25  ;;  %2959 = vmatpush.bf16.msrb.mxu0 %v4609_v40  ;;  %v4960_v63 = vld [vmem:[#allocation7 + $0x698] sm:$0xf]  ;;  %v4833_v13 = vor.u32 %v5825_v62, %v4832_v61  ;;  %v1773_v48 = vpop.f32.mrf.mxu3  ;;  %v5775_v62 = vld [vmem:[#allocation7 + $0x19c] sm:$0xf] }
 0x18a   :  { %v5857_v23 = vld [vmem:[#allocation7 + $0x6b4] sm:$0xf0]  ;;  %v4645_v3 = vor.u32 %v5775_v62, %v4642_v43 }
 0x18b   :  { %2997 = vmatpush.bf16.msrb.mxu3 %v5009_v29  ;;  %2972 = vmatpush.bf16.msrb.mxu1 %v4737_v44  ;;  %v4560_v15 = vld [vmem:[#allocation7 + $0x58] sm:$0xf]  ;;  %v4961_v20 = vor.u32 %v5857_v23, %v4960_v63  ;;  %v1760_v44 = vpop.f32.mrf.mxu2  ;;  %v5807_v63 = vld [vmem:[#allocation7 + $0x39c] sm:$0xf] }
 0x18c   :  { %v5757_v16 = vld [vmem:[#allocation7 + $0x74] sm:$0xf0]  ;;  %v4770_v23 = vld [vmem:[#allocation7 + $0x3b8] sm:$0xf0] }
 0x18d   :  { %2985 = vmatpush.bf16.msrb.mxu2 %v4865_v45  ;;  %2960 = vmatpush.bf16.msrb.mxu0 %v4593_v7  ;;  %v4688_v17 = vld [vmem:[#allocation7 + $0x258] sm:$0xf]  ;;  %v4561_v27 = vor.u32 %v5757_v16, %v4560_v15  ;;  %v5771_v16 = vld [vmem:[#allocation7 + $0x15c] sm:$0xf] }
 0x18e   :  { %v5789_v21 = vld [vmem:[#allocation7 + $0x274] sm:$0xf0]  ;;  %v1797_v48 = vpop.f32.mrf.mxu1 }
 0x18f   :  { %2998 = vmatpush.bf16.msrb.mxu3 %v4993_v35  ;;  %2973 = vmatpush.bf16.msrb.mxu1 %v4721_v54  ;;  %v4816_v22 = vld [vmem:[#allocation7 + $0x458] sm:$0xf]  ;;  %v4689_v30 = vor.u32 %v5789_v21, %v4688_v17  ;;  %v4626_v17 = vld [vmem:[#allocation7 + $0x178] sm:$0xf0] }
 0x190   :  { %v5821_v24 = vld [vmem:[#allocation7 + $0x474] sm:$0xf0]  ;;  %v4754_v21 = vld [vmem:[#allocation7 + $0x378] sm:$0xf0] }
 0x191   :  { %2986 = vmatpush.bf16.msrb.mxu2 %v4849_v55  ;;  %v4944_v25 = vld [vmem:[#allocation7 + $0x658] sm:$0xf]  ;;  %2961 = vmatpush.bf16.msrb.mxu0 %v4577_v4  ;;  %v4817_v31 = vor.u32 %v5821_v24, %v4816_v22 }
 0x192   :  { %v5853_v26 = vld [vmem:[#allocation7 + $0x674] sm:$0xf0] }
 0x193   :  { %2999 = vmatpush.bf16.msrb.mxu3 %v4977_v59  ;;  %v4544_v28 = vld [vmem:[#allocation7 + $0x18] sm:$0xf]  ;;  %2974 = vmatpush.bf16.msrb.mxu1 %v4705_v10  ;;  %v4945_v39 = vor.u32 %v5853_v26, %v4944_v25  ;;  %v4629_v25 = vor.u32 %v5771_v16, %v4626_v17 }
 0x194   :  { %v5753_v29 = vld [vmem:[#allocation7 + $0x34] sm:$0xf0] }
 0x195   :  { %2987 = vmatpush.bf16.msrb.mxu2 %v4833_v13  ;;  %v4672_v32 = vld [vmem:[#allocation7 + $0x218] sm:$0xf]  ;;  %2962 = vmatpush.bf16.msrb.mxu0 %v4561_v27  ;;  %v4545_v35 = vor.u32 %v5753_v29, %v4544_v28  ;;  %v4773_v13 = vor.u32 %v5807_v63, %v4770_v23  ;;  %v5791_v63 = vld [vmem:[#allocation7 + $0x29c] sm:$0xf] }
 0x196   :  { %v5785_v33 = vld [vmem:[#allocation7 + $0x234] sm:$0xf0]  ;;  %v4706_v23 = vld [vmem:[#allocation7 + $0x2b8] sm:$0xf0]  ;;  %v1799_v16 = vpop.f32.mrf.mxu1 }
 0x197   :  { %v4800_v34 = vld [vmem:[#allocation7 + $0x418] sm:$0xf]  ;;  %3000 = vmatpush.bf16.msrb.mxu3 %v4961_v20  ;;  %2975 = vmatpush.bf16.msrb.mxu1 %v4689_v30  ;;  %v4673_v51 = vor.u32 %v5785_v33, %v4672_v32  ;;  %v5803_v20 = vld [vmem:[#allocation7 + $0x35c] sm:$0xf]  ;;  %v4709_v17 = vor.u32 %v5791_v63, %v4706_v23 }
 0x198   :  { %v5817_v40 = vld [vmem:[#allocation7 + $0x434] sm:$0xf0]  ;;  %v4757_v29 = vor.u32 %v5803_v20, %v4754_v21  ;;  %v4610_v32 = vld [vmem:[#allocation7 + $0x138] sm:$0xf0]  ;;  %v1823_v43 = vpop.f32.mrf.mxu3 }
 0x199   :  { %v4928_v41 = vld [vmem:[#allocation7 + $0x618] sm:$0xf]  ;;  %2988 = vmatpush.bf16.msrb.mxu2 %v4817_v31  ;;  %v4801_v42 = vor.u32 %v5817_v40, %v4800_v34  ;;  %2963 = vmatpush.bf16.msrb.mxu0 %v4545_v35  ;;  %v5767_v31 = vld [vmem:[#allocation7 + $0x11c] sm:$0xf]  ;;  %v1784_v40 = vpop.f32.mrf.mxu0 }
 0x19a   :  { %v5849_v37 = vld [vmem:[#allocation7 + $0x634] sm:$0xf0]  ;;  %v5799_v33 = vld [vmem:[#allocation7 + $0x31c] sm:$0xf] }
 0x19b   :  { %v5168_v45 = vld [vmem:[#allocation7 + $0x9d8] sm:$0xf]  ;;  %3001 = vmatpush.bf16.msrb.mxu3 %v4945_v39  ;;  %v4929_v7 = vor.u32 %v5849_v37, %v4928_v41  ;;  %2976 = vmatpush.bf16.msrb.mxu1 %v4673_v51  ;;  %v4738_v34 = vld [vmem:[#allocation7 + $0x338] sm:$0xf0]  ;;  %v4613_v37 = vor.u32 %v5767_v31, %v4610_v32 }
 0x19c   :  { %v5909_v46 = vld [vmem:[#allocation7 + $0x9f4] sm:$0xf0]  ;;  %2964 = vmatmul.bf16.vlgmr.msrb.gmra.mxu0 %v6307_v11  ;;  %v4741_v35 = vor.u32 %v5799_v33, %v4738_v34  ;;  %v5795_v51 = vld [vmem:[#allocation7 + $0x2dc] sm:$0xf] }
 0x19d   :  { %v5296_v47 = vld [vmem:[#allocation7 + $0xbd8] sm:$0xf]  ;;  %v5169_v54 = vor.u32 %v5909_v46, %v5168_v45  ;;  %2989 = vmatpush.bf16.msrb.mxu2 %v4801_v42  ;;  %v4722_v42 = vld [vmem:[#allocation7 + $0x2f8] sm:$0xf0] }
 0x19e   :  { %v5941_v49 = vld [vmem:[#allocation7 + $0xbf4] sm:$0xf0]  ;;  %2977 = vmatmul.bf16.vlgmr.msrb.gmra.mxu1 %v6311_v14  ;;  %v5755_v21 = vld [vmem:[#allocation7 + $0x5c] sm:$0xf] }
 0x19f   :  { %v5297_v55 = vor.u32 %v5941_v49, %v5296_v47  ;;  %v5152_v57 = vld [vmem:[#allocation7 + $0x998] sm:$0xf]  ;;  %3002 = vmatpush.bf16.msrb.mxu3 %v4929_v7  ;;  %3008 = vmatpush.bf16.msra.mxu0 %v5169_v54  ;;  %v1785_v47 = vadd.f32 %v1784_v40, %v6338_v19  ;;  %v4597_v54 = vor.u32 %v5763_v38, %v4594_v18  ;;  %v5751_v33 = vld [vmem:[#allocation7 + $0x1c] sm:$0xf] }
 0x1a0   :  { %v5905_v58 = vld [vmem:[#allocation7 + $0x9b4] sm:$0xf0]  ;;  %2990 = vmatmul.bf16.vlgmr.msrb.gmra.mxu2 %v6305_v8  ;;  %v4725_v19 = vor.u32 %v5795_v51, %v4722_v42  ;;  %v4546_v40 = vld [vmem:[#allocation7 + $0x38] sm:$0xf0] }
 0x1a1   :  { %v5280_v59 = vld [vmem:[#allocation7 + $0xb98] sm:$0xf]  ;;  %v5153_v0 = vor.u32 %v5905_v58, %v5152_v57  ;;  %3021 = vmatpush.bf16.msra.mxu1 %v5297_v55  ;;  %3034 = vmatpush.bf16.msra.mxu2 %v4661_v56  ;;  %v1798_v52 = vadd.f32 %v1797_v48, %v1785_v47  ;;  %v1810_v58 = vpop.f32.mrf.mxu2  ;;  %v5875_v47 = vld [vmem:[#allocation7 + $0x7dc] sm:$0xf]  ;;  %v4549_v51 = vor.u32 %v5751_v33, %v4546_v40 }
 0x1a2   :  { %v5937_v61 = vld [vmem:[#allocation7 + $0xbb4] sm:$0xf0]  ;;  %3003 = vmatmul.bf16.vlgmr.msrb.gmra.mxu3 %v6309_v12  ;;  %v5170_v38 = vld [vmem:[#allocation7 + $0x9f8] sm:$0xf0] }
 0x1a3   :  { %v5281_v1 = vor.u32 %v5937_v61, %v5280_v59  ;;  %v5136_v4 = vld [vmem:[#allocation7 + $0x958] sm:$0xf]  ;;  %3047 = vmatpush.bf16.msra.mxu3 %v4789_v60  ;;  %3009 = vmatpush.bf16.msra.mxu0 %v5153_v0  ;;  %v5759_v60 = vld [vmem:[#allocation7 + $0x9c] sm:$0xf]  ;;  %v1811_v62 = vadd.f32 %v1810_v58, %v1798_v52 }
 0x1a4   :  { %v5901_v6 = vld [vmem:[#allocation7 + $0x974] sm:$0xf0]  ;;  %v4578_v61 = vld [vmem:[#allocation7 + $0xb8] sm:$0xf0] }
 0x1a5   :  { %v5264_v10 = vld [vmem:[#allocation7 + $0xb58] sm:$0xf]  ;;  %v5137_v22 = vor.u32 %v5901_v6, %v5136_v4  ;;  %3022 = vmatpush.bf16.msra.mxu1 %v5281_v1  ;;  %3035 = vmatpush.bf16.msra.mxu2 %v4645_v3  ;;  %v6345_v1 = vadd.f32 %v1823_v43, %v1811_v62  ;;  %v1786_v3 = vpop.f32.mrf.mxu0  ;;  %v4581_v6 = vor.u32 %v5759_v60, %v4578_v61  ;;  %v5939_v42 = vld [vmem:[#allocation7 + $0xbdc] sm:$0xf] }
 0x1a6   :  { %v5933_v15 = vld [vmem:[#allocation7 + $0xb74] sm:$0xf0]  ;;  %v5298_v52 = vld [vmem:[#allocation7 + $0xbf8] sm:$0xf0] }
 0x1a7   :  { %v5265_v24 = vor.u32 %v5933_v15, %v5264_v10  ;;  %v5120_v26 = vld [vmem:[#allocation7 + $0x918] sm:$0xf]  ;;  %3048 = vmatpush.bf16.msra.mxu3 %v4773_v13  ;;  %3010 = vmatpush.bf16.msra.mxu0 %v5137_v22  ;;  %v4562_v22 = vld [vmem:[#allocation7 + $0x78] sm:$0xf0] }
 0x1a8   :  { %v5897_v27 = vld [vmem:[#allocation7 + $0x934] sm:$0xf0]  ;;  %v5871_v58 = vld [vmem:[#allocation7 + $0x79c] sm:$0xf] }
 0x1a9   :  { %v5248_v28 = vld [vmem:[#allocation7 + $0xb18] sm:$0xf]  ;;  %v5121_v39 = vor.u32 %v5897_v27, %v5120_v26  ;;  %3023 = vmatpush.bf16.msra.mxu1 %v5265_v24  ;;  %3036 = vmatpush.bf16.msra.mxu2 %v4629_v25  ;;  %v5787_v24 = vld [vmem:[#allocation7 + $0x25c] sm:$0xf]  ;;  %v1812_v34 = vpop.f32.mrf.mxu2 }
 0x1aa   :  { %v5929_v30 = vld [vmem:[#allocation7 + $0xb34] sm:$0xf0]  ;;  %v4690_v25 = vld [vmem:[#allocation7 + $0x278] sm:$0xf0] }
 0x1ab   :  { %v5249_v41 = vor.u32 %v5929_v30, %v5248_v28  ;;  %v5104_v44 = vld [vmem:[#allocation7 + $0x8d8] sm:$0xf]  ;;  %3049 = vmatpush.bf16.msra.mxu3 %v4757_v29  ;;  %3011 = vmatpush.bf16.msra.mxu0 %v5121_v39  ;;  %v4565_v30 = vor.u32 %v5755_v21, %v4562_v22  ;;  %v4693_v39 = vor.u32 %v5787_v24, %v4690_v25  ;;  %v5903_v60 = vld [vmem:[#allocation7 + $0x99c] sm:$0xf] }
 0x1ac   :  { %v5893_v45 = vld [vmem:[#allocation7 + $0x8f4] sm:$0xf0]  ;;  %v5154_v61 = vld [vmem:[#allocation7 + $0x9b8] sm:$0xf0] }
 0x1ad   :  { %v5232_v46 = vld [vmem:[#allocation7 + $0xad8] sm:$0xf]  ;;  %v5105_v53 = vor.u32 %v5893_v45, %v5104_v44  ;;  %3024 = vmatpush.bf16.msra.mxu1 %v5249_v41  ;;  %3037 = vmatpush.bf16.msra.mxu2 %v4613_v37  ;;  %v5783_v41 = vld [vmem:[#allocation7 + $0x21c] sm:$0xf]  ;;  %v1825_v44 = vpop.f32.mrf.mxu3  ;;  %v6351_v34 = vpop.f32.mrf.mxu0 }
 0x1ae   :  { %v5925_v49 = vld [vmem:[#allocation7 + $0xaf4] sm:$0xf0]  ;;  %v4674_v37 = vld [vmem:[#allocation7 + $0x238] sm:$0xf0]  ;;  %v6353_v44 = vpop.f32.mrf.mxu1 }
 0x1af   :  { %v5233_v7 = vor.u32 %v5925_v49, %v5232_v46  ;;  %v5088_v55 = vld [vmem:[#allocation7 + $0x898] sm:$0xf]  ;;  %3050 = vmatpush.bf16.msra.mxu3 %v4741_v35  ;;  %3012 = vmatpush.bf16.msra.mxu0 %v5105_v53  ;;  %v5843_v45 = vld [vmem:[#allocation7 + $0x5dc] sm:$0xf]  ;;  %v4677_v53 = vor.u32 %v5783_v41, %v4674_v37 }
 0x1b0   :  { %v5889_v56 = vld [vmem:[#allocation7 + $0x8b4] sm:$0xf0]  ;;  %v4914_v46 = vld [vmem:[#allocation7 + $0x5f8] sm:$0xf0] }
 0x1b1   :  { %v5216_v57 = vld [vmem:[#allocation7 + $0xa98] sm:$0xf]  ;;  %v5089_v0 = vor.u32 %v5889_v56, %v5088_v55  ;;  %3025 = vmatpush.bf16.msra.mxu1 %v5233_v7  ;;  %3038 = vmatpush.bf16.msra.mxu2 %v4597_v54  ;;  %v5042_v35 = vld [vmem:[#allocation7 + $0x7f8] sm:$0xf0]  ;;  %v4917_v7 = vor.u32 %v5843_v45, %v4914_v46 }
 0x1b2   :  { %v5921_v59 = vld [vmem:[#allocation7 + $0xab4] sm:$0xf0]  ;;  %v5907_v49 = vld [vmem:[#allocation7 + $0x9dc] sm:$0xf]  ;;  %v5045_v54 = vor.u32 %v5875_v47, %v5042_v35 }
 0x1b3   :  { %v5217_v4 = vor.u32 %v5921_v59, %v5216_v57  ;;  %v5072_v10 = vld [vmem:[#allocation7 + $0x858] sm:$0xf]  ;;  %3051 = vmatpush.bf16.msra.mxu3 %v4725_v19  ;;  %3013 = vmatpush.bf16.msra.mxu0 %v5089_v0  ;;  %v5173_v55 = vor.u32 %v5907_v49, %v5170_v38  ;;  %v5839_v56 = vld [vmem:[#allocation7 + $0x59c] sm:$0xf]  ;;  %v5301_v19 = vor.u32 %v5939_v42, %v5298_v52 }
 0x1b4   :  { %v5885_v13 = vld [vmem:[#allocation7 + $0x874] sm:$0xf0]  ;;  %v4898_v57 = vld [vmem:[#allocation7 + $0x5b8] sm:$0xf0]  ;;  %v5157_v0 = vor.u32 %v5903_v60, %v5154_v61 }
 0x1b5   :  { %v5200_v15 = vld [vmem:[#allocation7 + $0xa58] sm:$0xf]  ;;  %v5073_v26 = vor.u32 %v5885_v13, %v5072_v10  ;;  %3026 = vmatpush.bf16.msra.mxu1 %v5217_v4  ;;  %3039 = vmatpush.bf16.msra.mxu2 %v4581_v6  ;;  %v5026_v59 = vld [vmem:[#allocation7 + $0x7b8] sm:$0xf0]  ;;  %v4901_v63 = vor.u32 %v5839_v56, %v4898_v57  ;;  %v2811_v61 = vpop.f32.mrf.mxu0 }
 0x1b6   :  { %v5917_v20 = vld [vmem:[#allocation7 + $0xa74] sm:$0xf0]  ;;  %v5935_v62 = vld [vmem:[#allocation7 + $0xb9c] sm:$0xf]  ;;  %v5029_v23 = vor.u32 %v5871_v58, %v5026_v59 }
 0x1b7   :  { %v5056_v27 = vld [vmem:[#allocation7 + $0x818] sm:$0xf]  ;;  %v5201_v29 = vor.u32 %v5917_v20, %v5200_v15  ;;  %3052 = vmatpush.bf16.msra.mxu3 %v4709_v17  ;;  %3014 = vmatpush.bf16.msra.mxu0 %v5073_v26  ;;  %v5282_v43 = vld [vmem:[#allocation7 + $0xbb8] sm:$0xf0] }
 0x1b8   :  { %v5881_v28 = vld [vmem:[#allocation7 + $0x834] sm:$0xf0]  ;;  %v5835_v3 = vld [vmem:[#allocation7 + $0x55c] sm:$0xf]  ;;  %v5285_v10 = vor.u32 %v5935_v62, %v5282_v43  ;;  %v6357_v58 = vpop.f32.mrf.mxu3 }
 0x1b9   :  { %v5184_v31 = vld [vmem:[#allocation7 + $0xa18] sm:$0xf]  ;;  %v5057_v48 = vor.u32 %v5881_v28, %v5056_v27  ;;  %3027 = vmatpush.bf16.msra.mxu1 %v5201_v29  ;;  %3040 = vmatpush.bf16.msra.mxu2 %v4565_v30  ;;  %v4882_v4 = vld [vmem:[#allocation7 + $0x578] sm:$0xf0] }
 0x1ba   :  { %v5913_v32 = vld [vmem:[#allocation7 + $0xa34] sm:$0xf0]  ;;  %v5867_v6 = vld [vmem:[#allocation7 + $0x75c] sm:$0xf]  ;;  %v4885_v21 = vor.u32 %v5835_v3, %v4882_v4  ;;  %v2824_v3 = vpop.f32.mrf.mxu1 }
 0x1bb   :  { %v5185_v18 = vor.u32 %v5913_v32, %v5184_v31  ;;  %3053 = vmatpush.bf16.msra.mxu3 %v4693_v39  ;;  %3015 = vmatpush.bf16.msra.mxu0 %v5057_v48  ;;  %v5010_v13 = vld [vmem:[#allocation7 + $0x778] sm:$0xf0] }
 0x1bc   :  { %v5899_v15 = vld [vmem:[#allocation7 + $0x95c] sm:$0xf]  ;;  %v5013_v22 = vor.u32 %v5867_v6, %v5010_v13 }
 0x1bd   :  { %3028 = vmatpush.bf16.msra.mxu1 %v5185_v18  ;;  %3041 = vmatpush.bf16.msra.mxu2 %v4549_v51  ;;  %v5138_v16 = vld [vmem:[#allocation7 + $0x978] sm:$0xf0] }
 0x1be   :  { %3016 = vmatmul.bf16.vlgmr.msra.gmra.mxu0 %v6320_v2  ;;  %v5931_v17 = vld [vmem:[#allocation7 + $0xb5c] sm:$0xf]  ;;  %v5141_v24 = vor.u32 %v5899_v15, %v5138_v16 }
 0x1bf   :  { %3054 = vmatpush.bf16.msra.mxu3 %v4677_v53  ;;  %3060 = vmatpush.bf16.msrb.mxu0 %v4917_v7  ;;  %v5266_v20 = vld [vmem:[#allocation7 + $0xb78] sm:$0xf0]  ;;  %v6355_v7 = vpop.f32.mrf.mxu2 }
 0x1c0   :  { %3029 = vmatmul.bf16.vlgmr.msra.gmra.mxu1 %v6322_v5  ;;  %3042 = vmatmul.bf16.vlgmr.msra.gmra.mxu2 %v6307_v11  ;;  %v5831_v25 = vld [vmem:[#allocation7 + $0x51c] sm:$0xf]  ;;  %v5269_v28 = vor.u32 %v5931_v17, %v5266_v20 }
 0x1c1   :  { %3073 = vmatpush.bf16.msrb.mxu1 %v5045_v54  ;;  %3086 = vmatpush.bf16.msrb.mxu2 %v5173_v55  ;;  %v4866_v26 = vld [vmem:[#allocation7 + $0x538] sm:$0xf0] }
 0x1c2   :  { %3055 = vmatmul.bf16.vlgmr.msra.gmra.mxu3 %v6311_v14  ;;  %v5863_v27 = vld [vmem:[#allocation7 + $0x71c] sm:$0xf]  ;;  %v4869_v33 = vor.u32 %v5831_v25, %v4866_v26 }
 0x1c3   :  { %3099 = vmatpush.bf16.msrb.mxu3 %v5301_v19  ;;  %3061 = vmatpush.bf16.msrb.mxu0 %v4901_v63  ;;  %v4994_v29 = vld [vmem:[#allocation7 + $0x738] sm:$0xf0] }
 0x1c4   :  { %v5895_v30 = vld [vmem:[#allocation7 + $0x91c] sm:$0xf]  ;;  %v4997_v14 = vor.u32 %v5863_v27, %v4994_v29 }
 0x1c5   :  { %3074 = vmatpush.bf16.msrb.mxu1 %v5029_v23  ;;  %3087 = vmatpush.bf16.msrb.mxu2 %v5157_v0  ;;  %v5122_v31 = vld [vmem:[#allocation7 + $0x938] sm:$0xf0] }
 0x1c6   :  { %v5927_v32 = vld [vmem:[#allocation7 + $0xb1c] sm:$0xf]  ;;  %v5125_v39 = vor.u32 %v5895_v30, %v5122_v31  ;;  %v2850_v31 = vpop.f32.mrf.mxu3 }
 0x1c7   :  { %3100 = vmatpush.bf16.msrb.mxu3 %v5285_v10  ;;  %v5250_v11 = vld [vmem:[#allocation7 + $0xb38] sm:$0xf0]  ;;  %3062 = vmatpush.bf16.msrb.mxu0 %v4885_v21  ;;  %v2837_v26 = vpop.f32.mrf.mxu2  ;;  %v5945_v31 = vld [vmem:[#allocation10 + $0x18] sm:$0xff] }
 0x1c8   :  { %v5827_v40 = vld [vmem:[#allocation7 + $0x4dc] sm:$0xf]  ;;  %v5253_v45 = vor.u32 %v5927_v32, %v5250_v11  ;;  %v5954_v26 = vld [vmem:[#allocation10 + $0x60] sm:$0xff] }
 0x1c9   :  { %3075 = vmatpush.bf16.msrb.mxu1 %v5013_v22  ;;  %3088 = vmatpush.bf16.msrb.mxu2 %v5141_v24  ;;  %v4850_v41 = vld [vmem:[#allocation7 + $0x4f8] sm:$0xf0] }
 0x1ca   :  { %v5859_v37 = vld [vmem:[#allocation7 + $0x6dc] sm:$0xf]  ;;  %v4853_v38 = vor.u32 %v5827_v40, %v4850_v41 }
 0x1cb   :  { %3101 = vmatpush.bf16.msrb.mxu3 %v5269_v28  ;;  %v4978_v46 = vld [vmem:[#allocation7 + $0x6f8] sm:$0xf0]  ;;  %3063 = vmatpush.bf16.msrb.mxu0 %v4869_v33 }
 0x1cc   :  { %v5891_v47 = vld [vmem:[#allocation7 + $0x8dc] sm:$0xf]  ;;  %v4981_v18 = vor.u32 %v5859_v37, %v4978_v46  ;;  %v5981_v37 = vld [vmem:[#allocation10 + $0x138] sm:$0xff] }
 0x1cd   :  { %v5106_v48 = vld [vmem:[#allocation7 + $0x8f8] sm:$0xf0]  ;;  %3076 = vmatpush.bf16.msrb.mxu1 %v4997_v14  ;;  %3089 = vmatpush.bf16.msrb.mxu2 %v5125_v39  ;;  %v6359_v14 = vld [vmem:[#allocation8 + $0x4] sm:$0xf] }
 0x1ce   :  { %v5923_v35 = vld [vmem:[#allocation7 + $0xadc] sm:$0xf]  ;;  %v5109_v51 = vor.u32 %v5891_v47, %v5106_v48  ;;  %v5989_v46 = vld [vmem:[#allocation10 + $0x178] sm:$0xff]  ;;  %v1833_v3 = vperm.slane %v6359_v14, 1 }
 0x1cf   :  { %v5234_v49 = vld [vmem:[#allocation7 + $0xaf8] sm:$0xf0]  ;;  %3102 = vmatpush.bf16.msrb.mxu3 %v5253_v45  ;;  %3064 = vmatpush.bf16.msrb.mxu0 %v4853_v38  ;;  %v1832_v45 = vperm.slane %v6359_v14, 0 }
 0x1d0   :  { %v5823_v42 = vld [vmem:[#allocation7 + $0x49c] sm:$0xf]  ;;  %v5237_v54 = vor.u32 %v5923_v35, %v5234_v49  ;;  %v5979_v49 = vld [vmem:[#allocation10 + $0x128] sm:$0xff] }
 0x1d1   :  { %v4834_v52 = vld [vmem:[#allocation7 + $0x4b8] sm:$0xf0]  ;;  %3077 = vmatpush.bf16.msrb.mxu1 %v4981_v18  ;;  %3090 = vmatpush.bf16.msrb.mxu2 %v5109_v51  ;;  %v2810_v48 = vadd.f32 %v6351_v34, %v1832_v45  ;;  %v5987_v18 = vld [vmem:[#allocation10 + $0x168] sm:$0xff]  ;;  %v2861_v51 = vpop.f32.mrf.mxu0 }
 0x1d2   :  { %v5855_v53 = vld [vmem:[#allocation7 + $0x69c] sm:$0xf]  ;;  %v4837_v60 = vor.u32 %v5823_v42, %v4834_v52  ;;  %v5978_v42 = vld [vmem:[#allocation10 + $0x120] sm:$0xff] }
 0x1d3   :  { %v4962_v55 = vld [vmem:[#allocation7 + $0x6b8] sm:$0xf0]  ;;  %3103 = vmatpush.bf16.msrb.mxu3 %v5237_v54  ;;  %v2823_v38 = vadd.f32 %v6353_v44, %v2810_v48  ;;  %v5986_v52 = vld [vmem:[#allocation10 + $0x160] sm:$0xff] }
 0x1d4   :  { %v5887_v56 = vld [vmem:[#allocation7 + $0x89c] sm:$0xf]  ;;  %v4965_v62 = vor.u32 %v5855_v53, %v4962_v55  ;;  %3065 = vmatpush.bf16.msrb.mxu0 %v4837_v60  ;;  %v5983_v60 = vld [vmem:[#allocation10 + $0x148] sm:$0xff] }
 0x1d5   :  { %v5090_v57 = vld [vmem:[#allocation7 + $0x8b8] sm:$0xf0]  ;;  %v2836_v34 = vadd.f32 %v6355_v7, %v2823_v38 }
 0x1d6   :  { %v5919_v19 = vld [vmem:[#allocation7 + $0xa9c] sm:$0xf]  ;;  %v5093_v43 = vor.u32 %v5887_v56, %v5090_v57  ;;  %3078 = vmatpush.bf16.msrb.mxu1 %v4965_v62  ;;  %v2887_v53 = vpop.f32.mrf.mxu2 }
 0x1d7   :  { %v5218_v59 = vld [vmem:[#allocation7 + $0xab8] sm:$0xf0] }
 0x1d8   :  { %v5819_v63 = vld [vmem:[#allocation7 + $0x45c] sm:$0xf]  ;;  %v5221_v4 = vor.u32 %v5919_v19, %v5218_v59  ;;  %3091 = vmatpush.bf16.msrb.mxu2 %v5093_v43  ;;  %v2900_v54 = vpop.f32.mrf.mxu3  ;;  %v5975_v59 = vld [vmem:[#allocation10 + $0x108] sm:$0xff] }
 0x1d9   :  { %v4818_v23 = vld [vmem:[#allocation7 + $0x478] sm:$0xf0]  ;;  %v2863_v55 = vpop.f32.mrf.mxu0 }
 0x1da   :  { %v5851_v0 = vld [vmem:[#allocation7 + $0x65c] sm:$0xf]  ;;  %v4821_v17 = vor.u32 %v5819_v63, %v4818_v23  ;;  %3104 = vmatpush.bf16.msrb.mxu3 %v5221_v4  ;;  %v5949_v63 = vld [vmem:[#allocation10 + $0x38] sm:$0xff]  ;;  %v5982_v23 = vld [vmem:[#allocation10 + $0x140] sm:$0xff]  ;;  %v1828_v55 = vmax.f32 %v6318_v9, 0.0 }
 0x1db   :  { %v4946_v6 = vld [vmem:[#allocation7 + $0x678] sm:$0xf0]  ;;  %v5997_v4 = vld [vmem:[#allocation10 + $0x1b8] sm:$0xff]  ;;  %v6002_v9 = vld [vmem:[#allocation10 + $0x1e0] sm:$0xff] }
 0x1dc   :  { %v5883_v10 = vld [vmem:[#allocation7 + $0x85c] sm:$0xf]  ;;  %v4949_v20 = vor.u32 %v5851_v0, %v4946_v6  ;;  %3066 = vmatpush.bf16.msrb.mxu0 %v4821_v17  ;;  %v5957_v0 = vld [vmem:[#allocation10 + $0x78] sm:$0xff]  ;;  %v5947_v17 = vld [vmem:[#allocation10 + $0x28] sm:$0xff] }
 0x1dd   :  { %v5074_v13 = vld [vmem:[#allocation7 + $0x878] sm:$0xf0] }
 0x1de   :  { %v5915_v15 = vld [vmem:[#allocation7 + $0xa5c] sm:$0xf]  ;;  %v5077_v21 = vor.u32 %v5883_v10, %v5074_v13  ;;  %3079 = vmatpush.bf16.msrb.mxu1 %v4949_v20  ;;  %v2889_v61 = vpop.f32.mrf.mxu2  ;;  %v5955_v20 = vld [vmem:[#allocation10 + $0x68] sm:$0xff] }
 0x1df   :  { %v5202_v16 = vld [vmem:[#allocation7 + $0xa78] sm:$0xf0] }
 0x1e0   :  { %v5815_v22 = vld [vmem:[#allocation7 + $0x41c] sm:$0xf]  ;;  %v5205_v27 = vor.u32 %v5915_v15, %v5202_v16  ;;  %3092 = vmatpush.bf16.msrb.mxu2 %v5077_v21  ;;  %v2902_v62 = vpop.f32.mrf.mxu3  ;;  %v2888_v16 = vadd.f32 %v2887_v53, %v1833_v3  ;;  %v5995_v21 = vld [vmem:[#allocation10 + $0x1a8] sm:$0xff]  ;;  %v6001_v3 = vld [vmem:[#allocation10 + $0x1d8] sm:$0xff] }
 0x1e1   :  { %v4802_v24 = vld [vmem:[#allocation7 + $0x438] sm:$0xf0]  ;;  %v5961_v62 = vld [vmem:[#allocation10 + $0x98] sm:$0xff] }
 0x1e2   :  { %v5847_v25 = vld [vmem:[#allocation7 + $0x61c] sm:$0xf]  ;;  %v4805_v33 = vor.u32 %v5815_v22, %v4802_v24  ;;  %3105 = vmatpush.bf16.msrb.mxu3 %v5205_v27  ;;  %v2901_v22 = vadd.f32 %v2900_v54, %v2888_v16  ;;  %v5946_v24 = vld [vmem:[#allocation10 + $0x20] sm:$0xff] }
 0x1e3   :  { %v4930_v28 = vld [vmem:[#allocation7 + $0x638] sm:$0xf0]  ;;  %v5994_v27 = vld [vmem:[#allocation10 + $0x1a0] sm:$0xff] }
 0x1e4   :  { %v5879_v29 = vld [vmem:[#allocation7 + $0x81c] sm:$0xf]  ;;  %v4933_v39 = vor.u32 %v5847_v25, %v4930_v28  ;;  %3067 = vmatpush.bf16.msrb.mxu0 %v4805_v33  ;;  %v5958_v16 = vld [vmem:[#allocation10 + $0x80] sm:$0xff] }
 0x1e5   :  { %v5058_v30 = vld [vmem:[#allocation7 + $0x838] sm:$0xf0] }
 0x1e6   :  { %v5911_v32 = vld [vmem:[#allocation7 + $0xa1c] sm:$0xf]  ;;  %v5061_v40 = vor.u32 %v5879_v29, %v5058_v30  ;;  %3080 = vmatpush.bf16.msrb.mxu1 %v4933_v39 }
 0x1e7   :  { %v5186_v11 = vld [vmem:[#allocation7 + $0xa38] sm:$0xf0]  ;;  %3068 = vmatmul.bf16.vlgmr.msrb.gmra.mxu0 %v6305_v8  ;;  %v2874_v8 = vpop.f32.mrf.mxu1 }
 0x1e8   :  { %v5189_v41 = vor.u32 %v5911_v32, %v5186_v11  ;;  %3093 = vmatpush.bf16.msrb.mxu2 %v5061_v40  ;;  %3444 = vmatpush.bf16.msra.mxu0 %v5981_v37  ;;  %v5980_v47 = vld [vmem:[#allocation10 + $0x130] sm:$0xff]  ;;  %v5953_v32 = vld [vmem:[#allocation10 + $0x58] sm:$0xff] }
 0x1e9   :  { %v5988_v35 = vld [vmem:[#allocation10 + $0x170] sm:$0xff]  ;;  %3081 = vmatmul.bf16.vlgmr.msrb.gmra.mxu1 %v6309_v12  ;;  %v5977_v12 = vld [vmem:[#allocation10 + $0x118] sm:$0xff] }
 0x1ea   :  { %3106 = vmatpush.bf16.msrb.mxu3 %v5189_v41  ;;  %3457 = vmatpush.bf16.msra.mxu1 %v5989_v46  ;;  %v5976_v44 = vld [vmem:[#allocation10 + $0x110] sm:$0xff]  ;;  %v5993_v11 = vld [vmem:[#allocation10 + $0x198] sm:$0xff] }
 0x1eb   :  { %3094 = vmatmul.bf16.vlgmr.msrb.gmra.mxu2 %v6320_v2  ;;  %v2849_v2 = vadd.f32 %v6357_v58, %v2836_v34  ;;  %v5984_v19 = vld [vmem:[#allocation10 + $0x150] sm:$0xff]  ;;  %v5974_v58 = vld [vmem:[#allocation10 + $0x100] sm:$0xff] }
 0x1ec   :  { %3445 = vmatpush.bf16.msra.mxu0 %v5980_v47  ;;  %v5948_v10 = vld [vmem:[#allocation10 + $0x30] sm:$0xff]  ;;  %3470 = vmatpush.bf16.msra.mxu2 %v5997_v4  ;;  %v5942_v34 = vld [vmem:[#allocation10] sm:$0xff]  ;;  %v5959_v4 = vld [vmem:[#allocation10 + $0x88] sm:$0xff] }
 0x1ed   :  { %3107 = vmatmul.bf16.vlgmr.msrb.gmra.mxu3 %v6322_v5  ;;  %v5985_v5 = vld [vmem:[#allocation10 + $0x158] sm:$0xff]  ;;  %v2862_v57 = vadd.f32 %v2861_v51, %v2849_v2  ;;  %v5956_v13 = vld [vmem:[#allocation10 + $0x70] sm:$0xff]  ;;  %v5991_v51 = vld [vmem:[#allocation10 + $0x188] sm:$0xff] }
 0x1ee   :  { %3458 = vmatpush.bf16.msra.mxu1 %v5988_v35  ;;  %v5996_v15 = vld [vmem:[#allocation10 + $0x1b0] sm:$0xff]  ;;  %v5990_v2 = vld [vmem:[#allocation10 + $0x180] sm:$0xff] }
 0x1ef   :  { %v2876_v56 = vpop.f32.mrf.mxu1  ;;  %v2875_v7 = vadd.f32 %v2874_v8, %v2862_v57  ;;  %v5944_v41 = vld [vmem:[#allocation10 + $0x10] sm:$0xff] }
 0x1f0   :  { %3446 = vmatpush.bf16.msra.mxu0 %v5979_v49  ;;  %3471 = vmatpush.bf16.msra.mxu2 %v5996_v15  ;;  %v5952_v45 = vld [vmem:[#allocation10 + $0x50] sm:$0xff]  ;;  %v5943_v49 = vld [vmem:[#allocation10 + $0x8] sm:$0xff]  ;;  %v3245_v56 = vpack.c.bf16 %v1828_v55, %v1828_v55 }
 0x1f1   :  { %v3112_v43 = vmax.f32 %v2875_v7, 0.0  ;;  %v5992_v47 = vld [vmem:[#allocation10 + $0x190] sm:$0xff]  ;;  %v5962_v7 = vld [vmem:[#allocation10 + $0xa0] sm:$0xff] }
 0x1f2   :  { %3459 = vmatpush.bf16.msra.mxu1 %v5987_v18  ;;  %v5951_v18 = vld [vmem:[#allocation10 + $0x48] sm:$0xff]  ;;  %v5964_v54 = vld [vmem:[#allocation10 + $0xb0] sm:$0xff] }
 0x1f3   :  { %v3248_v6 = vpack.c.bf16 %v3112_v43, %v3112_v43  ;;  %v6000_v15 = vld [vmem:[#allocation10 + $0x1d0] sm:$0xff] }
 0x1f4   :  { %3447 = vmatpush.bf16.msra.mxu0 %v5978_v42  ;;  %3472 = vmatpush.bf16.msra.mxu2 %v5995_v21 }
 0x1f6   :  { %3460 = vmatpush.bf16.msra.mxu1 %v5986_v52  ;;  %v1827_v52 = vmax.f32 %v6300_v36, 0.0  ;;  %v5963_v36 = vld [vmem:[#allocation10 + $0xa8] sm:$0xff] }
 0x1f8   :  { %3448 = vmatpush.bf16.msra.mxu0 %v5977_v12  ;;  %3473 = vmatpush.bf16.msra.mxu2 %v5994_v27  ;;  %v5950_v12 = vld [vmem:[#allocation10 + $0x40] sm:$0xff]  ;;  %v3244_v53 = vpack.c.bf16 %v1827_v52, %v1827_v52  ;;  %v5972_v27 = vld [vmem:[#allocation10 + $0xf0] sm:$0xff] }
 0x1f9   :  { %v2913_v25 = vpop.f32.mrf.mxu0 }
 0x1fa   :  { %3461 = vmatpush.bf16.msra.mxu1 %v5985_v5  ;;  %v2914_v28 = vadd.f32 %v2913_v25, %v2901_v22  ;;  %v5965_v5 = vld [vmem:[#allocation10 + $0xb8] sm:$0xff]  ;;  %v5998_v22 = vld [vmem:[#allocation10 + $0x1c0] sm:$0xff] }
 0x1fb   :  { %v2926_v29 = vpop.f32.mrf.mxu1  ;;  %v5973_v25 = vld [vmem:[#allocation10 + $0xf8] sm:$0xff] }
 0x1fc   :  { %3449 = vmatpush.bf16.msra.mxu0 %v5976_v44  ;;  %v2927_v30 = vadd.f32 %v2926_v29, %v2914_v28  ;;  %3474 = vmatpush.bf16.msra.mxu2 %v5993_v11  ;;  %v6005_v44 = vld [vmem:[#allocation10 + $0x1f8] sm:$0xff] }
 0x1fd   :  { %3483 = vmatpush.bf16.msra.mxu3 %v6005_v44 }
 0x1fe   :  { %3462 = vmatpush.bf16.msra.mxu1 %v5984_v19 }
 0x200   :  { %3450 = vmatpush.bf16.msra.mxu0 %v5975_v59  ;;  %3475 = vmatpush.bf16.msra.mxu2 %v5992_v47  ;;  %v6004_v59 = vld [vmem:[#allocation10 + $0x1f0] sm:$0xff] }
 0x201   :  { %v2915_v46 = vpop.f32.mrf.mxu0  ;;  %3484 = vmatpush.bf16.msra.mxu3 %v6004_v59  ;;  %v5968_v47 = vld [vmem:[#allocation10 + $0xd0] sm:$0xff] }
 0x202   :  { %3463 = vmatpush.bf16.msra.mxu1 %v5983_v60  ;;  %v6003_v60 = vld [vmem:[#allocation10 + $0x1e8] sm:$0xff] }
 0x203   :  { %v2939_v33 = vpop.f32.mrf.mxu2  ;;  %v2928_v48 = vpop.f32.mrf.mxu1 }
 0x204   :  { %3451 = vmatpush.bf16.msra.mxu0 %v5974_v58  ;;  %v2940_v39 = vadd.f32 %v2939_v33, %v2927_v30  ;;  %3476 = vmatpush.bf16.msra.mxu2 %v5991_v51  ;;  %v5966_v51 = vld [vmem:[#allocation10 + $0xc0] sm:$0xff] }
 0x205   :  { %v2952_v40 = vpop.f32.mrf.mxu3  ;;  %3485 = vmatpush.bf16.msra.mxu3 %v6003_v60 }
 0x206   :  { %3464 = vmatpush.bf16.msra.mxu1 %v5982_v23  ;;  %v2953_v37 = vadd.f32 %v2952_v40, %v2940_v39  ;;  %v5960_v23 = vld [vmem:[#allocation10 + $0x90] sm:$0xff] }
 0x207   :  { %3452 = vmatmul.bf16.vlgmr.msra.gmra.mxu0 %v3248_v6 }
 0x208   :  { %3688 = vmatpush.bf16.msrb.mxu0 %v5949_v63  ;;  %v3113_v35 = vmax.f32 %v2953_v37, 0.0  ;;  %3477 = vmatpush.bf16.msra.mxu2 %v5990_v2  ;;  %v5970_v37 = vld [vmem:[#allocation10 + $0xe0] sm:$0xff] }
 0x209   :  { %3486 = vmatpush.bf16.msra.mxu3 %v6002_v9 }
 0x20a   :  { %3701 = vmatpush.bf16.msrb.mxu1 %v5957_v0  ;;  %v3249_v38 = vpack.c.bf16 %v3113_v35, %v3113_v35  ;;  %v1834_v0 = vperm.slane %v6359_v14, 2  ;;  %v1829_v35 = vmax.f32 %v6336_v50, 0.0 }
 0x20b   :  { %v2941_v42 = vpop.f32.mrf.mxu2 }
 0x20c   :  { %3689 = vmatpush.bf16.msrb.mxu0 %v5948_v10  ;;  %3465 = vmatmul.bf16.vlgmr.msra.gmra.mxu1 %v3249_v38  ;;  %v1835_v38 = vperm.slane %v6359_v14, 3 }
 0x20d   :  { %v2954_v8 = vpop.f32.mrf.mxu3  ;;  %3714 = vmatpush.bf16.msrb.mxu2 %v5965_v5  ;;  %3487 = vmatpush.bf16.msra.mxu3 %v6001_v3 }
 0x20e   :  { %3702 = vmatpush.bf16.msrb.mxu1 %v5956_v13 }
 0x210   :  { %3690 = vmatpush.bf16.msrb.mxu0 %v5947_v17 }
 0x211   :  { %3715 = vmatpush.bf16.msrb.mxu2 %v5964_v54  ;;  %3488 = vmatpush.bf16.msra.mxu3 %v6000_v15 }
 0x212   :  { %3703 = vmatpush.bf16.msrb.mxu1 %v5955_v20  ;;  %v5999_v20 = vld [vmem:[#allocation10 + $0x1c8] sm:$0xff] }
 0x214   :  { %3691 = vmatpush.bf16.msrb.mxu0 %v5946_v24 }
 0x215   :  { %3716 = vmatpush.bf16.msrb.mxu2 %v5963_v36  ;;  %3489 = vmatpush.bf16.msra.mxu3 %v5999_v20 }
 0x216   :  { %3704 = vmatpush.bf16.msrb.mxu1 %v5954_v26 }
 0x218   :  { %3692 = vmatpush.bf16.msrb.mxu0 %v5945_v31 }
 0x219   :  { %v2965_v57 = vpop.f32.mrf.mxu0  ;;  %3717 = vmatpush.bf16.msrb.mxu2 %v5962_v7  ;;  %3490 = vmatpush.bf16.msra.mxu3 %v5998_v22 }
 0x21a   :  { %3705 = vmatpush.bf16.msrb.mxu1 %v5953_v32  ;;  %v2966_v6 = vadd.f32 %v2965_v57, %v1834_v0  ;;  %v5971_v32 = vld [vmem:[#allocation10 + $0xe8] sm:$0xff] }
 0x21b   :  { %v2978_v19 = vpop.f32.mrf.mxu1 }
 0x21c   :  { %3693 = vmatpush.bf16.msrb.mxu0 %v5944_v41  ;;  %v2979_v17 = vadd.f32 %v2978_v19, %v2966_v6  ;;  %v1830_v19 = vmax.f32 %v6345_v1, 0.0 }
 0x21d   :  { %3718 = vmatpush.bf16.msrb.mxu2 %v5961_v62  ;;  %3727 = vmatpush.bf16.msrb.mxu3 %v5973_v25 }
 0x21e   :  { %3706 = vmatpush.bf16.msrb.mxu1 %v5952_v45  ;;  %v5969_v45 = vld [vmem:[#allocation10 + $0xd8] sm:$0xff]  ;;  %v3247_v59 = vpack.c.bf16 %v1830_v19, %v1830_v19 }
 0x220   :  { %3694 = vmatpush.bf16.msrb.mxu0 %v5943_v49  ;;  %v5967_v49 = vld [vmem:[#allocation10 + $0xc8] sm:$0xff] }
 0x221   :  { %v2967_v58 = vpop.f32.mrf.mxu0  ;;  %3719 = vmatpush.bf16.msrb.mxu2 %v5960_v23  ;;  %3728 = vmatpush.bf16.msrb.mxu3 %v5972_v27 }
 0x222   :  { %3707 = vmatpush.bf16.msrb.mxu1 %v5951_v18  ;;  %v3246_v18 = vpack.c.bf16 %v1829_v35, %v1829_v35 }
 0x223   :  { %v2991_v61 = vpop.f32.mrf.mxu2  ;;  %v2980_v63 = vpop.f32.mrf.mxu1 }
 0x224   :  { %3695 = vmatpush.bf16.msrb.mxu0 %v5942_v34  ;;  %v2992_v21 = vadd.f32 %v2991_v61, %v2979_v17 }
 0x225   :  { %v3004_v43 = vpop.f32.mrf.mxu3  ;;  %3720 = vmatpush.bf16.msrb.mxu2 %v5959_v4  ;;  %3729 = vmatpush.bf16.msrb.mxu3 %v5971_v32 }
 0x226   :  { %3708 = vmatpush.bf16.msrb.mxu1 %v5950_v12  ;;  %v3005_v24 = vadd.f32 %v3004_v43, %v2992_v21  ;;  %v6017_v21 = vld [vmem:[#allocation11] ss:$0 sm:$0xff] }
 0x227   :  { %3696 = vmatmul.bf16.vlgmr.msrb.gmra.mxu0 %v3244_v53 }
 0x229   :  { %3709 = vmatmul.bf16.vlgmr.msrb.gmra.mxu1 %v3245_v56  ;;  %3721 = vmatpush.bf16.msrb.mxu2 %v5958_v16 }
 0x22a   :  { %3730 = vmatpush.bf16.msrb.mxu3 %v5970_v37 }
 0x22b   :  { %v2993_v10 = vpop.f32.mrf.mxu2 }
 0x22d   :  { %v3006_v13 = vpop.f32.mrf.mxu3 }
 0x22e   :  { %3731 = vmatpush.bf16.msrb.mxu3 %v5969_v45 }
 0x232   :  { %3732 = vmatpush.bf16.msrb.mxu3 %v5968_v47 }
 0x236   :  { %3733 = vmatpush.bf16.msrb.mxu3 %v5967_v49 }
 0x23a   :  { %3734 = vmatpush.bf16.msrb.mxu3 %v5966_v51 }
 0x23b   :  { %v3017_v26 = vpop.f32.mrf.mxu0 }
 0x23c   :  { %v3018_v28 = vadd.f32 %v3017_v26, %v3005_v24 }
 0x23d   :  { %v3030_v29 = vpop.f32.mrf.mxu1 }
 0x23e   :  { %v3031_v30 = vadd.f32 %v3030_v29, %v3018_v28 }
 0x240   :  { %v3114_v31 = vmax.f32 %v3031_v30, 0.0 }
 0x242   :  { %v3250_v11 = vpack.c.bf16 %v3114_v31, %v3114_v31 }
 0x243   :  { %v3043_v33 = vpop.f32.mrf.mxu2  ;;  %v3019_v40 = vpop.f32.mrf.mxu0 }
 0x244   :  { %3478 = vmatmul.bf16.vlgmr.msra.gmra.mxu2 %v3250_v11  ;;  %v3044_v42 = vadd.f32 %v3043_v33, %v1835_v38 }
 0x245   :  { %v3056_v39 = vpop.f32.mrf.mxu3  ;;  %v3032_v41 = vpop.f32.mrf.mxu1 }
 0x246   :  { %v3057_v8 = vadd.f32 %v3056_v39, %v3044_v42 }
 0x24b   :  { %v3045_v46 = vpop.f32.mrf.mxu2 }
 0x24d   :  { %v3058_v48 = vpop.f32.mrf.mxu3 }
 0x254   :  { %3722 = vmatmul.bf16.vlgmr.msrb.gmra.mxu2 %v3246_v18 }
 0x264   :  { %v3069_v34 = vpop.f32.mrf.mxu0 }
 0x265   :  { %v3070_v12 = vadd.f32 %v3069_v34, %v3057_v8 }
 0x266   :  { %v3082_v52 = vpop.f32.mrf.mxu1 }
 0x267   :  { %v3083_v2 = vadd.f32 %v3082_v52, %v3070_v12 }
 0x26c   :  { %v3071_v55 = vpop.f32.mrf.mxu0 }
 0x26e   :  { %v3095_v5 = vpop.f32.mrf.mxu2  ;;  %v3084_v50 = vpop.f32.mrf.mxu1 }
 0x26f   :  { %v3096_v53 = vadd.f32 %v3095_v5, %v3083_v2 }
 0x270   :  { %v3108_v54 = vpop.f32.mrf.mxu3 }
 0x271   :  { %v3109_v44 = vadd.f32 %v3108_v54, %v3096_v53 }
 0x273   :  { %v3115_v56 = vmax.f32 %v3109_v44, 0.0 }
 0x275   :  { %v3251_v57 = vpack.c.bf16 %v3115_v56, %v3115_v56 }
 0x276   :  { %v3097_v14 = vpop.f32.mrf.mxu2 }
 0x277   :  { %3491 = vmatmul.bf16.vlgmr.msra.gmra.mxu3 %v3251_v57 }
 0x278   :  { %v3110_v36 = vpop.f32.mrf.mxu3 }
 0x284   :  { %v3453_v7 = vpop.f32.mrf.mxu0 }
 0x287   :  { %3735 = vmatmul.bf16.vlgmr.msrb.gmra.mxu3 %v3247_v59 }
 0x289   :  { %v3466_v61 = vpop.f32.mrf.mxu1 }
 0x28a   :  { %v3467_v62 = vadd.f32 %v3466_v61, %v3453_v7 }
 0x28c   :  { %v3455_v60 = vpop.f32.mrf.mxu0 }
 0x291   :  { %v3468_v43 = vpop.f32.mrf.mxu1 }
 0x2a4   :  { %v3697_v58 = vpop.f32.mrf.mxu0 }
 0x2a6   :  { %v3710_v63 = vpop.f32.mrf.mxu1 }
 0x2ac   :  { %v3699_v9 = vpop.f32.mrf.mxu0 }
 0x2ae   :  { %v3712_v23 = vpop.f32.mrf.mxu1 }
 0x2c7   :  { %v3479_v0 = vpop.f32.mrf.mxu2 }
 0x2c8   :  { %v3480_v13 = vadd.f32 %v3479_v0, %v3467_v62 }
 0x2cf   :  { %v3481_v3 = vpop.f32.mrf.mxu2 }
 0x2d7   :  { %v3723_v4 = vpop.f32.mrf.mxu2 }
 0x2df   :  { %v3725_v6 = vpop.f32.mrf.mxu2 }
 0x2fa   :  { %v3492_v10 = vpop.f32.mrf.mxu3 }
 0x2fb   :  { %v3493_v15 = vadd.f32 %v3492_v10, %v3480_v13 }
 0x2fd   :  { %v3698_v16 = vadd.f32 %v3697_v58, %v3493_v15 }
 0x2ff   :  { %v3711_v17 = vadd.f32 %v3710_v63, %v3698_v16 }
 0x301   :  { %v3724_v20 = vadd.f32 %v3723_v4, %v3711_v17 }
 0x302   :  { %v3494_v1 = vpop.f32.mrf.mxu3 }
 0x30a   :  { %v3736_v22 = vpop.f32.mrf.mxu3 }
 0x30b   :  { %v3737_v24 = vadd.f32 %v3736_v22, %v3724_v20 }
 0x30d   :  { %v3744_v25 = vadd.f32 %v6017_v21, %v3737_v24 }
 0x30f   :  { %3745 = vst [vmem:[#allocation13] sm:$0x3] %v3744_v25 }
 0x310   :  { %3756 = dma.vmem_to_hbm [thread:$0]  %s3752_s5, 32, %s3754_s29, [#allocation4]  }
 0x312   :  { %v3738_v26 = vpop.f32.mrf.mxu3 }
 0x313   :  { %6195 = dma.done.wait [#allocation4], 32  }
 0x314   :  { %6196 = vsyncadd [#allocation4], 4294967264 }
 0x315   :  { %3761 = vsyncpa [#allocation3], 1 }
 0x316   :  { %3762 = vsyncpa [#allocation6], 1 }
 0x317   :  { %3763 = vsyncpa [#allocation9], 1 }
 0x318   :  { %3764 = vsyncpa [#allocation12], 1 }
 0x319   :  { %3765 = vsyncpa [#allocation4], 1 }

</bundles_post_ra>
